<compile_context>
chip_gen: v6e
topology: v6e:2x2x1
jax: 0.10.0
libtpu: 0.0.40
codegen_flags: <defaults>
</compile_context>

<pallas_src>
import functools

import jax
import jax.numpy as jnp
from jax.experimental import pallas as pl
from jax.experimental.pallas import tpu as pltpu


# Layer sizes of the autoencoder.
IN_DIM = 32 * 32 * 3  # 3072
ENC_DIMS = [IN_DIM, 128, 64, 12, 3]
DEC_DIMS = [3, 12, 64, 128, IN_DIM]
ALL_DIMS = list(zip(ENC_DIMS[:-1] + DEC_DIMS[:-1], ENC_DIMS[1:] + DEC_DIMS[1:]))
NUM_LAYERS = len(ALL_DIMS)  # 8 linear layers total


def _round_up(x, m):
    return ((x + m - 1) // m) * m


def _chip_config():
    """Generation-aware defaults: (batch_tile, vmem_limit_bytes, bf16_tail)."""
    try:
        kind = jax.devices()[0].device_kind.lower()
    except Exception:
        kind = ""
    is_v5 = "v5" in kind
    is_v6 = "v6" in kind
    if is_v5 or is_v6:
        # 128 MiB physical VMEM: bigger streaming tiles push closer to roofline.
        batch_tile, vmem_limit = 512, 96 * 1024 * 1024
    else:
        # v7x (64 MiB per-TC VMEM) or unknown chip: conservative defaults.
        batch_tile, vmem_limit = 256, 48 * 1024 * 1024
    # v5e has no bf16 VPU/EUP -> keep the elementwise tail in f32 there.
    bf16_tail = not is_v5
    return batch_tile, vmem_limit, bf16_tail


def _ae_kernel(x_ref, *refs, bf16_tail):
    """refs = (w1, b1, ..., w8, b8, out_ref).

    Weights are bf16 [in, out]; biases are f32 (1, out).  Matmuls run on the
    MXU in bf16 with f32 accumulation.  The final bias-add + tanh run in bf16
    when bf16_tail is set (v6e/v7x), in f32 otherwise (v5e).
    """
    out_ref = refs[-1]
    p = refs[:-1]

    # Single cast of the streamed input straight to the MXU LHS dtype.
    h = x_ref[...].astype(jnp.bfloat16)

    for layer in range(NUM_LAYERS):
        w = p[2 * layer][...]        # bf16 [in, out]
        b = p[2 * layer + 1][...]    # f32  (1, out) -> broadcasts
        acc = jnp.dot(h, w, preferred_element_type=jnp.float32)
        if layer < NUM_LAYERS - 1:
            a = acc + b
            if layer != 3:
                # ReLU after every hidden linear except the encoder bottleneck
                # output (layer index 3, 12->3), which has no activation.
                a = jnp.maximum(a, 0.0)
            h = a.astype(jnp.bfloat16)
        else:
            # Final layer (128 -> 3072) followed by Tanh.
            if bf16_tail:
                y = jnp.tanh(acc.astype(jnp.bfloat16) + b.astype(jnp.bfloat16))
            else:
                y = jnp.tanh(acc + b)
            out_ref[...] = y.astype(out_ref.dtype)


def _param_spec(shape, single_buffer):
    # Constant block index -> DMA'd once, stays resident for the whole grid.
    if single_buffer:
        return pl.BlockSpec(shape, lambda i: (0, 0), pipeline_mode=pl.Buffered(1))
    return pl.BlockSpec(shape, lambda i: (0, 0))


def _build_call(bt, padded_B, flat_params, out_dtype, vmem_limit_bytes,
                bf16_tail, single_buffer_weights):
    D = IN_DIM
    in_specs = [pl.BlockSpec((bt, D), lambda i: (i, 0))]
    for arr in flat_params:
        in_specs.append(_param_spec(arr.shape, single_buffer_weights))
    out_spec = pl.BlockSpec((bt, D), lambda i: (i, 0))

    return pl.pallas_call(
        functools.partial(_ae_kernel, bf16_tail=bf16_tail),
        out_shape=jax.ShapeDtypeStruct((padded_B, D), out_dtype),
        grid_spec=pltpu.PrefetchScalarGridSpec(
            num_scalar_prefetch=0,
            grid=(padded_B // bt,),
            in_specs=in_specs,
            out_specs=out_spec,
        ),
        compiler_params=pltpu.CompilerParams(
            dimension_semantics=("parallel",),
            vmem_limit_bytes=vmem_limit_bytes,
        ),
    )


def fcn_autoencoder_forward(x, params, *, batch_tile=None,
                            vmem_limit_bytes=None, out_dtype=jnp.bfloat16):
    """x: [B, 3072] (f32 or bf16).  params: list of (W [in,out], b [1,out]).

    Returns the reconstruction in `out_dtype` (bf16 by default to halve the
    output HBM traffic; values are in [-1, 1] so bf16 keeps ~3 decimal digits,
    fine for anomaly-score MSE).
    """
    B, D = x.shape
    assert D == IN_DIM

    bt_def, vmem_def, bf16_tail = _chip_config()
    if batch_tile is None:
        batch_tile = bt_def
    if vmem_limit_bytes is None:
        vmem_limit_bytes = vmem_def

    # Effective batch tile: multiple of 8 (sublane), clamped so the grid has
    # >= 2 steps whenever B allows it (keeps both v7x TensorCores busy), then
    # pad B up to a multiple of the tile so any eval batch size works.
    bt = min(batch_tile, _round_up(max((B + 1) // 2, 1), 8))
    bt = max(8, _round_up(bt, 8))
    padded_B = _round_up(B, bt)
    x_in = jnp.pad(x, ((0, padded_B - B), (0, 0))) if padded_B != B else x

    flat = []
    for (w, b) in params:
        flat.append(w.astype(jnp.bfloat16))   # MXU weight dtype
        flat.append(b.astype(jnp.float32))    # f32 bias for accumulation path

    out = None
    last_err = None
    for single_buffer in (True, False):
        try:
            call = _build_call(bt, padded_B, flat, out_dtype, vmem_limit_bytes,
                               bf16_tail, single_buffer)
            out = call(x_in, *flat)
            break
        except Exception as e:  # fallback if Buffered(1) unsupported in this JAX
            last_err = e
    if out is None:
        raise last_err

    return out[:B] if padded_B != B else out


def init_params(key):
    """Deterministic init mimicking nn.Linear default (uniform +/-1/sqrt(fan_in))."""
    params = []
    for (fan_in, fan_out) in ALL_DIMS:
        key, kw, kb = jax.random.split(key, 3)
        bound = 1.0 / jnp.sqrt(fan_in)
        w = jax.random.uniform(kw, (fan_in, fan_out), jnp.float32, -bound, bound)
        b = jax.random.uniform(kb, (1, fan_out), jnp.float32, -bound, bound)
        params.append((w, b))
    return params


def reference_forward(x, params):
    """Plain-JAX reference with the same bf16-matmul / f32-accumulate recipe
    (f32 elementwise tail, f32 output)."""
    h = x.astype(jnp.bfloat16)
    for layer, (w, b) in enumerate(params):
        acc = jnp.dot(h, w.astype(jnp.bfloat16),
                      preferred_element_type=jnp.float32) + b.astype(jnp.float32)
        if layer < NUM_LAYERS - 1:
            if layer != 3:
                acc = jnp.maximum(acc, 0.0)
            h = acc.astype(jnp.bfloat16)
        else:
            h = jnp.tanh(acc)
    return h


if __name__ == "__main__":
    key = jax.random.PRNGKey(0)
    key, kx1, kx2 = jax.random.split(key, 3)
    params = init_params(key)

    # Small batch; deliberately not a multiple of 8 to exercise padding and
    # the >=2-grid-step clamping path.
    B_small = 12
    x_small = jax.random.normal(kx1, (B_small, IN_DIM), jnp.float32)
    out_small = jax.block_until_ready(fcn_autoencoder_forward(x_small, params))
    ref_small = reference_forward(x_small, params)
    assert out_small.shape == (B_small, IN_DIM)
    assert jnp.allclose(out_small.astype(jnp.float32), ref_small,
                        atol=2e-2, rtol=2e-2), "small-batch mismatch vs reference"

    # Larger batch exercising the big-tile streaming path (>=2 grid steps).
    B_big = 512
    x_big = jax.random.normal(kx2, (B_big, IN_DIM), jnp.float32)
    out_big = jax.block_until_ready(fcn_autoencoder_forward(x_big, params))
    ref_big = reference_forward(x_big, params)
    assert out_big.shape == (B_big, IN_DIM)
    assert jnp.allclose(out_big.astype(jnp.float32), ref_big,
                        atol=2e-2, rtol=2e-2), "large-batch mismatch vs reference"

    print("KERNEL_OK")
</pallas_src>

<mosaic_0001>
module attributes {stable_mosaic.version = 11 : i64} {
  func.func @_ae_kernel(%arg0: i32, %arg1: memref<8x3072xf32, #tpu.memory_space<vmem>>, %arg2: memref<3072x128xbf16, #tpu.memory_space<vmem>>, %arg3: memref<1x128xf32, #tpu.memory_space<vmem>>, %arg4: memref<128x64xbf16, #tpu.memory_space<vmem>>, %arg5: memref<1x64xf32, #tpu.memory_space<vmem>>, %arg6: memref<64x12xbf16, #tpu.memory_space<vmem>>, %arg7: memref<1x12xf32, #tpu.memory_space<vmem>>, %arg8: memref<12x3xbf16, #tpu.memory_space<vmem>>, %arg9: memref<1x3xf32, #tpu.memory_space<vmem>>, %arg10: memref<3x12xbf16, #tpu.memory_space<vmem>>, %arg11: memref<1x12xf32, #tpu.memory_space<vmem>>, %arg12: memref<12x64xbf16, #tpu.memory_space<vmem>>, %arg13: memref<1x64xf32, #tpu.memory_space<vmem>>, %arg14: memref<64x128xbf16, #tpu.memory_space<vmem>>, %arg15: memref<1x128xf32, #tpu.memory_space<vmem>>, %arg16: memref<128x3072xbf16, #tpu.memory_space<vmem>>, %arg17: memref<1x3072xf32, #tpu.memory_space<vmem>>, %arg18: memref<8x3072xbf16, #tpu.memory_space<vmem>>) attributes {dimension_semantics = [#tpu.dimension_semantics<parallel>], iteration_bounds = array<i64: 2>, scalar_prefetch = 0 : i64, scratch_operands = 0 : i64, tpu.core_type = #tpu.core_type<tc>, window_params = [{transform_indices = @transform_0, window_bounds = array<i64: 8, 3072>}, {pipeline_mode = #tpu.pipeline_mode<synchronous>, transform_indices = @transform_1, window_bounds = array<i64: 3072, 128>}, {pipeline_mode = #tpu.pipeline_mode<synchronous>, transform_indices = @transform_2, window_bounds = array<i64: 1, 128>}, {pipeline_mode = #tpu.pipeline_mode<synchronous>, transform_indices = @transform_3, window_bounds = array<i64: 128, 64>}, {pipeline_mode = #tpu.pipeline_mode<synchronous>, transform_indices = @transform_4, window_bounds = array<i64: 1, 64>}, {pipeline_mode = #tpu.pipeline_mode<synchronous>, transform_indices = @transform_5, window_bounds = array<i64: 64, 12>}, {pipeline_mode = #tpu.pipeline_mode<synchronous>, transform_indices = @transform_6, window_bounds = array<i64: 1, 12>}, {pipeline_mode = #tpu.pipeline_mode<synchronous>, transform_indices = @transform_7, window_bounds = array<i64: 12, 3>}, {pipeline_mode = #tpu.pipeline_mode<synchronous>, transform_indices = @transform_8, window_bounds = array<i64: 1, 3>}, {pipeline_mode = #tpu.pipeline_mode<synchronous>, transform_indices = @transform_9, window_bounds = array<i64: 3, 12>}, {pipeline_mode = #tpu.pipeline_mode<synchronous>, transform_indices = @transform_10, window_bounds = array<i64: 1, 12>}, {pipeline_mode = #tpu.pipeline_mode<synchronous>, transform_indices = @transform_11, window_bounds = array<i64: 12, 64>}, {pipeline_mode = #tpu.pipeline_mode<synchronous>, transform_indices = @transform_12, window_bounds = array<i64: 1, 64>}, {pipeline_mode = #tpu.pipeline_mode<synchronous>, transform_indices = @transform_13, window_bounds = array<i64: 64, 128>}, {pipeline_mode = #tpu.pipeline_mode<synchronous>, transform_indices = @transform_14, window_bounds = array<i64: 1, 128>}, {pipeline_mode = #tpu.pipeline_mode<synchronous>, transform_indices = @transform_15, window_bounds = array<i64: 128, 3072>}, {pipeline_mode = #tpu.pipeline_mode<synchronous>, transform_indices = @transform_16, window_bounds = array<i64: 1, 3072>}, {transform_indices = @transform_17, window_bounds = array<i64: 8, 3072>}]} {
    %c0 = arith.constant 0 : index
    %c0_0 = arith.constant 0 : index
    %0 = vector.load %arg1[%c0, %c0_0] : memref<8x3072xf32, #tpu.memory_space<vmem>>, vector<8x3072xf32>
    %1 = arith.truncf %0 : vector<8x3072xf32> to vector<8x3072xbf16>
    %c0_1 = arith.constant 0 : index
    %c0_2 = arith.constant 0 : index
    %2 = vector.load %arg2[%c0_1, %c0_2] : memref<3072x128xbf16, #tpu.memory_space<vmem>>, vector<3072x128xbf16>
    %c0_3 = arith.constant 0 : index
    %c0_4 = arith.constant 0 : index
    %3 = vector.load %arg3[%c0_3, %c0_4] : memref<1x128xf32, #tpu.memory_space<vmem>>, vector<1x128xf32>
    %cst = arith.constant dense<0.000000e+00> : vector<8x128xf32>
    %4 = tpu.matmul %1, %2, %cst {dimension_numbers = #tpu.dot_dimension_numbers<[1], [0], [0], [1], [0, 0, 1, 1], [], []>} : vector<8x3072xbf16>, vector<3072x128xbf16>, vector<8x128xf32> -> vector<8x128xf32>
    %5 = vector.broadcast %3 : vector<1x128xf32> to vector<8x128xf32>
    %6 = arith.addf %4, %5 : vector<8x128xf32>
    %cst_5 = arith.constant 0.000000e+00 : f32
    %7 = vector.broadcast %cst_5 : f32 to vector<8x128xf32>
    %8 = arith.maximumf %6, %7 : vector<8x128xf32>
    %9 = arith.truncf %8 : vector<8x128xf32> to vector<8x128xbf16>
    %c0_6 = arith.constant 0 : index
    %c0_7 = arith.constant 0 : index
    %10 = vector.load %arg4[%c0_6, %c0_7] : memref<128x64xbf16, #tpu.memory_space<vmem>>, vector<128x64xbf16>
    %c0_8 = arith.constant 0 : index
    %c0_9 = arith.constant 0 : index
    %11 = vector.load %arg5[%c0_8, %c0_9] : memref<1x64xf32, #tpu.memory_space<vmem>>, vector<1x64xf32>
    %cst_10 = arith.constant dense<0.000000e+00> : vector<8x64xf32>
    %12 = tpu.matmul %9, %10, %cst_10 {dimension_numbers = #tpu.dot_dimension_numbers<[1], [0], [0], [1], [0, 0, 1, 1], [], []>} : vector<8x128xbf16>, vector<128x64xbf16>, vector<8x64xf32> -> vector<8x64xf32>
    %13 = vector.broadcast %11 : vector<1x64xf32> to vector<8x64xf32>
    %14 = arith.addf %12, %13 : vector<8x64xf32>
    %cst_11 = arith.constant 0.000000e+00 : f32
    %15 = vector.broadcast %cst_11 : f32 to vector<8x64xf32>
    %16 = arith.maximumf %14, %15 : vector<8x64xf32>
    %17 = arith.truncf %16 : vector<8x64xf32> to vector<8x64xbf16>
    %c0_12 = arith.constant 0 : index
    %c0_13 = arith.constant 0 : index
    %18 = vector.load %arg6[%c0_12, %c0_13] : memref<64x12xbf16, #tpu.memory_space<vmem>>, vector<64x12xbf16>
    %c0_14 = arith.constant 0 : index
    %c0_15 = arith.constant 0 : index
    %19 = vector.load %arg7[%c0_14, %c0_15] : memref<1x12xf32, #tpu.memory_space<vmem>>, vector<1x12xf32>
    %cst_16 = arith.constant dense<0.000000e+00> : vector<8x12xf32>
    %20 = tpu.matmul %17, %18, %cst_16 {dimension_numbers = #tpu.dot_dimension_numbers<[1], [0], [0], [1], [0, 0, 1, 1], [], []>} : vector<8x64xbf16>, vector<64x12xbf16>, vector<8x12xf32> -> vector<8x12xf32>
    %21 = vector.broadcast %19 : vector<1x12xf32> to vector<8x12xf32>
    %22 = arith.addf %20, %21 : vector<8x12xf32>
    %cst_17 = arith.constant 0.000000e+00 : f32
    %23 = vector.broadcast %cst_17 : f32 to vector<8x12xf32>
    %24 = arith.maximumf %22, %23 : vector<8x12xf32>
    %25 = arith.truncf %24 : vector<8x12xf32> to vector<8x12xbf16>
    %c0_18 = arith.constant 0 : index
    %c0_19 = arith.constant 0 : index
    %26 = vector.load %arg8[%c0_18, %c0_19] : memref<12x3xbf16, #tpu.memory_space<vmem>>, vector<12x3xbf16>
    %c0_20 = arith.constant 0 : index
    %c0_21 = arith.constant 0 : index
    %27 = vector.load %arg9[%c0_20, %c0_21] : memref<1x3xf32, #tpu.memory_space<vmem>>, vector<1x3xf32>
    %cst_22 = arith.constant dense<0.000000e+00> : vector<8x3xf32>
    %28 = tpu.matmul %25, %26, %cst_22 {dimension_numbers = #tpu.dot_dimension_numbers<[1], [0], [0], [1], [0, 0, 1, 1], [], []>} : vector<8x12xbf16>, vector<12x3xbf16>, vector<8x3xf32> -> vector<8x3xf32>
    %29 = vector.broadcast %27 : vector<1x3xf32> to vector<8x3xf32>
    %30 = arith.addf %28, %29 : vector<8x3xf32>
    %31 = arith.truncf %30 : vector<8x3xf32> to vector<8x3xbf16>
    %c0_23 = arith.constant 0 : index
    %c0_24 = arith.constant 0 : index
    %32 = vector.load %arg10[%c0_23, %c0_24] : memref<3x12xbf16, #tpu.memory_space<vmem>>, vector<3x12xbf16>
    %c0_25 = arith.constant 0 : index
    %c0_26 = arith.constant 0 : index
    %33 = vector.load %arg11[%c0_25, %c0_26] : memref<1x12xf32, #tpu.memory_space<vmem>>, vector<1x12xf32>
    %cst_27 = arith.constant dense<0.000000e+00> : vector<8x12xf32>
    %34 = tpu.matmul %31, %32, %cst_27 {dimension_numbers = #tpu.dot_dimension_numbers<[1], [0], [0], [1], [0, 0, 1, 1], [], []>} : vector<8x3xbf16>, vector<3x12xbf16>, vector<8x12xf32> -> vector<8x12xf32>
    %35 = vector.broadcast %33 : vector<1x12xf32> to vector<8x12xf32>
    %36 = arith.addf %34, %35 : vector<8x12xf32>
    %cst_28 = arith.constant 0.000000e+00 : f32
    %37 = vector.broadcast %cst_28 : f32 to vector<8x12xf32>
    %38 = arith.maximumf %36, %37 : vector<8x12xf32>
    %39 = arith.truncf %38 : vector<8x12xf32> to vector<8x12xbf16>
    %c0_29 = arith.constant 0 : index
    %c0_30 = arith.constant 0 : index
    %40 = vector.load %arg12[%c0_29, %c0_30] : memref<12x64xbf16, #tpu.memory_space<vmem>>, vector<12x64xbf16>
    %c0_31 = arith.constant 0 : index
    %c0_32 = arith.constant 0 : index
    %41 = vector.load %arg13[%c0_31, %c0_32] : memref<1x64xf32, #tpu.memory_space<vmem>>, vector<1x64xf32>
    %cst_33 = arith.constant dense<0.000000e+00> : vector<8x64xf32>
    %42 = tpu.matmul %39, %40, %cst_33 {dimension_numbers = #tpu.dot_dimension_numbers<[1], [0], [0], [1], [0, 0, 1, 1], [], []>} : vector<8x12xbf16>, vector<12x64xbf16>, vector<8x64xf32> -> vector<8x64xf32>
    %43 = vector.broadcast %41 : vector<1x64xf32> to vector<8x64xf32>
    %44 = arith.addf %42, %43 : vector<8x64xf32>
    %cst_34 = arith.constant 0.000000e+00 : f32
    %45 = vector.broadcast %cst_34 : f32 to vector<8x64xf32>
    %46 = arith.maximumf %44, %45 : vector<8x64xf32>
    %47 = arith.truncf %46 : vector<8x64xf32> to vector<8x64xbf16>
    %c0_35 = arith.constant 0 : index
    %c0_36 = arith.constant 0 : index
    %48 = vector.load %arg14[%c0_35, %c0_36] : memref<64x128xbf16, #tpu.memory_space<vmem>>, vector<64x128xbf16>
    %c0_37 = arith.constant 0 : index
    %c0_38 = arith.constant 0 : index
    %49 = vector.load %arg15[%c0_37, %c0_38] : memref<1x128xf32, #tpu.memory_space<vmem>>, vector<1x128xf32>
    %cst_39 = arith.constant dense<0.000000e+00> : vector<8x128xf32>
    %50 = tpu.matmul %47, %48, %cst_39 {dimension_numbers = #tpu.dot_dimension_numbers<[1], [0], [0], [1], [0, 0, 1, 1], [], []>} : vector<8x64xbf16>, vector<64x128xbf16>, vector<8x128xf32> -> vector<8x128xf32>
    %51 = vector.broadcast %49 : vector<1x128xf32> to vector<8x128xf32>
    %52 = arith.addf %50, %51 : vector<8x128xf32>
    %cst_40 = arith.constant 0.000000e+00 : f32
    %53 = vector.broadcast %cst_40 : f32 to vector<8x128xf32>
    %54 = arith.maximumf %52, %53 : vector<8x128xf32>
    %55 = arith.truncf %54 : vector<8x128xf32> to vector<8x128xbf16>
    %c0_41 = arith.constant 0 : index
    %c0_42 = arith.constant 0 : index
    %56 = vector.load %arg16[%c0_41, %c0_42] : memref<128x3072xbf16, #tpu.memory_space<vmem>>, vector<128x3072xbf16>
    %c0_43 = arith.constant 0 : index
    %c0_44 = arith.constant 0 : index
    %57 = vector.load %arg17[%c0_43, %c0_44] : memref<1x3072xf32, #tpu.memory_space<vmem>>, vector<1x3072xf32>
    %cst_45 = arith.constant dense<0.000000e+00> : vector<8x3072xf32>
    %58 = tpu.matmul %55, %56, %cst_45 {dimension_numbers = #tpu.dot_dimension_numbers<[1], [0], [0], [1], [0, 0, 1, 1], [], []>} : vector<8x128xbf16>, vector<128x3072xbf16>, vector<8x3072xf32> -> vector<8x3072xf32>
    %59 = arith.truncf %58 : vector<8x3072xf32> to vector<8x3072xbf16>
    %60 = arith.truncf %57 : vector<1x3072xf32> to vector<1x3072xbf16>
    %61 = vector.broadcast %60 : vector<1x3072xbf16> to vector<8x3072xbf16>
    %62 = arith.addf %59, %61 : vector<8x3072xbf16>
    %63 = math.tanh %62 : vector<8x3072xbf16>
    %c0_46 = arith.constant 0 : index
    %c0_47 = arith.constant 0 : index
    %64 = vector.load %arg18[%c0_46, %c0_47] : memref<8x3072xbf16, #tpu.memory_space<vmem>>, vector<8x3072xbf16>
    tpu.vector_store %arg18[%c0_46, %c0_47], %63 {strides = array<i32>} : memref<8x3072xbf16, #tpu.memory_space<vmem>>, vector<8x3072xbf16>,
    return
  }
  func.func @transform_0(%arg0: i32) -> (i32, i32) {
    %c0_i32 = arith.constant 0 : i32
    %c0_i32_0 = arith.constant 0 : i32
    return %arg0, %c0_i32 : i32, i32
  }
  func.func @transform_1(%arg0: i32) -> (i32, i32) {
    %c0_i32 = arith.constant 0 : i32
    %c0_i32_0 = arith.constant 0 : i32
    %c0_i32_1 = arith.constant 0 : i32
    return %c0_i32, %c0_i32_0 : i32, i32
  }
  func.func @transform_2(%arg0: i32) -> (i32, i32) {
    %c0_i32 = arith.constant 0 : i32
    %c0_i32_0 = arith.constant 0 : i32
    %c0_i32_1 = arith.constant 0 : i32
    return %c0_i32, %c0_i32_0 : i32, i32
  }
  func.func @transform_3(%arg0: i32) -> (i32, i32) {
    %c0_i32 = arith.constant 0 : i32
    %c0_i32_0 = arith.constant 0 : i32
    %c0_i32_1 = arith.constant 0 : i32
    return %c0_i32, %c0_i32_0 : i32, i32
  }
  func.func @transform_4(%arg0: i32) -> (i32, i32) {
    %c0_i32 = arith.constant 0 : i32
    %c0_i32_0 = arith.constant 0 : i32
    %c0_i32_1 = arith.constant 0 : i32
    return %c0_i32, %c0_i32_0 : i32, i32
  }
  func.func @transform_5(%arg0: i32) -> (i32, i32) {
    %c0_i32 = arith.constant 0 : i32
    %c0_i32_0 = arith.constant 0 : i32
    %c0_i32_1 = arith.constant 0 : i32
    return %c0_i32, %c0_i32_0 : i32, i32
  }
  func.func @transform_6(%arg0: i32) -> (i32, i32) {
    %c0_i32 = arith.constant 0 : i32
    %c0_i32_0 = arith.constant 0 : i32
    %c0_i32_1 = arith.constant 0 : i32
    return %c0_i32, %c0_i32_0 : i32, i32
  }
  func.func @transform_7(%arg0: i32) -> (i32, i32) {
    %c0_i32 = arith.constant 0 : i32
    %c0_i32_0 = arith.constant 0 : i32
    %c0_i32_1 = arith.constant 0 : i32
    return %c0_i32, %c0_i32_0 : i32, i32
  }
  func.func @transform_8(%arg0: i32) -> (i32, i32) {
    %c0_i32 = arith.constant 0 : i32
    %c0_i32_0 = arith.constant 0 : i32
    %c0_i32_1 = arith.constant 0 : i32
    return %c0_i32, %c0_i32_0 : i32, i32
  }
  func.func @transform_9(%arg0: i32) -> (i32, i32) {
    %c0_i32 = arith.constant 0 : i32
    %c0_i32_0 = arith.constant 0 : i32
    %c0_i32_1 = arith.constant 0 : i32
    return %c0_i32, %c0_i32_0 : i32, i32
  }
  func.func @transform_10(%arg0: i32) -> (i32, i32) {
    %c0_i32 = arith.constant 0 : i32
    %c0_i32_0 = arith.constant 0 : i32
    %c0_i32_1 = arith.constant 0 : i32
    return %c0_i32, %c0_i32_0 : i32, i32
  }
  func.func @transform_11(%arg0: i32) -> (i32, i32) {
    %c0_i32 = arith.constant 0 : i32
    %c0_i32_0 = arith.constant 0 : i32
    %c0_i32_1 = arith.constant 0 : i32
    return %c0_i32, %c0_i32_0 : i32, i32
  }
  func.func @transform_12(%arg0: i32) -> (i32, i32) {
    %c0_i32 = arith.constant 0 : i32
    %c0_i32_0 = arith.constant 0 : i32
    %c0_i32_1 = arith.constant 0 : i32
    return %c0_i32, %c0_i32_0 : i32, i32
  }
  func.func @transform_13(%arg0: i32) -> (i32, i32) {
    %c0_i32 = arith.constant 0 : i32
    %c0_i32_0 = arith.constant 0 : i32
    %c0_i32_1 = arith.constant 0 : i32
    return %c0_i32, %c0_i32_0 : i32, i32
  }
  func.func @transform_14(%arg0: i32) -> (i32, i32) {
    %c0_i32 = arith.constant 0 : i32
    %c0_i32_0 = arith.constant 0 : i32
    %c0_i32_1 = arith.constant 0 : i32
    return %c0_i32, %c0_i32_0 : i32, i32
  }
  func.func @transform_15(%arg0: i32) -> (i32, i32) {
    %c0_i32 = arith.constant 0 : i32
    %c0_i32_0 = arith.constant 0 : i32
    %c0_i32_1 = arith.constant 0 : i32
    return %c0_i32, %c0_i32_0 : i32, i32
  }
  func.func @transform_16(%arg0: i32) -> (i32, i32) {
    %c0_i32 = arith.constant 0 : i32
    %c0_i32_0 = arith.constant 0 : i32
    %c0_i32_1 = arith.constant 0 : i32
    return %c0_i32, %c0_i32_0 : i32, i32
  }
  func.func @transform_17(%arg0: i32) -> (i32, i32) {
    %c0_i32 = arith.constant 0 : i32
    %c0_i32_0 = arith.constant 0 : i32
    return %arg0, %c0_i32 : i32, i32
  }
}

module attributes {stable_mosaic.version = 11 : i64} {
  func.func @_ae_kernel(%arg0: i32, %arg1: memref<8x3072xf32, #tpu.memory_space<vmem>>, %arg2: memref<3072x128xbf16, #tpu.memory_space<vmem>>, %arg3: memref<1x128xf32, #tpu.memory_space<vmem>>, %arg4: memref<128x64xbf16, #tpu.memory_space<vmem>>, %arg5: memref<1x64xf32, #tpu.memory_space<vmem>>, %arg6: memref<64x12xbf16, #tpu.memory_space<vmem>>, %arg7: memref<1x12xf32, #tpu.memory_space<vmem>>, %arg8: memref<12x3xbf16, #tpu.memory_space<vmem>>, %arg9: memref<1x3xf32, #tpu.memory_space<vmem>>, %arg10: memref<3x12xbf16, #tpu.memory_space<vmem>>, %arg11: memref<1x12xf32, #tpu.memory_space<vmem>>, %arg12: memref<12x64xbf16, #tpu.memory_space<vmem>>, %arg13: memref<1x64xf32, #tpu.memory_space<vmem>>, %arg14: memref<64x128xbf16, #tpu.memory_space<vmem>>, %arg15: memref<1x128xf32, #tpu.memory_space<vmem>>, %arg16: memref<128x3072xbf16, #tpu.memory_space<vmem>>, %arg17: memref<1x3072xf32, #tpu.memory_space<vmem>>, %arg18: memref<8x3072xbf16, #tpu.memory_space<vmem>>) attributes {dimension_semantics = [#tpu.dimension_semantics<parallel>], iteration_bounds = array<i64: 2>, scalar_prefetch = 0 : i64, scratch_operands = 0 : i64, tpu.core_type = #tpu.core_type<tc>, window_params = [{transform_indices = @transform_0, window_bounds = array<i64: 8, 3072>}, {pipeline_mode = #tpu.pipeline_mode<synchronous>, transform_indices = @transform_1, window_bounds = array<i64: 3072, 128>}, {pipeline_mode = #tpu.pipeline_mode<synchronous>, transform_indices = @transform_2, window_bounds = array<i64: 1, 128>}, {pipeline_mode = #tpu.pipeline_mode<synchronous>, transform_indices = @transform_3, window_bounds = array<i64: 128, 64>}, {pipeline_mode = #tpu.pipeline_mode<synchronous>, transform_indices = @transform_4, window_bounds = array<i64: 1, 64>}, {pipeline_mode = #tpu.pipeline_mode<synchronous>, transform_indices = @transform_5, window_bounds = array<i64: 64, 12>}, {pipeline_mode = #tpu.pipeline_mode<synchronous>, transform_indices = @transform_6, window_bounds = array<i64: 1, 12>}, {pipeline_mode = #tpu.pipeline_mode<synchronous>, transform_indices = @transform_7, window_bounds = array<i64: 12, 3>}, {pipeline_mode = #tpu.pipeline_mode<synchronous>, transform_indices = @transform_8, window_bounds = array<i64: 1, 3>}, {pipeline_mode = #tpu.pipeline_mode<synchronous>, transform_indices = @transform_9, window_bounds = array<i64: 3, 12>}, {pipeline_mode = #tpu.pipeline_mode<synchronous>, transform_indices = @transform_10, window_bounds = array<i64: 1, 12>}, {pipeline_mode = #tpu.pipeline_mode<synchronous>, transform_indices = @transform_11, window_bounds = array<i64: 12, 64>}, {pipeline_mode = #tpu.pipeline_mode<synchronous>, transform_indices = @transform_12, window_bounds = array<i64: 1, 64>}, {pipeline_mode = #tpu.pipeline_mode<synchronous>, transform_indices = @transform_13, window_bounds = array<i64: 64, 128>}, {pipeline_mode = #tpu.pipeline_mode<synchronous>, transform_indices = @transform_14, window_bounds = array<i64: 1, 128>}, {pipeline_mode = #tpu.pipeline_mode<synchronous>, transform_indices = @transform_15, window_bounds = array<i64: 128, 3072>}, {pipeline_mode = #tpu.pipeline_mode<synchronous>, transform_indices = @transform_16, window_bounds = array<i64: 1, 3072>}, {transform_indices = @transform_17, window_bounds = array<i64: 8, 3072>}]} {
    %c0 = arith.constant 0 : index
    %c0_0 = arith.constant 0 : index
    %0 = vector.load %arg1[%c0, %c0_0] : memref<8x3072xf32, #tpu.memory_space<vmem>>, vector<8x3072xf32>
    %1 = arith.truncf %0 : vector<8x3072xf32> to vector<8x3072xbf16>
    %c0_1 = arith.constant 0 : index
    %c0_2 = arith.constant 0 : index
    %2 = vector.load %arg2[%c0_1, %c0_2] : memref<3072x128xbf16, #tpu.memory_space<vmem>>, vector<3072x128xbf16>
    %c0_3 = arith.constant 0 : index
    %c0_4 = arith.constant 0 : index
    %3 = vector.load %arg3[%c0_3, %c0_4] : memref<1x128xf32, #tpu.memory_space<vmem>>, vector<1x128xf32>
    %cst = arith.constant dense<0.000000e+00> : vector<8x128xf32>
    %4 = tpu.matmul %1, %2, %cst {dimension_numbers = #tpu.dot_dimension_numbers<[1], [0], [0], [1], [0, 0, 1, 1], [], []>} : vector<8x3072xbf16>, vector<3072x128xbf16>, vector<8x128xf32> -> vector<8x128xf32>
    %5 = vector.broadcast %3 : vector<1x128xf32> to vector<8x128xf32>
    %6 = arith.addf %4, %5 : vector<8x128xf32>
    %cst_5 = arith.constant 0.000000e+00 : f32
    %7 = vector.broadcast %cst_5 : f32 to vector<8x128xf32>
    %8 = arith.maximumf %6, %7 : vector<8x128xf32>
    %9 = arith.truncf %8 : vector<8x128xf32> to vector<8x128xbf16>
    %c0_6 = arith.constant 0 : index
    %c0_7 = arith.constant 0 : index
    %10 = vector.load %arg4[%c0_6, %c0_7] : memref<128x64xbf16, #tpu.memory_space<vmem>>, vector<128x64xbf16>
    %c0_8 = arith.constant 0 : index
    %c0_9 = arith.constant 0 : index
    %11 = vector.load %arg5[%c0_8, %c0_9] : memref<1x64xf32, #tpu.memory_space<vmem>>, vector<1x64xf32>
    %cst_10 = arith.constant dense<0.000000e+00> : vector<8x64xf32>
    %12 = tpu.matmul %9, %10, %cst_10 {dimension_numbers = #tpu.dot_dimension_numbers<[1], [0], [0], [1], [0, 0, 1, 1], [], []>} : vector<8x128xbf16>, vector<128x64xbf16>, vector<8x64xf32> -> vector<8x64xf32>
    %13 = vector.broadcast %11 : vector<1x64xf32> to vector<8x64xf32>
    %14 = arith.addf %12, %13 : vector<8x64xf32>
    %cst_11 = arith.constant 0.000000e+00 : f32
    %15 = vector.broadcast %cst_11 : f32 to vector<8x64xf32>
    %16 = arith.maximumf %14, %15 : vector<8x64xf32>
    %17 = arith.truncf %16 : vector<8x64xf32> to vector<8x64xbf16>
    %c0_12 = arith.constant 0 : index
    %c0_13 = arith.constant 0 : index
    %18 = vector.load %arg6[%c0_12, %c0_13] : memref<64x12xbf16, #tpu.memory_space<vmem>>, vector<64x12xbf16>
    %c0_14 = arith.constant 0 : index
    %c0_15 = arith.constant 0 : index
    %19 = vector.load %arg7[%c0_14, %c0_15] : memref<1x12xf32, #tpu.memory_space<vmem>>, vector<1x12xf32>
    %cst_16 = arith.constant dense<0.000000e+00> : vector<8x12xf32>
    %20 = tpu.matmul %17, %18, %cst_16 {dimension_numbers = #tpu.dot_dimension_numbers<[1], [0], [0], [1], [0, 0, 1, 1], [], []>} : vector<8x64xbf16>, vector<64x12xbf16>, vector<8x12xf32> -> vector<8x12xf32>
    %21 = vector.broadcast %19 : vector<1x12xf32> to vector<8x12xf32>
    %22 = arith.addf %20, %21 : vector<8x12xf32>
    %cst_17 = arith.constant 0.000000e+00 : f32
    %23 = vector.broadcast %cst_17 : f32 to vector<8x12xf32>
    %24 = arith.maximumf %22, %23 : vector<8x12xf32>
    %25 = arith.truncf %24 : vector<8x12xf32> to vector<8x12xbf16>
    %c0_18 = arith.constant 0 : index
    %c0_19 = arith.constant 0 : index
    %26 = vector.load %arg8[%c0_18, %c0_19] : memref<12x3xbf16, #tpu.memory_space<vmem>>, vector<12x3xbf16>
    %c0_20 = arith.constant 0 : index
    %c0_21 = arith.constant 0 : index
    %27 = vector.load %arg9[%c0_20, %c0_21] : memref<1x3xf32, #tpu.memory_space<vmem>>, vector<1x3xf32>
    %cst_22 = arith.constant dense<0.000000e+00> : vector<8x3xf32>
    %28 = tpu.matmul %25, %26, %cst_22 {dimension_numbers = #tpu.dot_dimension_numbers<[1], [0], [0], [1], [0, 0, 1, 1], [], []>} : vector<8x12xbf16>, vector<12x3xbf16>, vector<8x3xf32> -> vector<8x3xf32>
    %29 = vector.broadcast %27 : vector<1x3xf32> to vector<8x3xf32>
    %30 = arith.addf %28, %29 : vector<8x3xf32>
    %31 = arith.truncf %30 : vector<8x3xf32> to vector<8x3xbf16>
    %c0_23 = arith.constant 0 : index
    %c0_24 = arith.constant 0 : index
    %32 = vector.load %arg10[%c0_23, %c0_24] : memref<3x12xbf16, #tpu.memory_space<vmem>>, vector<3x12xbf16>
    %c0_25 = arith.constant 0 : index
    %c0_26 = arith.constant 0 : index
    %33 = vector.load %arg11[%c0_25, %c0_26] : memref<1x12xf32, #tpu.memory_space<vmem>>, vector<1x12xf32>
    %cst_27 = arith.constant dense<0.000000e+00> : vector<8x12xf32>
    %34 = tpu.matmul %31, %32, %cst_27 {dimension_numbers = #tpu.dot_dimension_numbers<[1], [0], [0], [1], [0, 0, 1, 1], [], []>} : vector<8x3xbf16>, vector<3x12xbf16>, vector<8x12xf32> -> vector<8x12xf32>
    %35 = vector.broadcast %33 : vector<1x12xf32> to vector<8x12xf32>
    %36 = arith.addf %34, %35 : vector<8x12xf32>
    %cst_28 = arith.constant 0.000000e+00 : f32
    %37 = vector.broadcast %cst_28 : f32 to vector<8x12xf32>
    %38 = arith.maximumf %36, %37 : vector<8x12xf32>
    %39 = arith.truncf %38 : vector<8x12xf32> to vector<8x12xbf16>
    %c0_29 = arith.constant 0 : index
    %c0_30 = arith.constant 0 : index
    %40 = vector.load %arg12[%c0_29, %c0_30] : memref<12x64xbf16, #tpu.memory_space<vmem>>, vector<12x64xbf16>
    %c0_31 = arith.constant 0 : index
    %c0_32 = arith.constant 0 : index
    %41 = vector.load %arg13[%c0_31, %c0_32] : memref<1x64xf32, #tpu.memory_space<vmem>>, vector<1x64xf32>
    %cst_33 = arith.constant dense<0.000000e+00> : vector<8x64xf32>
    %42 = tpu.matmul %39, %40, %cst_33 {dimension_numbers = #tpu.dot_dimension_numbers<[1], [0], [0], [1], [0, 0, 1, 1], [], []>} : vector<8x12xbf16>, vector<12x64xbf16>, vector<8x64xf32> -> vector<8x64xf32>
    %43 = vector.broadcast %41 : vector<1x64xf32> to vector<8x64xf32>
    %44 = arith.addf %42, %43 : vector<8x64xf32>
    %cst_34 = arith.constant 0.000000e+00 : f32
    %45 = vector.broadcast %cst_34 : f32 to vector<8x64xf32>
    %46 = arith.maximumf %44, %45 : vector<8x64xf32>
    %47 = arith.truncf %46 : vector<8x64xf32> to vector<8x64xbf16>
    %c0_35 = arith.constant 0 : index
    %c0_36 = arith.constant 0 : index
    %48 = vector.load %arg14[%c0_35, %c0_36] : memref<64x128xbf16, #tpu.memory_space<vmem>>, vector<64x128xbf16>
    %c0_37 = arith.constant 0 : index
    %c0_38 = arith.constant 0 : index
    %49 = vector.load %arg15[%c0_37, %c0_38] : memref<1x128xf32, #tpu.memory_space<vmem>>, vector<1x128xf32>
    %cst_39 = arith.constant dense<0.000000e+00> : vector<8x128xf32>
    %50 = tpu.matmul %47, %48, %cst_39 {dimension_numbers = #tpu.dot_dimension_numbers<[1], [0], [0], [1], [0, 0, 1, 1], [], []>} : vector<8x64xbf16>, vector<64x128xbf16>, vector<8x128xf32> -> vector<8x128xf32>
    %51 = vector.broadcast %49 : vector<1x128xf32> to vector<8x128xf32>
    %52 = arith.addf %50, %51 : vector<8x128xf32>
    %cst_40 = arith.constant 0.000000e+00 : f32
    %53 = vector.broadcast %cst_40 : f32 to vector<8x128xf32>
    %54 = arith.maximumf %52, %53 : vector<8x128xf32>
    %55 = arith.truncf %54 : vector<8x128xf32> to vector<8x128xbf16>
    %c0_41 = arith.constant 0 : index
    %c0_42 = arith.constant 0 : index
    %56 = vector.load %arg16[%c0_41, %c0_42] : memref<128x3072xbf16, #tpu.memory_space<vmem>>, vector<128x3072xbf16>
    %c0_43 = arith.constant 0 : index
    %c0_44 = arith.constant 0 : index
    %57 = vector.load %arg17[%c0_43, %c0_44] : memref<1x3072xf32, #tpu.memory_space<vmem>>, vector<1x3072xf32>
    %cst_45 = arith.constant dense<0.000000e+00> : vector<8x3072xf32>
    %58 = tpu.matmul %55, %56, %cst_45 {dimension_numbers = #tpu.dot_dimension_numbers<[1], [0], [0], [1], [0, 0, 1, 1], [], []>} : vector<8x128xbf16>, vector<128x3072xbf16>, vector<8x3072xf32> -> vector<8x3072xf32>
    %59 = arith.truncf %58 : vector<8x3072xf32> to vector<8x3072xbf16>
    %60 = arith.truncf %57 : vector<1x3072xf32> to vector<1x3072xbf16>
    %61 = vector.broadcast %60 : vector<1x3072xbf16> to vector<8x3072xbf16>
    %62 = arith.addf %59, %61 : vector<8x3072xbf16>
    %63 = math.tanh %62 : vector<8x3072xbf16>
    %c0_46 = arith.constant 0 : index
    %c0_47 = arith.constant 0 : index
    %64 = vector.load %arg18[%c0_46, %c0_47] : memref<8x3072xbf16, #tpu.memory_space<vmem>>, vector<8x3072xbf16>
    tpu.vector_store %arg18[%c0_46, %c0_47], %63 {strides = array<i32>} : memref<8x3072xbf16, #tpu.memory_space<vmem>>, vector<8x3072xbf16>,
    return
  }
  func.func @transform_0(%arg0: i32) -> (i32, i32) {
    %c0_i32 = arith.constant 0 : i32
    %c0_i32_0 = arith.constant 0 : i32
    return %arg0, %c0_i32 : i32, i32
  }
  func.func @transform_1(%arg0: i32) -> (i32, i32) {
    %c0_i32 = arith.constant 0 : i32
    %c0_i32_0 = arith.constant 0 : i32
    %c0_i32_1 = arith.constant 0 : i32
    return %c0_i32, %c0_i32_0 : i32, i32
  }
  func.func @transform_2(%arg0: i32) -> (i32, i32) {
    %c0_i32 = arith.constant 0 : i32
    %c0_i32_0 = arith.constant 0 : i32
    %c0_i32_1 = arith.constant 0 : i32
    return %c0_i32, %c0_i32_0 : i32, i32
  }
  func.func @transform_3(%arg0: i32) -> (i32, i32) {
    %c0_i32 = arith.constant 0 : i32
    %c0_i32_0 = arith.constant 0 : i32
    %c0_i32_1 = arith.constant 0 : i32
    return %c0_i32, %c0_i32_0 : i32, i32
  }
  func.func @transform_4(%arg0: i32) -> (i32, i32) {
    %c0_i32 = arith.constant 0 : i32
    %c0_i32_0 = arith.constant 0 : i32
    %c0_i32_1 = arith.constant 0 : i32
    return %c0_i32, %c0_i32_0 : i32, i32
  }
  func.func @transform_5(%arg0: i32) -> (i32, i32) {
    %c0_i32 = arith.constant 0 : i32
    %c0_i32_0 = arith.constant 0 : i32
    %c0_i32_1 = arith.constant 0 : i32
    return %c0_i32, %c0_i32_0 : i32, i32
  }
  func.func @transform_6(%arg0: i32) -> (i32, i32) {
    %c0_i32 = arith.constant 0 : i32
    %c0_i32_0 = arith.constant 0 : i32
    %c0_i32_1 = arith.constant 0 : i32
    return %c0_i32, %c0_i32_0 : i32, i32
  }
  func.func @transform_7(%arg0: i32) -> (i32, i32) {
    %c0_i32 = arith.constant 0 : i32
    %c0_i32_0 = arith.constant 0 : i32
    %c0_i32_1 = arith.constant 0 : i32
    return %c0_i32, %c0_i32_0 : i32, i32
  }
  func.func @transform_8(%arg0: i32) -> (i32, i32) {
    %c0_i32 = arith.constant 0 : i32
    %c0_i32_0 = arith.constant 0 : i32
    %c0_i32_1 = arith.constant 0 : i32
    return %c0_i32, %c0_i32_0 : i32, i32
  }
  func.func @transform_9(%arg0: i32) -> (i32, i32) {
    %c0_i32 = arith.constant 0 : i32
    %c0_i32_0 = arith.constant 0 : i32
    %c0_i32_1 = arith.constant 0 : i32
    return %c0_i32, %c0_i32_0 : i32, i32
  }
  func.func @transform_10(%arg0: i32) -> (i32, i32) {
    %c0_i32 = arith.constant 0 : i32
    %c0_i32_0 = arith.constant 0 : i32
    %c0_i32_1 = arith.constant 0 : i32
    return %c0_i32, %c0_i32_0 : i32, i32
  }
  func.func @transform_11(%arg0: i32) -> (i32, i32) {
    %c0_i32 = arith.constant 0 : i32
    %c0_i32_0 = arith.constant 0 : i32
    %c0_i32_1 = arith.constant 0 : i32
    return %c0_i32, %c0_i32_0 : i32, i32
  }
  func.func @transform_12(%arg0: i32) -> (i32, i32) {
    %c0_i32 = arith.constant 0 : i32
    %c0_i32_0 = arith.constant 0 : i32
    %c0_i32_1 = arith.constant 0 : i32
    return %c0_i32, %c0_i32_0 : i32, i32
  }
  func.func @transform_13(%arg0: i32) -> (i32, i32) {
    %c0_i32 = arith.constant 0 : i32
    %c0_i32_0 = arith.constant 0 : i32
    %c0_i32_1 = arith.constant 0 : i32
    return %c0_i32, %c0_i32_0 : i32, i32
  }
  func.func @transform_14(%arg0: i32) -> (i32, i32) {
    %c0_i32 = arith.constant 0 : i32
    %c0_i32_0 = arith.constant 0 : i32
    %c0_i32_1 = arith.constant 0 : i32
    return %c0_i32, %c0_i32_0 : i32, i32
  }
  func.func @transform_15(%arg0: i32) -> (i32, i32) {
    %c0_i32 = arith.constant 0 : i32
    %c0_i32_0 = arith.constant 0 : i32
    %c0_i32_1 = arith.constant 0 : i32
    return %c0_i32, %c0_i32_0 : i32, i32
  }
  func.func @transform_16(%arg0: i32) -> (i32, i32) {
    %c0_i32 = arith.constant 0 : i32
    %c0_i32_0 = arith.constant 0 : i32
    %c0_i32_1 = arith.constant 0 : i32
    return %c0_i32, %c0_i32_0 : i32, i32
  }
  func.func @transform_17(%arg0: i32) -> (i32, i32) {
    %c0_i32 = arith.constant 0 : i32
    %c0_i32_0 = arith.constant 0 : i32
    return %arg0, %c0_i32 : i32, i32
  }
}

</mosaic_0001>

<bundles_post_ra>
// kernel: tpu_custom_call.1
= control target key start
LH: loop header
LB: loop body
LE: loop exit
PB: predicated region body
PF: predicated region fallthrough
CT: control target
= control target key end

     0   :  { %s7164_s0 = inlined_call_operand.hbm [shape: f32[16,3072], index: 0, kind: input, shape index: {}]   ;;  %s7165_s1 = inlined_call_operand.hbm [shape: bf16[3072,128], index: 1, kind: input, shape index: {}]   ;;  %s7166_s2 = inlined_call_operand.vmem [shape: f32[1,128], index: 2, kind: input, shape index: {}]   ;;  %s7167_s3 = inlined_call_operand.vmem [shape: bf16[128,64], index: 3, kind: input, shape index: {}]   ;;  %s7168_s4 = inlined_call_operand.vmem [shape: f32[1,64], index: 4, kind: input, shape index: {}]   ;;  %s7169_s5 = inlined_call_operand.vmem [shape: bf16[64,12], index: 5, kind: input, shape index: {}]   ;;  %s7170_s6 = inlined_call_operand.vmem [shape: f32[1,12], index: 6, kind: input, shape index: {}]   ;;  %s7171_s7 = inlined_call_operand.vmem [shape: bf16[12,3], index: 7, kind: input, shape index: {}]   ;;  %s7172_s8 = inlined_call_operand.vmem [shape: f32[1,3], index: 8, kind: input, shape index: {}]   ;;  %s7173_s9 = inlined_call_operand.vmem [shape: bf16[3,12], index: 9, kind: input, shape index: {}]   ;;  %s7174_s10 = inlined_call_operand.vmem [shape: f32[1,12], index: 10, kind: input, shape index: {}]   ;;  %s7175_s11 = inlined_call_operand.vmem [shape: bf16[12,64], index: 11, kind: input, shape index: {}]   ;;  %s7176_s12 = inlined_call_operand.vmem [shape: f32[1,64], index: 12, kind: input, shape index: {}]   ;;  %s7177_s13 = inlined_call_operand.vmem [shape: bf16[64,128], index: 13, kind: input, shape index: {}]   ;;  %s7178_s14 = inlined_call_operand.vmem [shape: f32[1,128], index: 14, kind: input, shape index: {}]   ;;  %s7179_s15 = inlined_call_operand.hbm [shape: bf16[128,3072], index: 15, kind: input, shape index: {}]   ;;  %s7180_s16 = inlined_call_operand.vmem [shape: f32[1,3072], index: 16, kind: input, shape index: {}]   ;;  %s7181_s17 = inlined_call_operand.hbm [shape: bf16[16,3072], index: 17, kind: output, shape index: {}]  }
   0x1   :  { %7197 = sst [smem:[#allocation19_spill]] %s7164_s0 }
   0x2   :  { %7198 = sst [smem:[#allocation20_spill]] %s7165_s1 }
   0x3   :  { %7199 = sst [smem:[#allocation21_spill]] %s7178_s14 }
   0x4   :  { %7200 = sst [smem:[#allocation22_spill]] %s7179_s15 }
   0x5   :  { %7201 = sst [smem:[#allocation23_spill]] %s7180_s16 }
   0x6   :  { %7202 = sst [smem:[#allocation24_spill]] %s7181_s17 }
   0x7   :  { %22 = vsyncpa [#allocation3], 0 }
   0x8   :  { %24 = vsyncpa [#allocation3 + $0x1], 0 }
   0x9   :  { %25 = vsyncpa [#allocation6], 0 }
   0xa   :  { %26 = vsyncpa [#allocation4], 0 }
   0xb   :  { %28 = vsyncpa [#allocation4 + $0x1], 0  ;;  %s6737_s24 = smov 0   ;;  %s6739_s25 = smov 0  }
   0xc   :  { %s6741_s26 = smov 0   ;;  %s6743_s27 = smov 0  }
   0xd LB: > { %7203 = sst [smem:[#allocation12_spill]] %s6621_s24  ;;  %s6758_s28 = sadd.s32 4294967295, %s6633_s27   ;;  %s6633_s27 = sphi %s6743_s27, %s7234_s27   ;;  %s6629_s26 = sphi %s6741_s26, %s7239_s26   ;;  %s6625_s25 = sphi %s6739_s25, %s7238_s25   ;;  %s6621_s24 = sphi %s6737_s24, %s7237_s24  }
   0xe   : > { %7204 = sst [smem:[#allocation13_spill]] %s6629_s26  ;;  %s5358_s29 = sadd.s32 4294967294, %s6633_s27  }
   0xf   : > { %7205 = sst [smem:[#allocation14_spill]] %s6633_s27  ;;  %p54_p0 = scmp.ne.s32.totalorder %s6625_s25, %s6621_s24 }
  0x10   : > { %p7186_p1 = scmp.eq.s32.totalorder %s6758_s28, 0  ;;  %p420_p3 = scmp.eq.s32.totalorder %s5358_s29, 1 }
  0x11   : > { %p5359_p5 = scmp.ge.s32.totalorder %s6633_s27, 1  ;;  %p427_p7 = scmp.lt.s32.totalorder %s6633_s27, 3 }
  0x12   : > { %p6767_p4 = por %p7186_p1, %p54_p0  ;;  %p6772_p6 = por %p420_p3, %p54_p0 }
  0x13   : > { %p6777_p8 = pnand %p5359_p5, %p427_p7  ;;  %s6635_s19 = smov [#allocation5]  }
  0x14   : > { %s7206_s0 = scalar_select %p6767_p4, 1, 0 }
  0x15   : > { %s7207_s30 = scalar_select %p6772_p6, 1, 0 }
  0x16   : > { %s7209_s18 = scalar_select %p6777_p8, 1, 0 }
  0x17   : > { %7208 = sst [smem:[#allocation15_spill]] %s7207_s30  ;;  %s439_s1 = sshll.u32 %s6635_s19, 4  ;;  %s440_s1 = int_to_ptr.vmem [resolvable:$true] %s439_s1 }
  0x18   : > { %p6164_p9 = pneg %p6777_p8  ;;  %s6636_s21 = smov [#allocation7]  }
  0x19   : > { %s491_s22 = sshll.u32 %s6636_s21, 4  ;;  %s6496_s23 = scalar_lea.vmem %s440_s1, 24576  ;;  %s492_s22 = int_to_ptr.vmem [resolvable:$true] %s491_s22 }
  0x1a   : > { %p6786_p11 = pnand %p6164_p9, %p7186_p1  ;;  %p6497_p13 = scmp.ne.s32.totalorder %s440_s1, %s6496_s23 }
  0x1b   : > { %p6504_p5 = scmp.lt.s32.totalorder %s440_s1, %s440_s1  ;;  %p6505_p7 = scmp.lt.s32.totalorder %s6496_s23, %s6496_s23 }
  0x1c   : > { %p6487_p12 = pneg %p6786_p11 }
  0x1d   : > { %p6506_p10 = por %p6505_p7, %p6504_p5 }
  0x1e   : > { %p6499_p0 = pnand %p6497_p13, %p6487_p12 }
  0x20   : > { %p6500_p3 = pneg %p6499_p0 }
  0x22   : > { %p6507_p9 = pnand %p6506_p10, %p6500_p3 }
  0x24   : > { %6510 = shalt.err (!%p6507_p9)
}
  0x25   : > { %s6637_s29 = smov 64   ;;  %s6638_s19 = smov 4  }
  0x26   : > { %s7211_s24 = sld [smem:[#allocation20_spill]]  ;;  %s6522_s17 = scalar_lea.vmem %s492_s22, 24576 }
  0x27   : > { %p6523_p1 = scmp.ne.s32.totalorder %s492_s22, %s6522_s17  ;;  %p6530_p2 = scmp.lt.s32.totalorder %s492_s22, %s492_s22 }
  0x28   : > { %p6531_p6 = scmp.lt.s32.totalorder %s6522_s17, %s6522_s17 }
  0x29   : > { %p6525_p13 = pnand %p6523_p1, %p6487_p12 }
  0x2a   : > { %p6532_p5 = por %p6531_p6, %p6530_p2 }
  0x2b   : > { %p6526_p0 = pneg %p6525_p13 }
  0x2c   : > { %6167 = dma.hbm_to_vmem [thread:$0]  (!%p6786_p11), %s7211_s24, 24576, %s440_s1, [#allocation6], %s6637_s29, %s6637_s29, %s6638_s19  }
  0x2d   : > { %p6533_p10 = pnand %p6532_p5, %p6526_p0 }
  0x2f   : > { %6536 = shalt.err (!%p6533_p10)
}
  0x30   : > { %s6639_s23 = smov 1536   ;;  %s6640_s24 = smov 96  }
  0x31   : > { %s7212_s15 = sld [smem:[#allocation22_spill]]  ;;  %s6809_s1 = sadd.s32 1, %s6633_s27  }
  0x32   : > { %7213 = sst [smem:[#allocation16_spill]] %s6809_s1  ;;  %s38_s29 = ssub.s32 %s6633_s27, %s6809_s1 }
  0x33   : > { %p39_p1 = scmp.eq.s32.totalorder %s38_s29, 0  ;;  %s41_s19 = sadd.s32 1, %s6629_s26 }
  0x34   : > { %p48_p2 = scmp.ne.s32.totalorder %s6629_s26, %s6625_s25  ;;  %p49_p6 = scmp.eq.s32.totalorder %s6633_s27, 0 }
  0x35   : > { %s6818_s21 = scalar_select %p39_p1, %s6629_s26, %s41_s19  }
  0x36   : > { %p50_p12 = por %p49_p6, %p48_p2  ;;  %p7215_p3 = scmp.eq.s32.totalorder %s6758_s28, 1 }
  0x37   : > { %6170 = dma.hbm_to_vmem [thread:$0]  (!%p6786_p11), %s7212_s15, 24576, %s492_s22, [#allocation6], %s6639_s23, %s6639_s23, %s6640_s24  }
  0x38   : > { %7214 = sst [smem:[#allocation17_spill]] %s6818_s21  ;;  %p6822_p7 = por %p7215_p3, %p48_p2 }
  0x39   : > { %p6181_p9 = scmp.lt.s32.totalorder %s6633_s27, 2  ;;  %s508_s20 = sand.u32 1, %s6629_s26  }
  0x3a   : > { %s7216_s16 = scalar_select %p6822_p7, 1, 0 }
  0x3b   : > { %s6147_s30 = smul.u32 192, %s508_s20  ;;  %p6829_p11 = pnand %p6181_p9, %p50_p12 }
  0x3c   : > { %7217 = sst [smem:[#allocation18_spill]] %s7216_s16  ;;  %s6148_s22 = smul.u32 3072, %s6633_s27 }
  0x3d   : > { %s7219_s29 = sld [smem:[#allocation19_spill]]  ;;  %s512_s15 = scalar_lea.vmem [#allocation2], %s6147_s30 }
  0x3e   : > { %s520_s21 = sshll.u32 %s512_s15, 4  ;;  %s509_s1 = scalar_lea.sflag [#allocation3], %s508_s20  ;;  %s521_s21 = int_to_ptr.vmem [resolvable:$true] %s520_s21 }
  0x3f   : > { %p6539_p0 = pneg %p6829_p11 }
  0x43   : > { %s6836_s19 = scalar_lea.hbm %s7219_s29, %s6148_s22  ;;  %s6542_s24 = scalar_lea.hbm %s7219_s29, 6144 }
  0x44   : > { %s6537_s26 = scalar_lea.hbm %s6836_s19, 3072  ;;  %p6543_p1 = scmp.lt.s32.totalorder %s6836_s19, %s7219_s29 }
  0x45   : > { %p6538_p13 = scmp.ne.s32.totalorder %s6836_s19, %s6537_s26  ;;  %p6544_p2 = scmp.lt.s32.totalorder %s6542_s24, %s6537_s26 }
  0x47   : > { %p6540_p5 = pnand %p6539_p0, %p6538_p13  ;;  %p6545_p6 = por %p6544_p2, %p6543_p1 }
  0x49   : > { %p6541_p10 = pneg %p6540_p5 }
  0x4b   : > { %p6546_p12 = pnand %p6545_p6, %p6541_p10 }
  0x4d   : > { %6549 = shalt.err (!%p6546_p12)
}
  0x4e   : > { %s6550_s15 = scalar_lea.vmem %s521_s21, 3072  ;;  %s6641_s20 = smov [#allocation2]  }
  0x4f   : > { %p6551_p3 = scmp.ne.s32.totalorder %s521_s21, %s6550_s15  ;;  %s6555_s30 = sshll.u32 %s6641_s20, 4  ;;  %s6556_s30 = int_to_ptr.vmem [resolvable:$false] %s6555_s30 }
  0x50   : > { %s6557_s14 = scalar_lea.vmem %s6556_s30, 6144  ;;  %p6558_p13 = scmp.lt.s32.totalorder %s521_s21, %s6556_s30 }
  0x51   : > { %p6553_p9 = pnand %p6551_p3, %p6539_p0  ;;  %p6559_p5 = scmp.lt.s32.totalorder %s6557_s14, %s6550_s15 }
  0x53   : > { %p6554_p7 = pneg %p6553_p9  ;;  %p6560_p4 = por %p6559_p5, %p6558_p13 }
  0x55   : > { %p6561_p8 = pnand %p6560_p4, %p6554_p7 }
  0x57   : > { %6564 = shalt.err (!%p6561_p8)
}
  0x58   : > { %6174 = dma.hbm_to_vmem [thread:$0]  (!%p6829_p11), %s6836_s19, 3072, %s521_s21, %s509_s1  }
  0x59   : > { %p7220_p10 = scmp.ne.s32.totalorder %s7209_s18, 0 }
  0x5a   : > { %s6855_s16 = sand.u32 (!%p7220_p10), 1, %s6625_s25   ;;  %p7221_p0 = scmp.ne.s32.totalorder (!%p7220_p10), %s7206_s0, 0 }
  0x5b   : > { %529 = sbr.rel (%p7220_p10) target bundleno = 2081 (0x821), region = 88  ;;  %s532_s27 = scalar_lea.sflag (!%p7220_p10), [#allocation3], %s6855_s16 }
  0x5c   : > { %s6149_s26 = smul.u32 (!%p7220_p10), 192, %s6855_s16 }
  0x5e   : > { %s6859_s24 = scalar_lea.vmem (!%p7220_p10), [#allocation2], %s6149_s26 }
  0x60   : > { %6608 = dma.done.wait (%p7221_p0), %s532_s27, 3072  }
  0x61   : > { %6610 = vsyncadd (%p7221_p0), %s532_s27, 4294964224  ;;  %p7222_p4 = scmp.eq.s32.totalorder %s6758_s28, 0 }
  0x63   : > { %6612 = dma.done.wait (%p7222_p4), [#allocation6], 49152   ;;  %p7223_p8 = pmov %p7222_p4 }
  0x64   : > { %v6227_v0 = vld [vmem:[#allocation5 + $0x78] sm:$0xff]   ;;  %v6231_v4 = vld [vmem:[#allocation5 + $0x70] sm:$0xff]   ;;  %v6235_v8 = vld [vmem:[#allocation5 + $0x68] sm:$0xff]   ;;  %vm6643_vm0 = vmmov 0   ;;  %vm2884_vm1 = vcmask 1045504   ;;  %vm2820_vm2 = vcmask 523264  }
  0x65   : > { %6614 = vsyncadd (%p7223_p8), [#allocation6], 4294918144  ;;  %v6228_v1 = vld [vmem:[#allocation5 + $0xf8] sm:$0xff]   ;;  %5796 = vmatprep.subr.bf16.mxu0 %v6227_v0  ;;  %v6232_v5 = vld [vmem:[#allocation5 + $0xf0] sm:$0xff]   ;;  %vm2941_vm3 = vcmask 1040384   ;;  %vm2942_vm4 = vcmask 1041408  }
  0x66   : > { %v6229_v2 = vld [vmem:[#allocation5 + $0x38] sm:$0xff]   ;;  %5818 = vmatprep.subr.bf16.mxu1 %v6228_v1  ;;  %v6233_v6 = vld [vmem:[#allocation5 + $0x30] sm:$0xff]   ;;  %v6236_v9 = vld [vmem:[#allocation5 + $0xe8] sm:$0xff]   ;;  %vm2880_vm5 = vcmask 97280   ;;  %vm2937_vm6 = vcmask 23552   ;;  %s7224_s17 = sld [smem:[#allocation21_spill]] }
  0x67   : > { %v6230_v3 = vld [vmem:[#allocation5 + $0xb8] sm:$0xff]   ;;  %5797 = vmatpush3.bf16.msra.mxu0 %v6229_v2  ;;  %v6234_v7 = vld [vmem:[#allocation5 + $0xb0] sm:$0xff]   ;;  %v6237_v10 = vld [vmem:[#allocation5 + $0x28] sm:$0xff]   ;;  %s7225_s20 = sld [smem:[#allocation23_spill]]  ;;  %s6150_s30 = smul.u32 96, %s6855_s16 }
  0x68   : > { %5819 = vmatpush3.bf16.msra.mxu1 %v6230_v3  ;;  %5798 = vmatprep.subr.bf16.mxu0 %v6231_v4  ;;  %v6238_v11 = vld [vmem:[#allocation5 + $0xa8] sm:$0xff]   ;;  %v6239_v12 = vld [vmem:[#allocation5 + $0x60] sm:$0xff]   ;;  %v6243_v16 = vld [vmem:[#allocation5 + $0x58] sm:$0xff]   ;;  %s7226_s18 = sld [smem:[#allocation18_spill]]  ;;  %s6151_s1 = smul.u32 1536, %s6758_s28 }
  0x69   : > { %5820 = vmatprep.subr.bf16.mxu1 %v6232_v5  ;;  %v6240_v13 = vld [vmem:[#allocation5 + $0xe0] sm:$0xff]   ;;  %v6244_v17 = vld [vmem:[#allocation5 + $0xd8] sm:$0xff]   ;;  %v6247_v20 = vld [vmem:[#allocation5 + $0x50] sm:$0xff]   ;;  %s7066_s26 = scalar_lea.vmem [#allocation8], %s6150_s30  ;;  %s5255_s15 = scalar_lea.sflag [#allocation4], %s6855_s16 }
  0x6a   : > { %v6241_v14 = vld [vmem:[#allocation5 + $0x20] sm:$0xff]   ;;  %v6245_v18 = vld [vmem:[#allocation5 + $0x18] sm:$0xff]   ;;  %v6248_v21 = vld [vmem:[#allocation5 + $0xd0] sm:$0xff]   ;;  %s5269_s21 = sshll.u32 %s7066_s26, 4  ;;  %s6646_s28 = smov [#allocation8]   ;;  %s5270_s21 = int_to_ptr.vmem [resolvable:$true] %s5269_s21 }
  0x6b   : > { %5799 = vmatpush3.bf16.msra.mxu0 %v6233_v6  ;;  %v6242_v15 = vld [vmem:[#allocation5 + $0xa0] sm:$0xff]   ;;  %v6246_v19 = vld [vmem:[#allocation5 + $0x98] sm:$0xff]   ;;  %v6249_v22 = vld [vmem:[#allocation5 + $0x10] sm:$0xff]   ;;  %s6565_s30 = scalar_lea.vmem %s5270_s21, 1536  ;;  %s6569_s27 = sshll.u32 %s6646_s28, 4  ;;  %s6570_s27 = int_to_ptr.vmem [resolvable:$false] %s6569_s27 }
  0x6c   : > { %5821 = vmatpush3.bf16.msra.mxu1 %v6234_v7  ;;  %5800 = vmatprep.subr.bf16.mxu0 %v6235_v8  ;;  %v6250_v23 = vld [vmem:[#allocation5 + $0x90] sm:$0xff]   ;;  %v6251_v24 = vld [vmem:[#allocation5 + $0x48] sm:$0xff]   ;;  %v6255_v28 = vld [vmem:[#allocation5 + $0x40] sm:$0xff]   ;;  %p6566_p7 = scmp.ne.s32.totalorder %s5270_s21, %s6565_s30  ;;  %p6572_p6 = scmp.lt.s32.totalorder %s5270_s21, %s6570_s27 }
  0x6d   : > { %5822 = vmatprep.subr.bf16.mxu1 %v6236_v9  ;;  %v6252_v25 = vld [vmem:[#allocation5 + $0xc8] sm:$0xff]   ;;  %v6256_v29 = vld [vmem:[#allocation5 + $0xc0] sm:$0xff]   ;;  %v598_v33 = vld [vmem:[%s6859_s24 + $0x18] sm:$0xff] }
  0x6e   : > { %v6253_v26 = vld [vmem:[#allocation5 + $0x8] sm:$0xff]   ;;  %v6257_v30 = vld [vmem:[#allocation5] sm:$0xff]   ;;  %v622_v36 = vpack.c.bf16 %v598_v33, %v598_v33  ;;  %v597_v38 = vld [vmem:[%s6859_s24 + $0x10] sm:$0xff]  ;;  %p7228_p11 = scmp.ne.s32.totalorder %s7226_s18, 0 }
  0x6f   : > { %5801 = vmatpush3.bf16.msra.mxu0 %v6237_v10  ;;  %v6254_v27 = vld [vmem:[#allocation5 + $0x88] sm:$0xff]   ;;  %v6258_v31 = vld [vmem:[#allocation5 + $0x80] sm:$0xff]   ;;  %v621_v39 = vpack.c.bf16 %v597_v38, %v597_v38  ;;  %v6259_v40 = vld [vmem:[#allocation5 + $0x178] sm:$0xff]  }
  0x70   : > { %5823 = vmatpush3.bf16.msra.mxu1 %v6238_v11  ;;  %5802 = vmatprep.subr.bf16.mxu0 %v6239_v12  ;;  %v596_v32 = vld [vmem:[%s6859_s24 + $0x8] sm:$0xff]  ;;  %v595_v34 = vld [vmem:[%s6859_s24] sm:$0xff]  ;;  %v6260_v41 = vld [vmem:[#allocation5 + $0x1f8] sm:$0xff]   ;;  %p6567_p1 = pnand %p6566_p7, %p7228_p11 }
  0x71   : > { %5824 = vmatprep.subr.bf16.mxu1 %v6240_v13  ;;  %v620_v35 = vpack.c.bf16 %v596_v32, %v596_v32  ;;  %v619_v37 = vpack.c.bf16 %v595_v34, %v595_v34  ;;  %2258 = vmatprep.mubr.bf16.mxu1 %v622_v36  ;;  %v6261_v42 = vld [vmem:[#allocation5 + $0x138] sm:$0xff]   ;;  %v6263_v44 = vld [vmem:[#allocation5 + $0x170] sm:$0xff]   ;;  %v6267_v48 = vld [vmem:[#allocation5 + $0x168] sm:$0xff]  }
  0x72   : > { %v6262_v43 = vld [vmem:[#allocation5 + $0x1b8] sm:$0xff]   ;;  %v6264_v45 = vld [vmem:[#allocation5 + $0x1f0] sm:$0xff]   ;;  %v6268_v49 = vld [vmem:[#allocation5 + $0x1e8] sm:$0xff]   ;;  %p6568_p2 = pneg %p6567_p1 }
  0x73   : > { %5803 = vmatpush3.bf16.msra.mxu0 %v6241_v14  ;;  %2218 = vmatprep.mubr.bf16.mxu0 %v620_v35  ;;  %v6265_v46 = vld [vmem:[#allocation5 + $0x130] sm:$0xff]   ;;  %v6269_v50 = vld [vmem:[#allocation5 + $0x128] sm:$0xff]   ;;  %v6271_v52 = vld [vmem:[#allocation5 + $0x160] sm:$0xff]  }
  0x74   : > { %5825 = vmatpush3.bf16.msra.mxu1 %v6242_v15  ;;  %5804 = vmatprep.subr.bf16.mxu0 %v6243_v16  ;;  %v6266_v47 = vld [vmem:[#allocation5 + $0x1b0] sm:$0xff]   ;;  %v6270_v51 = vld [vmem:[#allocation5 + $0x1a8] sm:$0xff]   ;;  %v6272_v53 = vld [vmem:[#allocation5 + $0x1e0] sm:$0xff]  }
  0x75   : > { %5826 = vmatprep.subr.bf16.mxu1 %v6244_v17  ;;  %v6273_v54 = vld [vmem:[#allocation5 + $0x120] sm:$0xff]   ;;  %v6275_v56 = vld [vmem:[#allocation5 + $0x158] sm:$0xff]   ;;  %v6279_v60 = vld [vmem:[#allocation5 + $0x150] sm:$0xff]  }
  0x76   : > { %v6274_v55 = vld [vmem:[#allocation5 + $0x1a0] sm:$0xff]   ;;  %v6276_v57 = vld [vmem:[#allocation5 + $0x1d8] sm:$0xff]   ;;  %v6280_v61 = vld [vmem:[#allocation5 + $0x1d0] sm:$0xff]  }
  0x77   : > { %5805 = vmatpush3.bf16.msra.mxu0 %v6245_v18  ;;  %v6277_v58 = vld [vmem:[#allocation5 + $0x118] sm:$0xff]   ;;  %v6281_v62 = vld [vmem:[#allocation5 + $0x110] sm:$0xff]   ;;  %v6283_v0 = vld [vmem:[#allocation5 + $0x148] sm:$0xff]  }
  0x78   : > { %5827 = vmatpush3.bf16.msra.mxu1 %v6246_v19  ;;  %5806 = vmatprep.subr.bf16.mxu0 %v6247_v20  ;;  %v6278_v59 = vld [vmem:[#allocation5 + $0x198] sm:$0xff]   ;;  %v6282_v63 = vld [vmem:[#allocation5 + $0x190] sm:$0xff]   ;;  %v6284_v1 = vld [vmem:[#allocation5 + $0x1c8] sm:$0xff]  }
  0x79   : > { %5828 = vmatprep.subr.bf16.mxu1 %v6248_v21  ;;  %v6285_v2 = vld [vmem:[#allocation5 + $0x108] sm:$0xff]   ;;  %v6287_v4 = vld [vmem:[#allocation5 + $0x140] sm:$0xff]   ;;  %v602_v9 = vld [vmem:[%s6859_s24 + $0x38] sm:$0xff] }
  0x7a   : > { %v6286_v3 = vld [vmem:[#allocation5 + $0x188] sm:$0xff]   ;;  %v6288_v5 = vld [vmem:[#allocation5 + $0x1c0] sm:$0xff]   ;;  %v626_v11 = vpack.c.bf16 %v602_v9, %v602_v9  ;;  %v601_v13 = vld [vmem:[%s6859_s24 + $0x30] sm:$0xff] }
  0x7b   : > { %5807 = vmatpush3.bf16.msra.mxu0 %v6249_v22  ;;  %v6289_v6 = vld [vmem:[#allocation5 + $0x100] sm:$0xff]   ;;  %v600_v8 = vld [vmem:[%s6859_s24 + $0x28] sm:$0xff]  ;;  %v625_v15 = vpack.c.bf16 %v601_v13, %v601_v13  ;;  %v6291_v16 = vld [vmem:[#allocation5 + $0x278] sm:$0xff]  }
  0x7c   : > { %5829 = vmatpush3.bf16.msra.mxu1 %v6250_v23  ;;  %5808 = vmatprep.subr.bf16.mxu0 %v6251_v24  ;;  %v6290_v7 = vld [vmem:[#allocation5 + $0x180] sm:$0xff]   ;;  %v624_v10 = vpack.c.bf16 %v600_v8, %v600_v8  ;;  %v6292_v17 = vld [vmem:[#allocation5 + $0x2f8] sm:$0xff]   ;;  %v6295_v20 = vld [vmem:[#allocation5 + $0x270] sm:$0xff]  }
  0x7d   : > { %5830 = vmatprep.subr.bf16.mxu1 %v6252_v25  ;;  %v599_v12 = vld [vmem:[%s6859_s24 + $0x20] sm:$0xff]  ;;  %v6293_v18 = vld [vmem:[#allocation5 + $0x238] sm:$0xff]   ;;  %v6296_v21 = vld [vmem:[#allocation5 + $0x2f0] sm:$0xff]  }
  0x7e   : > { %v623_v14 = vpack.c.bf16 %v599_v12, %v599_v12  ;;  %v6294_v19 = vld [vmem:[#allocation5 + $0x2b8] sm:$0xff]   ;;  %v6297_v22 = vld [vmem:[#allocation5 + $0x230] sm:$0xff]   ;;  %v6299_v24 = vld [vmem:[#allocation5 + $0x268] sm:$0xff]  }
  0x7f   : > { %5809 = vmatpush3.bf16.msra.mxu0 %v6253_v26  ;;  %v6298_v23 = vld [vmem:[#allocation5 + $0x2b0] sm:$0xff]   ;;  %v6300_v25 = vld [vmem:[#allocation5 + $0x2e8] sm:$0xff]   ;;  %v6307_v32 = vld [vmem:[#allocation5 + $0x258] sm:$0xff]  }
  0x80   : > { %5831 = vmatpush3.bf16.msra.mxu1 %v6254_v27  ;;  %5810 = vmatprep.subr.bf16.mxu0 %v6255_v28  ;;  %v6301_v26 = vld [vmem:[#allocation5 + $0x228] sm:$0xff]   ;;  %v6303_v28 = vld [vmem:[#allocation5 + $0x260] sm:$0xff]   ;;  %v6308_v33 = vld [vmem:[#allocation5 + $0x2d8] sm:$0xff]  }
  0x81   : > { %5832 = vmatprep.subr.bf16.mxu1 %v6256_v29  ;;  %v6302_v27 = vld [vmem:[#allocation5 + $0x2a8] sm:$0xff]   ;;  %v6304_v29 = vld [vmem:[#allocation5 + $0x2e0] sm:$0xff]   ;;  %v6309_v34 = vld [vmem:[#allocation5 + $0x218] sm:$0xff]  }
  0x82   : > { %v6310_v35 = vld [vmem:[#allocation5 + $0x298] sm:$0xff]   ;;  %v6311_v36 = vld [vmem:[#allocation5 + $0x250] sm:$0xff]  }
  0x83   : > { %5811 = vmatpush3.bf16.msra.mxu0 %v6257_v30  ;;  %v6305_v30 = vld [vmem:[#allocation5 + $0x220] sm:$0xff]   ;;  %v6313_v38 = vld [vmem:[#allocation5 + $0x210] sm:$0xff]   ;;  %v6339_v8 = vld [vmem:[#allocation5 + $0x358] sm:$0xff]  }
  0x84   : > { %5833 = vmatpush3.bf16.msra.mxu1 %v6258_v31  ;;  %5840 = vmatprep.subr.bf16.mxu0 %v6259_v40  ;;  %v6306_v31 = vld [vmem:[#allocation5 + $0x2a0] sm:$0xff]   ;;  %v6315_v40 = vld [vmem:[#allocation5 + $0x248] sm:$0xff]   ;;  %v6340_v9 = vld [vmem:[#allocation5 + $0x3d8] sm:$0xff]  }
  0x85   : > { %5862 = vmatprep.subr.bf16.mxu1 %v6260_v41  ;;  %v6316_v41 = vld [vmem:[#allocation5 + $0x2c8] sm:$0xff]   ;;  %v6343_v12 = vld [vmem:[#allocation5 + $0x350] sm:$0xff]  }
  0x86   : > { %2219 = vmatmul.mubr.bf16.vlgmr.msra.gmra.mxu0 %v619_v37  ;;  %v6312_v37 = vld [vmem:[#allocation5 + $0x2d0] sm:$0xff]  }
  0x87   : > { %2259 = vmatmul.mubr.bf16.vlgmr.msra.gmra.mxu1 %v621_v39  ;;  %5841 = vmatpush3.bf16.msra.mxu0 %v6261_v42  ;;  %v6314_v39 = vld [vmem:[#allocation5 + $0x290] sm:$0xff]   ;;  %v6317_v42 = vld [vmem:[#allocation5 + $0x208] sm:$0xff]  }
  0x88   : > { %5863 = vmatpush3.bf16.msra.mxu1 %v6262_v43  ;;  %5842 = vmatprep.subr.bf16.mxu0 %v6263_v44  ;;  %v6318_v43 = vld [vmem:[#allocation5 + $0x288] sm:$0xff]   ;;  %v6319_v44 = vld [vmem:[#allocation5 + $0x240] sm:$0xff]   ;;  %v6344_v13 = vld [vmem:[#allocation5 + $0x3d0] sm:$0xff]  }
  0x89   : > { %5864 = vmatprep.subr.bf16.mxu1 %v6264_v45  ;;  %2298 = vmatprep.mubr.bf16.mxu0 %v624_v10  ;;  %v6320_v45 = vld [vmem:[#allocation5 + $0x2c0] sm:$0xff]   ;;  %v6341_v10 = vld [vmem:[#allocation5 + $0x318] sm:$0xff]  }
  0x8a   : > { %2338 = vmatprep.mubr.bf16.mxu1 %v626_v11  ;;  %v6342_v11 = vld [vmem:[#allocation5 + $0x398] sm:$0xff]  }
  0x8b   : > { %5843 = vmatpush3.bf16.msra.mxu0 %v6265_v46  ;;  %v6321_v46 = vld [vmem:[#allocation5 + $0x200] sm:$0xff]  }
  0x8c   : > { %5865 = vmatpush3.bf16.msra.mxu1 %v6266_v47  ;;  %5844 = vmatprep.subr.bf16.mxu0 %v6267_v48  ;;  %v6322_v47 = vld [vmem:[#allocation5 + $0x280] sm:$0xff]   ;;  %v604_v48 = vld [vmem:[%s6859_s24 + $0x48] sm:$0xff] }
  0x8d   : > { %5866 = vmatprep.subr.bf16.mxu1 %v6268_v49  ;;  %v628_v49 = vpack.c.bf16 %v604_v48, %v604_v48  ;;  %v6371_v48 = vld [vmem:[#allocation5 + $0x458] sm:$0xff]  }
  0x8f   : > { %5845 = vmatpush3.bf16.msra.mxu0 %v6269_v50  ;;  %v606_v50 = vld [vmem:[%s6859_s24 + $0x58] sm:$0xff] }
  0x90   : > { %5867 = vmatpush3.bf16.msra.mxu1 %v6270_v51  ;;  %5846 = vmatprep.subr.bf16.mxu0 %v6271_v52  ;;  %v603_v51 = vld [vmem:[%s6859_s24 + $0x40] sm:$0xff]  ;;  %v605_v52 = vld [vmem:[%s6859_s24 + $0x50] sm:$0xff] }
  0x91   : > { %5868 = vmatprep.subr.bf16.mxu1 %v6272_v53  ;;  %v630_v53 = vpack.c.bf16 %v606_v50, %v606_v50  ;;  %v6373_v50 = vld [vmem:[#allocation5 + $0x418] sm:$0xff]  }
  0x93   : > { %5847 = vmatpush3.bf16.msra.mxu0 %v6273_v54  ;;  %v627_v54 = vpack.c.bf16 %v603_v51, %v603_v51  ;;  %v6374_v51 = vld [vmem:[#allocation5 + $0x498] sm:$0xff]  }
  0x94   : > { %5869 = vmatpush3.bf16.msra.mxu1 %v6274_v55  ;;  %5848 = vmatprep.subr.bf16.mxu0 %v6275_v56  ;;  %v629_v55 = vpack.c.bf16 %v605_v52, %v605_v52  ;;  %v6323_v56 = vld [vmem:[#allocation5 + $0x378] sm:$0xff]   ;;  %v6375_v52 = vld [vmem:[#allocation5 + $0x450] sm:$0xff]  }
  0x95   : > { %5870 = vmatprep.subr.bf16.mxu1 %v6276_v57  ;;  %v6324_v57 = vld [vmem:[#allocation5 + $0x3f8] sm:$0xff]  }
  0x97   : > { %5849 = vmatpush3.bf16.msra.mxu0 %v6277_v58  ;;  %v6325_v58 = vld [vmem:[#allocation5 + $0x338] sm:$0xff]  }
  0x98   : > { %5871 = vmatpush3.bf16.msra.mxu1 %v6278_v59  ;;  %5850 = vmatprep.subr.bf16.mxu0 %v6279_v60  ;;  %v6326_v59 = vld [vmem:[#allocation5 + $0x3b8] sm:$0xff]   ;;  %v6327_v60 = vld [vmem:[#allocation5 + $0x370] sm:$0xff]  }
  0x99   : > { %5872 = vmatprep.subr.bf16.mxu1 %v6280_v61  ;;  %v6328_v61 = vld [vmem:[#allocation5 + $0x3f0] sm:$0xff]  }
  0x9b   : > { %5851 = vmatpush3.bf16.msra.mxu0 %v6281_v62  ;;  %v6329_v62 = vld [vmem:[#allocation5 + $0x330] sm:$0xff]  }
  0x9c   : > { %5873 = vmatpush3.bf16.msra.mxu1 %v6282_v63  ;;  %5852 = vmatprep.subr.bf16.mxu0 %v6283_v0  ;;  %v6330_v63 = vld [vmem:[#allocation5 + $0x3b0] sm:$0xff]   ;;  %v6331_v0 = vld [vmem:[#allocation5 + $0x368] sm:$0xff]  }
  0x9d   : > { %5874 = vmatprep.subr.bf16.mxu1 %v6284_v1  ;;  %v6332_v1 = vld [vmem:[#allocation5 + $0x3e8] sm:$0xff]  }
  0x9f   : > { %5853 = vmatpush3.bf16.msra.mxu0 %v6285_v2  ;;  %v6333_v2 = vld [vmem:[#allocation5 + $0x328] sm:$0xff]  }
  0xa0   : > { %5875 = vmatpush3.bf16.msra.mxu1 %v6286_v3  ;;  %5854 = vmatprep.subr.bf16.mxu0 %v6287_v4  ;;  %v6334_v3 = vld [vmem:[#allocation5 + $0x3a8] sm:$0xff]   ;;  %v6335_v4 = vld [vmem:[#allocation5 + $0x360] sm:$0xff]  }
  0xa1   : > { %5876 = vmatprep.subr.bf16.mxu1 %v6288_v5  ;;  %v6336_v5 = vld [vmem:[#allocation5 + $0x3e0] sm:$0xff]  }
  0xa3   : > { %5855 = vmatpush3.bf16.msra.mxu0 %v6289_v6  ;;  %v6337_v6 = vld [vmem:[#allocation5 + $0x320] sm:$0xff]  }
  0xa4   : > { %5877 = vmatpush3.bf16.msra.mxu1 %v6290_v7  ;;  %5884 = vmatprep.subr.bf16.mxu0 %v6291_v16  ;;  %v6338_v7 = vld [vmem:[#allocation5 + $0x3a0] sm:$0xff]   ;;  %v6347_v16 = vld [vmem:[#allocation5 + $0x348] sm:$0xff]  }
  0xa5   : > { %5906 = vmatprep.subr.bf16.mxu1 %v6292_v17  ;;  %v6348_v17 = vld [vmem:[#allocation5 + $0x3c8] sm:$0xff]  }
  0xa6   : > { %2299 = vmatmul.mubr.bf16.vlgmr.msra.gmra.mxu0 %v623_v14  ;;  %v6345_v14 = vld [vmem:[#allocation5 + $0x310] sm:$0xff]  }
  0xa7   : > { %2339 = vmatmul.mubr.bf16.vlgmr.msra.gmra.mxu1 %v625_v15  ;;  %5885 = vmatpush3.bf16.msra.mxu0 %v6293_v18  ;;  %v6346_v15 = vld [vmem:[#allocation5 + $0x390] sm:$0xff]   ;;  %v6349_v18 = vld [vmem:[#allocation5 + $0x308] sm:$0xff]  }
  0xa8   : > { %5907 = vmatpush3.bf16.msra.mxu1 %v6294_v19  ;;  %5886 = vmatprep.subr.bf16.mxu0 %v6295_v20  ;;  %v6350_v19 = vld [vmem:[#allocation5 + $0x388] sm:$0xff]   ;;  %v6351_v20 = vld [vmem:[#allocation5 + $0x340] sm:$0xff]  }
  0xa9   : > { %5908 = vmatprep.subr.bf16.mxu1 %v6296_v21  ;;  %2378 = vmatprep.mubr.bf16.mxu0 %v628_v49  ;;  %v6352_v21 = vld [vmem:[#allocation5 + $0x3c0] sm:$0xff]   ;;  %v6372_v49 = vld [vmem:[#allocation5 + $0x4d8] sm:$0xff]  }
  0xaa   : > { %2418 = vmatprep.mubr.bf16.mxu1 %v630_v53  ;;  %v6376_v53 = vld [vmem:[#allocation5 + $0x4d0] sm:$0xff]  }
  0xab   : > { %5887 = vmatpush3.bf16.msra.mxu0 %v6297_v22  ;;  %v6353_v22 = vld [vmem:[#allocation5 + $0x300] sm:$0xff]  }
  0xac   : > { %5909 = vmatpush3.bf16.msra.mxu1 %v6298_v23  ;;  %5888 = vmatprep.subr.bf16.mxu0 %v6299_v24  ;;  %v6354_v23 = vld [vmem:[#allocation5 + $0x380] sm:$0xff]   ;;  %v608_v24 = vld [vmem:[%s6859_s24 + $0x68] sm:$0xff] }
  0xad   : > { %5910 = vmatprep.subr.bf16.mxu1 %v6300_v25  ;;  %v610_v25 = vld [vmem:[%s6859_s24 + $0x78] sm:$0xff] }
  0xaf   : > { %5889 = vmatpush3.bf16.msra.mxu0 %v6301_v26  ;;  %v607_v26 = vld [vmem:[%s6859_s24 + $0x60] sm:$0xff] }
  0xb0   : > { %5911 = vmatpush3.bf16.msra.mxu1 %v6302_v27  ;;  %5890 = vmatprep.subr.bf16.mxu0 %v6303_v28  ;;  %v632_v27 = vpack.c.bf16 %v608_v24, %v608_v24  ;;  %v634_v28 = vpack.c.bf16 %v610_v25, %v610_v25  ;;  %v6403_v24 = vld [vmem:[#allocation5 + $0x558] sm:$0xff]  }
  0xb1   : > { %5912 = vmatprep.subr.bf16.mxu1 %v6304_v29  ;;  %v631_v29 = vpack.c.bf16 %v607_v26, %v607_v26  ;;  %v6404_v25 = vld [vmem:[#allocation5 + $0x5d8] sm:$0xff]  }
  0xb2   : > { %v6405_v26 = vld [vmem:[#allocation5 + $0x518] sm:$0xff]  }
  0xb3   : > { %5891 = vmatpush3.bf16.msra.mxu0 %v6305_v30  ;;  %v609_v30 = vld [vmem:[%s6859_s24 + $0x70] sm:$0xff] }
  0xb4   : > { %5913 = vmatpush3.bf16.msra.mxu1 %v6306_v31  ;;  %5892 = vmatprep.subr.bf16.mxu0 %v6307_v32  ;;  %v633_v31 = vpack.c.bf16 %v609_v30, %v609_v30  ;;  %v6355_v32 = vld [vmem:[#allocation5 + $0x478] sm:$0xff]   ;;  %v6409_v30 = vld [vmem:[#allocation5 + $0x510] sm:$0xff]  }
  0xb5   : > { %5914 = vmatprep.subr.bf16.mxu1 %v6308_v33  ;;  %v6356_v33 = vld [vmem:[#allocation5 + $0x4f8] sm:$0xff]  }
  0xb7   : > { %5893 = vmatpush3.bf16.msra.mxu0 %v6309_v34  ;;  %v6357_v34 = vld [vmem:[#allocation5 + $0x438] sm:$0xff]  }
  0xb8   : > { %5915 = vmatpush3.bf16.msra.mxu1 %v6310_v35  ;;  %5894 = vmatprep.subr.bf16.mxu0 %v6311_v36  ;;  %v6358_v35 = vld [vmem:[#allocation5 + $0x4b8] sm:$0xff]   ;;  %v6359_v36 = vld [vmem:[#allocation5 + $0x470] sm:$0xff]  }
  0xb9   : > { %5916 = vmatprep.subr.bf16.mxu1 %v6312_v37  ;;  %v6360_v37 = vld [vmem:[#allocation5 + $0x4f0] sm:$0xff]  }
  0xbb   : > { %5895 = vmatpush3.bf16.msra.mxu0 %v6313_v38  ;;  %v6361_v38 = vld [vmem:[#allocation5 + $0x430] sm:$0xff]  }
  0xbc   : > { %5917 = vmatpush3.bf16.msra.mxu1 %v6314_v39  ;;  %5896 = vmatprep.subr.bf16.mxu0 %v6315_v40  ;;  %v6362_v39 = vld [vmem:[#allocation5 + $0x4b0] sm:$0xff]   ;;  %v6363_v40 = vld [vmem:[#allocation5 + $0x468] sm:$0xff]  }
  0xbd   : > { %5918 = vmatprep.subr.bf16.mxu1 %v6316_v41  ;;  %v6364_v41 = vld [vmem:[#allocation5 + $0x4e8] sm:$0xff]  }
  0xbf   : > { %5897 = vmatpush3.bf16.msra.mxu0 %v6317_v42  ;;  %v6365_v42 = vld [vmem:[#allocation5 + $0x428] sm:$0xff]  }
  0xc0   : > { %5919 = vmatpush3.bf16.msra.mxu1 %v6318_v43  ;;  %5898 = vmatprep.subr.bf16.mxu0 %v6319_v44  ;;  %v6366_v43 = vld [vmem:[#allocation5 + $0x4a8] sm:$0xff]   ;;  %v6367_v44 = vld [vmem:[#allocation5 + $0x460] sm:$0xff]  }
  0xc1   : > { %5920 = vmatprep.subr.bf16.mxu1 %v6320_v45  ;;  %v6368_v45 = vld [vmem:[#allocation5 + $0x4e0] sm:$0xff]  }
  0xc3   : > { %5899 = vmatpush3.bf16.msra.mxu0 %v6321_v46  ;;  %v6369_v46 = vld [vmem:[#allocation5 + $0x420] sm:$0xff]  }
  0xc4   : > { %5921 = vmatpush3.bf16.msra.mxu1 %v6322_v47  ;;  %5928 = vmatprep.subr.bf16.mxu0 %v6323_v56  ;;  %v6370_v47 = vld [vmem:[#allocation5 + $0x4a0] sm:$0xff]   ;;  %v6379_v56 = vld [vmem:[#allocation5 + $0x448] sm:$0xff]  }
  0xc5   : > { %5950 = vmatprep.subr.bf16.mxu1 %v6324_v57  ;;  %v6380_v57 = vld [vmem:[#allocation5 + $0x4c8] sm:$0xff]  }
  0xc6   : > { %2379 = vmatmul.mubr.bf16.vlgmr.msra.gmra.mxu0 %v627_v54  ;;  %v6377_v54 = vld [vmem:[#allocation5 + $0x410] sm:$0xff]  }
  0xc7   : > { %2419 = vmatmul.mubr.bf16.vlgmr.msra.gmra.mxu1 %v629_v55  ;;  %5929 = vmatpush3.bf16.msra.mxu0 %v6325_v58  ;;  %v6378_v55 = vld [vmem:[#allocation5 + $0x490] sm:$0xff]   ;;  %v6381_v58 = vld [vmem:[#allocation5 + $0x408] sm:$0xff]  }
  0xc8   : > { %5951 = vmatpush3.bf16.msra.mxu1 %v6326_v59  ;;  %5930 = vmatprep.subr.bf16.mxu0 %v6327_v60  ;;  %v6382_v59 = vld [vmem:[#allocation5 + $0x488] sm:$0xff]   ;;  %v6383_v60 = vld [vmem:[#allocation5 + $0x440] sm:$0xff]  }
  0xc9   : > { %5952 = vmatprep.subr.bf16.mxu1 %v6328_v61  ;;  %2458 = vmatprep.mubr.bf16.mxu0 %v632_v27  ;;  %v6384_v61 = vld [vmem:[#allocation5 + $0x4c0] sm:$0xff]   ;;  %v6406_v27 = vld [vmem:[#allocation5 + $0x598] sm:$0xff]  }
  0xca   : > { %2498 = vmatprep.mubr.bf16.mxu1 %v634_v28  ;;  %v6407_v28 = vld [vmem:[#allocation5 + $0x550] sm:$0xff]  }
  0xcb   : > { %5931 = vmatpush3.bf16.msra.mxu0 %v6329_v62  ;;  %v6385_v62 = vld [vmem:[#allocation5 + $0x400] sm:$0xff]  }
  0xcc   : > { %5953 = vmatpush3.bf16.msra.mxu1 %v6330_v63  ;;  %5932 = vmatprep.subr.bf16.mxu0 %v6331_v0  ;;  %v6386_v63 = vld [vmem:[#allocation5 + $0x480] sm:$0xff]   ;;  %v612_v0 = vld [vmem:[%s6859_s24 + $0x88] sm:$0xff] }
  0xcd   : > { %5954 = vmatprep.subr.bf16.mxu1 %v6332_v1  ;;  %v614_v1 = vld [vmem:[%s6859_s24 + $0x98] sm:$0xff] }
  0xcf   : > { %5933 = vmatpush3.bf16.msra.mxu0 %v6333_v2  ;;  %v636_v2 = vpack.c.bf16 %v612_v0, %v612_v0  ;;  %v6421_v0 = vld [vmem:[%s7167_s3 + $0x28] sm:$0xff]  }
  0xd0   : > { %5955 = vmatpush3.bf16.msra.mxu1 %v6334_v3  ;;  %5934 = vmatprep.subr.bf16.mxu0 %v6335_v4  ;;  %v638_v3 = vpack.c.bf16 %v614_v1, %v614_v1  ;;  %v611_v4 = vld [vmem:[%s6859_s24 + $0x80] sm:$0xff] }
  0xd1   : > { %5956 = vmatprep.subr.bf16.mxu1 %v6336_v5  ;;  %v613_v5 = vld [vmem:[%s6859_s24 + $0x90] sm:$0xff]  ;;  %v6422_v1 = vld [vmem:[%s7167_s3 + $0x20] sm:$0xff]  }
  0xd3   : > { %5935 = vmatpush3.bf16.msra.mxu0 %v6337_v6  ;;  %v635_v6 = vpack.c.bf16 %v611_v4, %v611_v4 }
  0xd4   : > { %5957 = vmatpush3.bf16.msra.mxu1 %v6338_v7  ;;  %5936 = vmatprep.subr.bf16.mxu0 %v6339_v8  ;;  %v637_v7 = vpack.c.bf16 %v613_v5, %v613_v5  ;;  %v6387_v8 = vld [vmem:[#allocation5 + $0x578] sm:$0xff]  }
  0xd5   : > { %5958 = vmatprep.subr.bf16.mxu1 %v6340_v9  ;;  %v6388_v9 = vld [vmem:[#allocation5 + $0x5f8] sm:$0xff]  }
  0xd7   : > { %5937 = vmatpush3.bf16.msra.mxu0 %v6341_v10  ;;  %v6389_v10 = vld [vmem:[#allocation5 + $0x538] sm:$0xff]  }
  0xd8   : > { %5959 = vmatpush3.bf16.msra.mxu1 %v6342_v11  ;;  %5938 = vmatprep.subr.bf16.mxu0 %v6343_v12  ;;  %v6390_v11 = vld [vmem:[#allocation5 + $0x5b8] sm:$0xff]   ;;  %v6391_v12 = vld [vmem:[#allocation5 + $0x570] sm:$0xff]  }
  0xd9   : > { %5960 = vmatprep.subr.bf16.mxu1 %v6344_v13  ;;  %v6392_v13 = vld [vmem:[#allocation5 + $0x5f0] sm:$0xff]  }
  0xdb   : > { %5939 = vmatpush3.bf16.msra.mxu0 %v6345_v14  ;;  %v6393_v14 = vld [vmem:[#allocation5 + $0x530] sm:$0xff]  }
  0xdc   : > { %5961 = vmatpush3.bf16.msra.mxu1 %v6346_v15  ;;  %5940 = vmatprep.subr.bf16.mxu0 %v6347_v16  ;;  %v6394_v15 = vld [vmem:[#allocation5 + $0x5b0] sm:$0xff]   ;;  %v6395_v16 = vld [vmem:[#allocation5 + $0x568] sm:$0xff]  }
  0xdd   : > { %5962 = vmatprep.subr.bf16.mxu1 %v6348_v17  ;;  %v6396_v17 = vld [vmem:[#allocation5 + $0x5e8] sm:$0xff]  }
  0xdf   : > { %5941 = vmatpush3.bf16.msra.mxu0 %v6349_v18  ;;  %v6397_v18 = vld [vmem:[#allocation5 + $0x528] sm:$0xff]  }
  0xe0   : > { %5963 = vmatpush3.bf16.msra.mxu1 %v6350_v19  ;;  %5942 = vmatprep.subr.bf16.mxu0 %v6351_v20  ;;  %v6398_v19 = vld [vmem:[#allocation5 + $0x5a8] sm:$0xff]   ;;  %v6399_v20 = vld [vmem:[#allocation5 + $0x560] sm:$0xff]  }
  0xe1   : > { %5964 = vmatprep.subr.bf16.mxu1 %v6352_v21  ;;  %v6400_v21 = vld [vmem:[#allocation5 + $0x5e0] sm:$0xff]  }
  0xe3   : > { %5943 = vmatpush3.bf16.msra.mxu0 %v6353_v22  ;;  %v6401_v22 = vld [vmem:[#allocation5 + $0x520] sm:$0xff]  }
  0xe4   : > { %5965 = vmatpush3.bf16.msra.mxu1 %v6354_v23  ;;  %5972 = vmatprep.subr.bf16.mxu0 %v6355_v32  ;;  %v6402_v23 = vld [vmem:[#allocation5 + $0x5a0] sm:$0xff]   ;;  %v6411_v32 = vld [vmem:[#allocation5 + $0x548] sm:$0xff]  }
  0xe5   : > { %5994 = vmatprep.subr.bf16.mxu1 %v6356_v33  ;;  %v6412_v33 = vld [vmem:[#allocation5 + $0x5c8] sm:$0xff]  }
  0xe6   : > { %2459 = vmatmul.mubr.bf16.vlgmr.msra.gmra.mxu0 %v631_v29  ;;  %v6408_v29 = vld [vmem:[#allocation5 + $0x5d0] sm:$0xff]  }
  0xe7   : > { %2499 = vmatmul.mubr.bf16.vlgmr.msra.gmra.mxu1 %v633_v31  ;;  %5973 = vmatpush3.bf16.msra.mxu0 %v6357_v34  ;;  %v6410_v31 = vld [vmem:[#allocation5 + $0x590] sm:$0xff]   ;;  %v6413_v34 = vld [vmem:[#allocation5 + $0x508] sm:$0xff]  }
  0xe8   : > { %5995 = vmatpush3.bf16.msra.mxu1 %v6358_v35  ;;  %5974 = vmatprep.subr.bf16.mxu0 %v6359_v36  ;;  %v6414_v35 = vld [vmem:[#allocation5 + $0x588] sm:$0xff]   ;;  %v6415_v36 = vld [vmem:[#allocation5 + $0x540] sm:$0xff]  }
  0xe9   : > { %5996 = vmatprep.subr.bf16.mxu1 %v6360_v37  ;;  %2538 = vmatprep.mubr.bf16.mxu0 %v636_v2  ;;  %v6416_v37 = vld [vmem:[#allocation5 + $0x5c0] sm:$0xff]   ;;  %v6423_v2 = vld [vmem:[%s7167_s3 + $0x18] sm:$0xff]  }
  0xea   : > { %2578 = vmatprep.mubr.bf16.mxu1 %v638_v3 }
  0xeb   : > { %5975 = vmatpush3.bf16.msra.mxu0 %v6361_v38  ;;  %v6417_v38 = vld [vmem:[#allocation5 + $0x500] sm:$0xff]  }
  0xec   : > { %5997 = vmatpush3.bf16.msra.mxu1 %v6362_v39  ;;  %5976 = vmatprep.subr.bf16.mxu0 %v6363_v40  ;;  %v6418_v39 = vld [vmem:[#allocation5 + $0x580] sm:$0xff]   ;;  %v616_v40 = vld [vmem:[%s6859_s24 + $0xa8] sm:$0xff] }
  0xed   : > { %5998 = vmatprep.subr.bf16.mxu1 %v6364_v41  ;;  %v640_v41 = vpack.c.bf16 %v616_v40, %v616_v40 }
  0xef   : > { %5977 = vmatpush3.bf16.msra.mxu0 %v6365_v42  ;;  %v618_v42 = vld [vmem:[%s6859_s24 + $0xb8] sm:$0xff] }
  0xf0   : > { %5999 = vmatpush3.bf16.msra.mxu1 %v6366_v43  ;;  %5978 = vmatprep.subr.bf16.mxu0 %v6367_v44  ;;  %v615_v43 = vld [vmem:[%s6859_s24 + $0xa0] sm:$0xff]  ;;  %v617_v44 = vld [vmem:[%s6859_s24 + $0xb0] sm:$0xff]  ;;  %s6571_s24 = scalar_lea.vmem %s6570_s27, 3072 }
  0xf1   : > { %6000 = vmatprep.subr.bf16.mxu1 %v6368_v45  ;;  %v642_v45 = vpack.c.bf16 %v618_v42, %v618_v42  ;;  %p6573_p12 = scmp.lt.s32.totalorder %s6571_s24, %s6565_s30 }
  0xf3   : > { %5979 = vmatpush3.bf16.msra.mxu0 %v6369_v46  ;;  %v639_v46 = vpack.c.bf16 %v615_v43, %v615_v43  ;;  %p6574_p3 = por %p6573_p12, %p6572_p6 }
  0xf4   : > { %6001 = vmatpush3.bf16.msra.mxu1 %v6370_v47  ;;  %5980 = vmatprep.subr.bf16.mxu0 %v6371_v48  ;;  %v641_v47 = vpack.c.bf16 %v617_v44, %v617_v44 }
  0xf5   : > { %6002 = vmatprep.subr.bf16.mxu1 %v6372_v49  ;;  %p6575_p9 = pnand %p6574_p3, %p6568_p2 }
  0xf7   : > { %5981 = vmatpush3.bf16.msra.mxu0 %v6373_v50  ;;  %v5367_v50 = vld [vmem:[%s7166_s2] ss:$0 sm:$0xff] }
  0xf8   : > { %6003 = vmatpush3.bf16.msra.mxu1 %v6374_v51  ;;  %5982 = vmatprep.subr.bf16.mxu0 %v6375_v52 }
  0xf9   : > { %6004 = vmatprep.subr.bf16.mxu1 %v6376_v53 }
  0xfb   : > { %5983 = vmatpush3.bf16.msra.mxu0 %v6377_v54 }
  0xfc   : > { %6005 = vmatpush3.bf16.msra.mxu1 %v6378_v55  ;;  %5984 = vmatprep.subr.bf16.mxu0 %v6379_v56 }
  0xfd   : > { %6006 = vmatprep.subr.bf16.mxu1 %v6380_v57 }
  0xff   : > { %5985 = vmatpush3.bf16.msra.mxu0 %v6381_v58 }
 0x100   : > { %6007 = vmatpush3.bf16.msra.mxu1 %v6382_v59  ;;  %5986 = vmatprep.subr.bf16.mxu0 %v6383_v60 }
 0x101   : > { %6008 = vmatprep.subr.bf16.mxu1 %v6384_v61  ;;  %v6419_v61 = vld [vmem:[%s7167_s3 + $0x38] sm:$0xff]  }
 0x103   : > { %5987 = vmatpush3.bf16.msra.mxu0 %v6385_v62  ;;  %v6642_v62 = vmov 0.0  }
 0x104   : > { %6009 = vmatpush3.bf16.msra.mxu1 %v6386_v63  ;;  %6016 = vmatprep.subr.bf16.mxu0 %v6387_v8  ;;  %v6420_v63 = vld [vmem:[%s7167_s3 + $0x30] sm:$0xff]  }
 0x105   : > { %6038 = vmatprep.subr.bf16.mxu1 %v6388_v9 }
 0x106   : > { %2539 = vmatmul.mubr.bf16.vlgmr.msra.gmra.mxu0 %v635_v6 }
 0x107   : > { %2579 = vmatmul.mubr.bf16.vlgmr.msra.gmra.mxu1 %v637_v7  ;;  %6017 = vmatpush3.bf16.msra.mxu0 %v6389_v10 }
 0x108   : > { %6039 = vmatpush3.bf16.msra.mxu1 %v6390_v11  ;;  %6018 = vmatprep.subr.bf16.mxu0 %v6391_v12 }
 0x109   : > { %6040 = vmatprep.subr.bf16.mxu1 %v6392_v13  ;;  %2618 = vmatprep.mubr.bf16.mxu0 %v640_v41  ;;  %v6424_v13 = vld [vmem:[%s7167_s3 + $0x10] sm:$0xff]  }
 0x10a   : > { %2658 = vmatprep.mubr.bf16.mxu1 %v642_v45 }
 0x10b   : > { %6019 = vmatpush3.bf16.msra.mxu0 %v6393_v14 }
 0x10c   : > { %6041 = vmatpush3.bf16.msra.mxu1 %v6394_v15  ;;  %6020 = vmatprep.subr.bf16.mxu0 %v6395_v16  ;;  %v6425_v16 = vld [vmem:[%s7167_s3 + $0x8] sm:$0xff]  }
 0x10d   : > { %6042 = vmatprep.subr.bf16.mxu1 %v6396_v17  ;;  %v6426_v17 = vld [vmem:[%s7167_s3] sm:$0xff]  }
 0x10f   : > { %6021 = vmatpush3.bf16.msra.mxu0 %v6397_v18  ;;  %v6427_v18 = vld [vmem:[%s7169_s5 + $0x18] sm:$0xff]  }
 0x110   : > { %6043 = vmatpush3.bf16.msra.mxu1 %v6398_v19  ;;  %6022 = vmatprep.subr.bf16.mxu0 %v6399_v20  ;;  %v6428_v19 = vld [vmem:[%s7169_s5 + $0x10] sm:$0xff]  }
 0x111   : > { %6044 = vmatprep.subr.bf16.mxu1 %v6400_v21 }
 0x113   : > { %6023 = vmatpush3.bf16.msra.mxu0 %v6401_v22 }
 0x114   : > { %6045 = vmatpush3.bf16.msra.mxu1 %v6402_v23  ;;  %6024 = vmatprep.subr.bf16.mxu0 %v6403_v24 }
 0x115   : > { %6046 = vmatprep.subr.bf16.mxu1 %v6404_v25 }
 0x117   : > { %6025 = vmatpush3.bf16.msra.mxu0 %v6405_v26 }
 0x118   : > { %6047 = vmatpush3.bf16.msra.mxu1 %v6406_v27  ;;  %6026 = vmatprep.subr.bf16.mxu0 %v6407_v28 }
 0x119   : > { %6048 = vmatprep.subr.bf16.mxu1 %v6408_v29 }
 0x11b   : > { %6027 = vmatpush3.bf16.msra.mxu0 %v6409_v30 }
 0x11c   : > { %6049 = vmatpush3.bf16.msra.mxu1 %v6410_v31  ;;  %6028 = vmatprep.subr.bf16.mxu0 %v6411_v32 }
 0x11d   : > { %6050 = vmatprep.subr.bf16.mxu1 %v6412_v33 }
 0x11f   : > { %6029 = vmatpush3.bf16.msra.mxu0 %v6413_v34 }
 0x120   : > { %6051 = vmatpush3.bf16.msra.mxu1 %v6414_v35  ;;  %6030 = vmatprep.subr.bf16.mxu0 %v6415_v36 }
 0x121   : > { %6052 = vmatprep.subr.bf16.mxu1 %v6416_v37 }
 0x123   : > { %6031 = vmatpush3.bf16.msra.mxu0 %v6417_v38 }
 0x124   : > { %6053 = vmatpush3.bf16.msra.mxu1 %v6418_v39  ;;  %6085 = vmatprep.subr.bf16.mxu0 %v6642_v62 }
 0x125   : > { %6105 = vmatprep.subr.bf16.mxu1 %v6642_v62 }
 0x126   : > { %2619 = vmatmul.mubr.bf16.vlgmr.msra.gmra.mxu0 %v639_v46 }
 0x127   : > { %2659 = vmatmul.mubr.bf16.vlgmr.msra.gmra.mxu1 %v641_v47  ;;  %6086 = vmatpush3.bf16.msra.mxu0 %v6419_v61 }
 0x128   : > { %6087 = vmatprep.subr.bf16.mxu0 %v6642_v62  ;;  %6101 = vmatprep.mubr.msk.bf16.mxu0 %vm6643_vm0, %v6642_v62 }
 0x129   : > { %6113 = vmatprep.mubr.msk.bf16.mxu1 %vm6643_vm0, %v6642_v62  ;;  %6106 = vmatpush3.bf16.msra.mxu1 %v6427_v18 }
 0x12a   : > { %6107 = vmatprep.subr.bf16.mxu1 %v6642_v62 }
 0x12b   : > { %6088 = vmatpush3.bf16.msra.mxu0 %v6420_v63 }
 0x12c   : > { %6089 = vmatprep.subr.bf16.mxu0 %v6642_v62 }
 0x12d   : > { %6108 = vmatpush3.bf16.msra.mxu1 %v6428_v19  ;;  %v5569_v19 = vld [vmem:[%s7170_s6] ss:$0 sm:$0xff] }
 0x12e   : > { %6109 = vmatprep.subr.bf16.mxu1 %v6642_v62 }
 0x12f   : > { %6090 = vmatpush3.bf16.msra.mxu0 %v6421_v0 }
 0x130   : > { %6091 = vmatprep.subr.bf16.mxu0 %v6642_v62 }
 0x133   : > { %6092 = vmatpush3.bf16.msra.mxu0 %v6422_v1 }
 0x134   : > { %6093 = vmatprep.subr.bf16.mxu0 %v6642_v62 }
 0x137   : > { %6094 = vmatpush3.bf16.msra.mxu0 %v6423_v2 }
 0x138   : > { %6095 = vmatprep.subr.bf16.mxu0 %v6642_v62 }
 0x13b   : > { %6096 = vmatpush3.bf16.msra.mxu0 %v6424_v13 }
 0x13c   : > { %6097 = vmatprep.subr.bf16.mxu0 %v6642_v62 }
 0x13f   : > { %6098 = vmatpush3.bf16.msra.mxu0 %v6425_v16 }
 0x140   : > { %6099 = vmatprep.subr.bf16.mxu0 %v6642_v62 }
 0x143   : > { %6100 = vmatpush3.bf16.msra.mxu0 %v6426_v17 }
 0x144   : > { %6129 = vmatprep.subr.bf16.mxu0 %v6642_v62 }
 0x146   : > { %v5812_v48 = vpop.f32.mrf.mxu0 }
 0x147   : > { %v5834_v49 = vpop.f32.mrf.mxu1 }
 0x148   : > { %v5813_v51 = vpop.f32.mrf.mxu0 }
 0x149   : > { %v5835_v52 = vpop.f32.mrf.mxu1  ;;  %v5814_v53 = vadd.f32 %v5813_v51, %v5812_v48 }
 0x14a   : > { %v5836_v54 = vadd.f32 %v5835_v52, %v5834_v49  ;;  %v5815_v55 = vpop.f32.mrf.mxu0 }
 0x14b   : > { %v5837_v56 = vpop.f32.mrf.mxu1  ;;  %v2221_v57 = vadd.f32 %v5814_v53, %v5367_v50 }
 0x14c   : > { %v5816_v58 = vpop.f32.mrf.mxu0 }
 0x14d   : > { %v5838_v59 = vpop.f32.mrf.mxu1  ;;  %v2261_v60 = vadd.f32 %v5836_v54, %v2221_v57 }
 0x166   : > { %v5856_v3 = vpop.f32.mrf.mxu0 }
 0x167   : > { %v5878_v4 = vpop.f32.mrf.mxu1 }
 0x168   : > { %v5857_v5 = vpop.f32.mrf.mxu0 }
 0x169   : > { %v5858_v6 = vadd.f32 %v5857_v5, %v5856_v3  ;;  %v5879_v7 = vpop.f32.mrf.mxu1 }
 0x16a   : > { %v5880_v8 = vadd.f32 %v5879_v7, %v5878_v4  ;;  %v5859_v9 = vpop.f32.mrf.mxu0  ;;  %v6429_v7 = vld [vmem:[%s7169_s5 + $0x8] sm:$0xff]  }
 0x16b   : > { %v2301_v10 = vadd.f32 %v5858_v6, %v2261_v60  ;;  %v5881_v11 = vpop.f32.mrf.mxu1  ;;  %6110 = vmatpush3.bf16.msra.mxu1 %v6429_v7  ;;  %v5560_v9 = vld [vmem:[%s7168_s4] ss:$0 sm:$0xff] }
 0x16c   : > { %v5860_v12 = vpop.f32.mrf.mxu0  ;;  %6111 = vmatprep.subr.bf16.mxu1 %v6642_v62 }
 0x16d   : > { %v2341_v14 = vadd.f32 %v5880_v8, %v2301_v10  ;;  %v5882_v15 = vpop.f32.mrf.mxu1  ;;  %v6430_v8 = vld [vmem:[%s7169_s5] sm:$0xff]  }
 0x16e   : > { %v6431_v12 = vld [vmem:[%s7171_s7] sm:$0x3f]  }
 0x16f   : > { %6112 = vmatpush3.bf16.msra.mxu1 %v6430_v8  ;;  %v2886_v17 = vsel %vm2884_vm1, %v6431_v12, 0 }
 0x170   : > { %6117 = vmatprep.subr.bf16.mxu1 %v6642_v62 }
 0x186   : > { %v5900_v20 = vpop.f32.mrf.mxu0 }
 0x187   : > { %v5922_v21 = vpop.f32.mrf.mxu1 }
 0x188   : > { %v5901_v22 = vpop.f32.mrf.mxu0 }
 0x189   : > { %v5902_v23 = vadd.f32 %v5901_v22, %v5900_v20  ;;  %v5923_v24 = vpop.f32.mrf.mxu1  ;;  %v6644_v20 = vmov 65535  }
 0x18a   : > { %v5924_v25 = vadd.f32 %v5923_v24, %v5922_v21  ;;  %v5903_v26 = vpop.f32.mrf.mxu0  ;;  %v2943_v21 = vsel %vm2941_vm3, 4294967295, %v6644_v20  ;;  %v2929_v24 = vld [vmem:[%s7173_s9] sm:$0x3] }
 0x18b   : > { %v2381_v27 = vadd.f32 %v5902_v23, %v2341_v14  ;;  %v5925_v28 = vpop.f32.mrf.mxu1 }
 0x18c   : > { %v5904_v29 = vpop.f32.mrf.mxu0 }
 0x18d   : > { %v2421_v30 = vadd.f32 %v5924_v25, %v2381_v27  ;;  %v5926_v31 = vpop.f32.mrf.mxu1  ;;  %v2944_v25 = vsel %vm2942_vm4, %v2943_v21, 0  ;;  %v5580_v21 = vld [vmem:[%s7176_s12] ss:$0 sm:$0xff] }
 0x18e   : > { %v2946_v29 = vand.u32 %v2944_v25, %v2929_v24  ;;  %v3281_v25 = vld [vmem:[#allocation7 + $0x488] sm:$0xff] }
 0x1a6   : > { %v5944_v32 = vpop.f32.mrf.mxu0 }
 0x1a7   : > { %v5966_v33 = vpop.f32.mrf.mxu1 }
 0x1a8   : > { %v5945_v34 = vpop.f32.mrf.mxu0 }
 0x1a9   : > { %v5967_v35 = vpop.f32.mrf.mxu1  ;;  %v5946_v48 = vadd.f32 %v5945_v34, %v5944_v32  ;;  %v6432_v32 = vld [vmem:[%s7175_s11] sm:$0x3f]  }
 0x1aa   : > { %v5947_v36 = vpop.f32.mrf.mxu0  ;;  %v5968_v50 = vadd.f32 %v5967_v35, %v5966_v33  ;;  %v3008_v33 = vsel %vm2884_vm1, %v6432_v32, 0  ;;  %v5575_v34 = vld [vmem:[%s7172_s8] ss:$0 sm:$0xff]  ;;  %v3257_v32 = vld [vmem:[#allocation7 + $0x3c8] sm:$0xff] }
 0x1ab   : > { %v5969_v37 = vpop.f32.mrf.mxu1  ;;  %v2461_v49 = vadd.f32 %v5946_v48, %v2421_v30 }
 0x1ac   : > { %v5948_v38 = vpop.f32.mrf.mxu0 }
 0x1ad   : > { %v5970_v39 = vpop.f32.mrf.mxu1  ;;  %v2501_v52 = vadd.f32 %v5968_v50, %v2461_v49 }
 0x1c6   : > { %v5988_v40 = vpop.f32.mrf.mxu0 }
 0x1c7   : > { %v6010_v41 = vpop.f32.mrf.mxu1 }
 0x1c8   : > { %v5989_v42 = vpop.f32.mrf.mxu0 }
 0x1c9   : > { %v6011_v43 = vpop.f32.mrf.mxu1  ;;  %v5990_v51 = vadd.f32 %v5989_v42, %v5988_v40  ;;  %v6434_v42 = vld [vmem:[%s7177_s13 + $0x10] sm:$0xff]  }
 0x1ca   : > { %v5991_v44 = vpop.f32.mrf.mxu0  ;;  %v6012_v54 = vadd.f32 %v6011_v43, %v6010_v41  ;;  %v6433_v41 = vld [vmem:[%s7177_s13 + $0x18] sm:$0xff]   ;;  %v5578_v43 = vld [vmem:[%s7174_s10] ss:$0 sm:$0xff] }
 0x1cb   : > { %v6013_v45 = vpop.f32.mrf.mxu1  ;;  %v2541_v53 = vadd.f32 %v5990_v51, %v2501_v52  ;;  %v6435_v51 = vld [vmem:[%s7177_s13 + $0x8] sm:$0xff]   ;;  %v6436_v52 = vld [vmem:[%s7177_s13] sm:$0xff]  }
 0x1cc   : > { %v5992_v46 = vpop.f32.mrf.mxu0 }
 0x1cd   : > { %v6014_v47 = vpop.f32.mrf.mxu1  ;;  %v2581_v58 = vadd.f32 %v6012_v54, %v2541_v53  ;;  %v3304_v53 = vld [vmem:[#allocation7 + $0x540] sm:$0xff] }
 0x1ce   : > { %v3316_v54 = vld [vmem:[#allocation7 + $0x5a0] sm:$0xff] }
 0x1e6   : > { %v6032_v55 = vpop.f32.mrf.mxu0 }
 0x1e7   : > { %v6054_v56 = vpop.f32.mrf.mxu1 }
 0x1e8   : > { %v6033_v57 = vpop.f32.mrf.mxu0 }
 0x1e9   : > { %v6034_v59 = vadd.f32 %v6033_v57, %v6032_v55  ;;  %v6055_v60 = vpop.f32.mrf.mxu1  ;;  %v3305_v55 = vld [vmem:[#allocation7 + $0x548] sm:$0xff]  ;;  %v5758_v57 = vcombine.high %v3304_v53, %v3316_v54 }
 0x1ea   : > { %v6035_v61 = vpop.f32.mrf.mxu0  ;;  %v6056_v0 = vadd.f32 %v6055_v60, %v6054_v56  ;;  %v5757_v56 = vcombine.low %v3304_v53, %v3316_v54  ;;  %v3292_v60 = vld [vmem:[#allocation7 + $0x4e0] sm:$0xff] }
 0x1eb   : > { %v2621_v63 = vadd.f32 %v6034_v59, %v2581_v58  ;;  %v6057_v1 = vpop.f32.mrf.mxu1  ;;  %v3317_v58 = vld [vmem:[#allocation7 + $0x5a8] sm:$0xff]  ;;  %v3280_v59 = vld [vmem:[#allocation7 + $0x480] sm:$0xff] }
 0x1ec   : > { %v6036_v2 = vpop.f32.mrf.mxu0  ;;  %v5759_v61 = vcombine.low %v3305_v55, %v3317_v58  ;;  %v3256_v1 = vld [vmem:[#allocation7 + $0x3c0] sm:$0xff] }
 0x1ed   : > { %v2661_v3 = vadd.f32 %v6056_v0, %v2621_v63  ;;  %v6058_v4 = vpop.f32.mrf.mxu1  ;;  %v5760_v63 = vcombine.high %v3305_v55, %v3317_v58  ;;  %v5734_v0 = vcombine.high %v3280_v59, %v3292_v60  ;;  %v3268_v2 = vld [vmem:[#allocation7 + $0x420] sm:$0xff]  ;;  %v3137_v55 = vld [vmem:[#allocation7 + $0x8] sm:$0xff] }
 0x1ee   : > { %v5709_v4 = vcombine.low %v3256_v1, %v3268_v2  ;;  %v3136_v53 = vld [vmem:[#allocation7] sm:$0xff] }
 0x1ef   : > { %v2666_v5 = vmax.f32 %v2661_v3, 0.0  ;;  %v5710_v3 = vcombine.high %v3256_v1, %v3268_v2  ;;  %v3148_v54 = vld [vmem:[#allocation7 + $0x60] sm:$0xff]  ;;  %v3319_v1 = vld [vmem:[#allocation7 + $0x5b8] sm:$0xff] }
 0x1f0   : > { %v5589_v58 = vcombine.low %v3136_v53, %v3148_v54 }
 0x1f1   : > { %v2667_v6 = vpack.c.bf16 %v2666_v5, %v2666_v5  ;;  %v3232_v5 = vld [vmem:[#allocation7 + $0x300] sm:$0xff] }
 0x1f3   : > { %6102 = vmatmul.mubr.bf16.vlgmr.msra.gmra.mxu0 %v2667_v6  ;;  %v3244_v6 = vld [vmem:[#allocation7 + $0x360] sm:$0xff] }
 0x1f4   : > { %6131 = vmatprep.mubr.msk.bf16.mxu0 %vm6643_vm0, %v6642_v62  ;;  %6130 = vmatpush3.bf16.msra.mxu0 %v3008_v33  ;;  %v5686_v7 = vcombine.high %v3232_v5, %v3244_v6  ;;  %v5685_v8 = vcombine.low %v3232_v5, %v3244_v6  ;;  %v3269_v33 = vld [vmem:[#allocation7 + $0x428] sm:$0xff]  ;;  %v6645_v5 = vmov 0   ;;  %v5583_v6 = vld [vmem:[%s7224_s17] ss:$0 sm:$0xff]  ;;  %s7227_s17 = sld [smem:[#allocation24_spill]] }
 0x1f5   : > { %4291 = vmatprep.subr.bf16.mxu0 %v5758_v57  ;;  %v3149_v57 = vld [vmem:[#allocation7 + $0x68] sm:$0xff] }
 0x1fa   : > { %s7125_s22 = scalar_lea.hbm %s7227_s17, %s6151_s1 }
 0x2b3   : > { %v2773_v10 = vpop.f32.mrf.mxu0 }
 0x2b4   : > { %v2774_v11 = vadd.f32 %v5560_v9, %v2773_v10  ;;  %v3208_v9 = vld [vmem:[#allocation7 + $0x240] sm:$0xff] }
 0x2b5   : > { %v6103_v13 = vpop.f32.mrf.mxu0  ;;  %v3220_v10 = vld [vmem:[#allocation7 + $0x2a0] sm:$0xff] }
 0x2b6   : > { %v2779_v14 = vmax.f32 %v2774_v11, 0.0  ;;  %v5662_v11 = vcombine.high %v3208_v9, %v3220_v10  ;;  %v5661_v12 = vcombine.low %v3208_v9, %v3220_v10  ;;  %v3184_v13 = vld [vmem:[#allocation7 + $0x180] sm:$0xff]  ;;  %v3282_v9 = vld [vmem:[#allocation7 + $0x490] sm:$0xff] }
 0x2b7   : > { %v2776_v15 = vpop.f32.mrf.mxu0 }
 0x2b8   : > { %v2780_v16 = vpack.c.bf16 %v2779_v14, %v2779_v14  ;;  %v3196_v14 = vld [vmem:[#allocation7 + $0x1e0] sm:$0xff] }
 0x2b9   : > { %v6104_v18 = vpop.f32.mrf.mxu0  ;;  %v5638_v15 = vcombine.high %v3184_v13, %v3196_v14 }
 0x2ba   : > { %6114 = vmatmul.mubr.msk.bf16.vlgmr.msra.gmra.mxu1 %vm2820_vm2, %v2780_v16  ;;  %v5637_v16 = vcombine.low %v3184_v13, %v3196_v14  ;;  %v3172_v18 = vld [vmem:[#allocation7 + $0x120] sm:$0xff]  ;;  %v3295_v13 = vld [vmem:[#allocation7 + $0x4f8] sm:$0xff] }
 0x2bb   : > { %6118 = vmatpush3.bf16.msra.mxu1 %v2886_v17  ;;  %6119 = vmatprep.mubr.msk.bf16.mxu1 %vm6643_vm0, %v6642_v62  ;;  %v3160_v17 = vld [vmem:[#allocation7 + $0xc0] sm:$0xff] }
 0x2bc   : > { %6123 = vmatprep.subr.bf16.mxu1 %v6642_v62  ;;  %v5613_v20 = vcombine.low %v3160_v17, %v3172_v18 }
 0x37a   : > { %v2858_v22 = vpop.f32.mrf.mxu1 }
 0x37b   : > { %v2859_v23 = vadd.f32 %v5569_v19, %v2858_v22  ;;  %v5614_v19 = vcombine.high %v3160_v17, %v3172_v18 }
 0x37c   : > { %v6115_v26 = vpop.f32.mrf.mxu1 }
 0x37d   : > { %v2864_v27 = vmax.f32 %v2859_v23, 0.0  ;;  %v3293_v26 = vld [vmem:[#allocation7 + $0x4e8] sm:$0xff] }
 0x37e   : > { %v2861_v28 = vpop.f32.mrf.mxu1 }
 0x37f   : > { %v2865_v30 = vpack.c.bf16 %v2864_v27, %v2864_v27 }
 0x380   : > { %v6116_v31 = vpop.f32.mrf.mxu1 }
 0x381   : > { %6120 = vmatmul.mubr.msk.bf16.vlgmr.msra.gmra.mxu1 %vm2880_vm5, %v2865_v30  ;;  %v5736_v30 = vcombine.high %v3281_v25, %v3293_v26 }
 0x382   : > { %6124 = vmatpush3.bf16.msra.mxu1 %v2946_v29  ;;  %6125 = vmatprep.mubr.msk.bf16.mxu1 %vm6643_vm0, %v6642_v62 }
 0x383   : > { %6135 = vmatprep.subr.bf16.mxu1 %v6642_v62 }
 0x441   : > { %v2922_v35 = vpop.f32.mrf.mxu1 }
 0x442   : > { %v2923_v36 = vadd.f32 %v5575_v34, %v2922_v35  ;;  %v5735_v34 = vcombine.low %v3281_v25, %v3293_v26  ;;  %v5712_v35 = vcombine.high %v3257_v32, %v3269_v33 }
 0x443   : > { %v6121_v37 = vpop.f32.mrf.mxu1 }
 0x444   : > { %v2928_v38 = vpack.c.bf16 %v2923_v36, %v2923_v36  ;;  %v3233_v36 = vld [vmem:[#allocation7 + $0x308] sm:$0xff] }
 0x445   : > { %v2925_v39 = vpop.f32.mrf.mxu1  ;;  %v3245_v37 = vld [vmem:[#allocation7 + $0x368] sm:$0xff] }
 0x446   : > { %6126 = vmatmul.mubr.msk.bf16.vlgmr.msra.gmra.mxu1 %vm2937_vm6, %v2928_v38  ;;  %v5711_v38 = vcombine.low %v3257_v32, %v3269_v33  ;;  %v5688_v39 = vcombine.high %v3233_v36, %v3245_v37 }
 0x447   : > { %v6122_v40 = vpop.f32.mrf.mxu1  ;;  %6143 = vmatprep.mubr.msk.bf16.mxu1 %vm6643_vm0, %v6642_v62  ;;  %6136 = vmatpush3.bf16.msra.mxu1 %v6433_v41  ;;  %v3221_v41 = vld [vmem:[#allocation7 + $0x2a8] sm:$0xff] }
 0x448   : > { %6137 = vmatprep.subr.bf16.mxu1 %v6642_v62  ;;  %v3209_v40 = vld [vmem:[#allocation7 + $0x248] sm:$0xff] }
 0x44b   : > { %6138 = vmatpush3.bf16.msra.mxu1 %v6434_v42  ;;  %v5687_v42 = vcombine.low %v3233_v36, %v3245_v37  ;;  %v3210_v36 = vld [vmem:[#allocation7 + $0x250] sm:$0xff] }
 0x44c   : > { %6139 = vmatprep.subr.bf16.mxu1 %v6642_v62  ;;  %v3222_v37 = vld [vmem:[#allocation7 + $0x2b0] sm:$0xff] }
 0x44f   : > { %6140 = vmatpush3.bf16.msra.mxu1 %v6435_v51 }
 0x450   : > { %6141 = vmatprep.subr.bf16.mxu1 %v6642_v62  ;;  %v5733_v62 = vcombine.low %v3280_v59, %v3292_v60  ;;  %v5591_v59 = vcombine.low %v3137_v55, %v3149_v57  ;;  %v5592_v60 = vcombine.high %v3137_v55, %v3149_v57  ;;  %v3175_v55 = vld [vmem:[#allocation7 + $0x138] sm:$0xff] }
 0x453   : > { %6142 = vmatpush3.bf16.msra.mxu1 %v6436_v52 }
 0x454   : > { %4332 = vmatprep.subr.bf16.mxu1 %v5760_v63  ;;  %v3318_v63 = vld [vmem:[#allocation7 + $0x5b0] sm:$0xff] }
 0x506   : > { %v2982_v44 = vpop.f32.mrf.mxu1 }
 0x507   : > { %v2983_v45 = vadd.f32 %v5578_v43, %v2982_v44  ;;  %v5664_v43 = vcombine.high %v3209_v40, %v3221_v41  ;;  %v3185_v44 = vld [vmem:[#allocation7 + $0x188] sm:$0xff] }
 0x508   : > { %v6127_v46 = vpop.f32.mrf.mxu1 }
 0x509   : > { %v2988_v47 = vmax.f32 %v2983_v45, 0.0  ;;  %v3197_v45 = vld [vmem:[#allocation7 + $0x1e8] sm:$0xff]  ;;  %v5663_v46 = vcombine.low %v3209_v40, %v3221_v41 }
 0x50a   : > { %v2985_v48 = vpop.f32.mrf.mxu1 }
 0x50b   : > { %v2989_v49 = vpack.c.bf16 %v2988_v47, %v2988_v47  ;;  %v5640_v47 = vcombine.high %v3185_v44, %v3197_v45  ;;  %v3161_v48 = vld [vmem:[#allocation7 + $0xc8] sm:$0xff] }
 0x50c   : > { %v6128_v50 = vpop.f32.mrf.mxu1 }
 0x50d   : > { %6132 = vmatmul.mubr.msk.bf16.vlgmr.msra.gmra.mxu0 %vm2880_vm5, %v2989_v49  ;;  %v3173_v49 = vld [vmem:[#allocation7 + $0x128] sm:$0xff]  ;;  %v5639_v50 = vcombine.low %v3185_v44, %v3197_v45  ;;  %v3186_v44 = vld [vmem:[#allocation7 + $0x190] sm:$0xff] }
 0x50e   : > { %4292 = vmatpush1.bf16.msra.mxu0 %v5757_v56  ;;  %v5616_v51 = vcombine.high %v3161_v48, %v3173_v49  ;;  %v5615_v52 = vcombine.low %v3161_v48, %v3173_v49  ;;  %v5590_v56 = vcombine.high %v3136_v53, %v3148_v54  ;;  %4323 = vmatprep.mubr.bf16.mxu0 %v6645_v5  ;;  %v3198_v45 = vld [vmem:[#allocation7 + $0x1f0] sm:$0xff]  ;;  %v3163_v54 = vld [vmem:[#allocation7 + $0xd8] sm:$0xff] }
 0x50f   : > { %4293 = vmatprep.subr.bf16.mxu0 %v5734_v0  ;;  %v3307_v0 = vld [vmem:[#allocation7 + $0x558] sm:$0xff]  ;;  %v5665_v48 = vcombine.low %v3210_v36, %v3222_v37  ;;  %v3174_v53 = vld [vmem:[#allocation7 + $0x130] sm:$0xff] }
 0x512   : > { %4294 = vmatpush1.bf16.msra.mxu0 %v5733_v62 }
 0x513   : > { %4295 = vmatprep.subr.bf16.mxu0 %v5710_v3  ;;  %v5763_v3 = vcombine.low %v3307_v0, %v3319_v1 }
 0x516   : > { %4296 = vmatpush1.bf16.msra.mxu0 %v5709_v4  ;;  %v5764_v4 = vcombine.high %v3307_v0, %v3319_v1  ;;  %v3151_v0 = vld [vmem:[#allocation7 + $0x78] sm:$0xff]  ;;  %v5619_v1 = vcombine.low %v3163_v54, %v3175_v55 }
 0x517   : > { %4297 = vmatprep.subr.bf16.mxu0 %v5686_v7 }
 0x51a   : > { %4298 = vmatpush1.bf16.msra.mxu0 %v5685_v8 }
 0x51b   : > { %4299 = vmatprep.subr.bf16.mxu0 %v5662_v11  ;;  %v3294_v11 = vld [vmem:[#allocation7 + $0x4f0] sm:$0xff] }
 0x51c   : > { %v5738_v17 = vcombine.high %v3282_v9, %v3294_v11 }
 0x51e   : > { %4300 = vmatpush1.bf16.msra.mxu0 %v5661_v12  ;;  %v3283_v12 = vld [vmem:[#allocation7 + $0x498] sm:$0xff] }
 0x51f   : > { %4301 = vmatprep.subr.bf16.mxu0 %v5638_v15  ;;  %v5740_v18 = vcombine.high %v3283_v12, %v3295_v13  ;;  %v5739_v25 = vcombine.low %v3283_v12, %v3295_v13  ;;  %v3284_v13 = vld [vmem:[#allocation7 + $0x4a0] sm:$0xff] }
 0x522   : > { %4302 = vmatpush1.bf16.msra.mxu0 %v5637_v16 }
 0x523   : > { %4303 = vmatprep.subr.bf16.mxu0 %v5614_v19  ;;  %v3258_v19 = vld [vmem:[#allocation7 + $0x3d0] sm:$0xff] }
 0x526   : > { %4304 = vmatpush1.bf16.msra.mxu0 %v5613_v20 }
 0x527   : > { %4305 = vmatprep.subr.bf16.mxu0 %v5590_v56  ;;  %v5641_v56 = vcombine.low %v3186_v44, %v3198_v45 }
 0x52a   : > { %4306 = vmatpush1.bf16.msra.mxu0 %v5589_v58 }
 0x5cd   : > { %v3044_v22 = vpop.f32.mrf.mxu0 }
 0x5ce   : > { %v3045_v23 = vadd.f32 %v5580_v21, %v3044_v22  ;;  %v3270_v21 = vld [vmem:[#allocation7 + $0x430] sm:$0xff]  ;;  %v3259_v22 = vld [vmem:[#allocation7 + $0x3d8] sm:$0xff] }
 0x5cf   : > { %v6133_v24 = vpop.f32.mrf.mxu0  ;;  %v5714_v26 = vcombine.high %v3258_v19, %v3270_v21  ;;  %v5713_v32 = vcombine.low %v3258_v19, %v3270_v21 }
 0x5d0   : > { %v3050_v27 = vmax.f32 %v3045_v23, 0.0  ;;  %v3271_v23 = vld [vmem:[#allocation7 + $0x438] sm:$0xff]  ;;  %v5737_v24 = vcombine.low %v3282_v9, %v3294_v11 }
 0x5d1   : > { %v3047_v28 = vpop.f32.mrf.mxu0  ;;  %v5715_v33 = vcombine.low %v3259_v22, %v3271_v23 }
 0x5d2   : > { %v3051_v29 = vpack.c.bf16 %v3050_v27, %v3050_v27  ;;  %v5716_v27 = vcombine.high %v3259_v22, %v3271_v23  ;;  %v3234_v28 = vld [vmem:[#allocation7 + $0x310] sm:$0xff]  ;;  %v3260_v22 = vld [vmem:[#allocation7 + $0x3e0] sm:$0xff] }
 0x5d3   : > { %v6134_v31 = vpop.f32.mrf.mxu0  ;;  %v3272_v23 = vld [vmem:[#allocation7 + $0x440] sm:$0xff] }
 0x5d4   : > { %6144 = vmatmul.mubr.msk.bf16.vlgmr.msra.gmra.mxu1 %vm2820_vm2, %v3051_v29  ;;  %v3246_v29 = vld [vmem:[#allocation7 + $0x370] sm:$0xff]  ;;  %v3247_v31 = vld [vmem:[#allocation7 + $0x378] sm:$0xff] }
 0x5d5   : > { %4333 = vmatpush1.bf16.msra.mxu1 %v5759_v61  ;;  %v3306_v61 = vld [vmem:[#allocation7 + $0x550] sm:$0xff]  ;;  %4364 = vmatprep.mubr.bf16.mxu1 %v6645_v5  ;;  %v5689_v40 = vcombine.low %v3234_v28, %v3246_v29 }
 0x5d6   : > { %4334 = vmatprep.subr.bf16.mxu1 %v5736_v30  ;;  %v5762_v62 = vcombine.high %v3306_v61, %v3318_v63  ;;  %v5761_v2 = vcombine.low %v3306_v61, %v3318_v63  ;;  %v3235_v30 = vld [vmem:[#allocation7 + $0x318] sm:$0xff]  ;;  %v3150_v61 = vld [vmem:[#allocation7 + $0x70] sm:$0xff] }
 0x5d7   : > { %v5691_v41 = vcombine.low %v3235_v30, %v3247_v31  ;;  %v3139_v63 = vld [vmem:[#allocation7 + $0x18] sm:$0xff] }
 0x5d8   : > { %4373 = vmatprep.subr.bf16.mxu0 %v5762_v62 }
 0x5d9   : > { %4335 = vmatpush1.bf16.msra.mxu1 %v5735_v34  ;;  %v5690_v34 = vcombine.high %v3234_v28, %v3246_v29  ;;  %v5718_v28 = vcombine.high %v3260_v22, %v3272_v23 }
 0x5da   : > { %4336 = vmatprep.subr.bf16.mxu1 %v5712_v35  ;;  %v5692_v35 = vcombine.high %v3235_v30, %v3247_v31  ;;  %v3236_v30 = vld [vmem:[#allocation7 + $0x320] sm:$0xff] }
 0x5db   : > { %v3248_v31 = vld [vmem:[#allocation7 + $0x380] sm:$0xff] }
 0x5dd   : > { %4337 = vmatpush1.bf16.msra.mxu1 %v5711_v38  ;;  %v3211_v38 = vld [vmem:[#allocation7 + $0x258] sm:$0xff] }
 0x5de   : > { %4338 = vmatprep.subr.bf16.mxu1 %v5688_v39  ;;  %v3223_v39 = vld [vmem:[#allocation7 + $0x2b8] sm:$0xff] }
 0x5df   : > { %v5667_v49 = vcombine.low %v3211_v38, %v3223_v39 }
 0x5e1   : > { %4339 = vmatpush1.bf16.msra.mxu1 %v5687_v42  ;;  %v5666_v42 = vcombine.high %v3210_v36, %v3222_v37  ;;  %v5694_v36 = vcombine.high %v3236_v30, %v3248_v31 }
 0x5e2   : > { %4340 = vmatprep.subr.bf16.mxu1 %v5664_v43  ;;  %v5668_v43 = vcombine.high %v3211_v38, %v3223_v39  ;;  %v3212_v38 = vld [vmem:[#allocation7 + $0x260] sm:$0xff] }
 0x5e3   : > { %v3224_v39 = vld [vmem:[#allocation7 + $0x2c0] sm:$0xff] }
 0x5e5   : > { %4341 = vmatpush1.bf16.msra.mxu1 %v5663_v46  ;;  %v3187_v46 = vld [vmem:[#allocation7 + $0x198] sm:$0xff] }
 0x5e6   : > { %4342 = vmatprep.subr.bf16.mxu1 %v5640_v47  ;;  %v3199_v47 = vld [vmem:[#allocation7 + $0x1f8] sm:$0xff] }
 0x5e7   : > { %v5643_v57 = vcombine.low %v3187_v46, %v3199_v47 }
 0x5e9   : > { %4343 = vmatpush1.bf16.msra.mxu1 %v5639_v50  ;;  %v5642_v50 = vcombine.high %v3186_v44, %v3198_v45  ;;  %v5670_v44 = vcombine.high %v3212_v38, %v3224_v39 }
 0x5ea   : > { %4344 = vmatprep.subr.bf16.mxu1 %v5616_v51  ;;  %v5644_v51 = vcombine.high %v3187_v46, %v3199_v47  ;;  %v3188_v46 = vld [vmem:[#allocation7 + $0x1a0] sm:$0xff] }
 0x5eb   : > { %v3200_v47 = vld [vmem:[#allocation7 + $0x200] sm:$0xff] }
 0x5ed   : > { %4345 = vmatpush1.bf16.msra.mxu1 %v5615_v52  ;;  %v3162_v52 = vld [vmem:[#allocation7 + $0xd0] sm:$0xff] }
 0x5ee   : > { %4346 = vmatprep.subr.bf16.mxu1 %v5592_v60  ;;  %v5618_v58 = vcombine.high %v3162_v52, %v3174_v53  ;;  %v3138_v60 = vld [vmem:[#allocation7 + $0x10] sm:$0xff]  ;;  %v5617_v62 = vcombine.low %v3162_v52, %v3174_v53  ;;  %v5646_v52 = vcombine.high %v3188_v46, %v3200_v47 }
 0x5ef   : > { %v5593_v9 = vcombine.low %v3138_v60, %v3150_v61 }
 0x5f1   : > { %4347 = vmatpush1.bf16.msra.mxu1 %v5591_v59  ;;  %v5620_v59 = vcombine.high %v3163_v54, %v3175_v55  ;;  %v3164_v54 = vld [vmem:[#allocation7 + $0xe0] sm:$0xff] }
 0x5f2   : > { %4414 = vmatprep.subr.bf16.mxu1 %v5764_v4  ;;  %v3308_v4 = vld [vmem:[#allocation7 + $0x560] sm:$0xff] }
 0x5f3   : > { %v3176_v55 = vld [vmem:[#allocation7 + $0x140] sm:$0xff] }
 0x694   : > { %v3128_v7 = vpop.f32.mrf.mxu1 }
 0x695   : > { %v3129_v8 = vadd.f32 %v5583_v6, %v3128_v7  ;;  %v3320_v6 = vld [vmem:[#allocation7 + $0x5c0] sm:$0xff]  ;;  %v3309_v7 = vld [vmem:[#allocation7 + $0x568] sm:$0xff] }
 0x696   : > { %v6145_v10 = vpop.f32.mrf.mxu1  ;;  %v5766_v11 = vcombine.high %v3308_v4, %v3320_v6 }
 0x697   : > { %v3134_v14 = vmax.f32 %v3129_v8, 0.0  ;;  %v3321_v8 = vld [vmem:[#allocation7 + $0x5c8] sm:$0xff]  ;;  %v5595_v10 = vcombine.low %v3139_v63, %v3151_v0 }
 0x698   : > { %v3131_v15 = vpop.f32.mrf.mxu1  ;;  %v5768_v12 = vcombine.high %v3309_v7, %v3321_v8  ;;  %v5767_v19 = vcombine.low %v3309_v7, %v3321_v8  ;;  %v3310_v7 = vld [vmem:[#allocation7 + $0x570] sm:$0xff] }
 0x699   : > { %v7010_v16 = vpack.c.bf16 %v3134_v14, %v3134_v14  ;;  %v3296_v14 = vld [vmem:[#allocation7 + $0x500] sm:$0xff]  ;;  %v3285_v15 = vld [vmem:[#allocation7 + $0x4a8] sm:$0xff]  ;;  %v3322_v8 = vld [vmem:[#allocation7 + $0x5d0] sm:$0xff] }
 0x69a   : > { %v6146_v20 = vpop.f32.mrf.mxu1 }
 0x69b   : > { %4324 = vmatmul.mubr.bf16.vlgmr.msra.gmra.mxu0 %v7010_v16  ;;  %4365 = vmatmul.mubr.bf16.vlgmr.msra.gmra.mxu1 %v7010_v16  ;;  %v5742_v20 = vcombine.high %v3284_v13, %v3296_v14 }
 0x69c   : > { %4374 = vmatpush1.bf16.msra.mxu0 %v5761_v2  ;;  %4415 = vmatpush1.bf16.msra.mxu1 %v5763_v3  ;;  %v5594_v2 = vcombine.high %v3138_v60, %v3150_v61  ;;  %v5596_v3 = vcombine.high %v3139_v63, %v3151_v0  ;;  %v5622_v60 = vcombine.high %v3164_v54, %v3176_v55  ;;  %v3140_v63 = vld [vmem:[#allocation7 + $0x20] sm:$0xff] }
 0x69d   : > { %4375 = vmatprep.subr.bf16.mxu0 %v5738_v17  ;;  %4416 = vmatprep.subr.bf16.mxu1 %v5740_v18  ;;  %v3297_v17 = vld [vmem:[#allocation7 + $0x508] sm:$0xff]  ;;  %v5765_v18 = vcombine.low %v3308_v4, %v3320_v6  ;;  %v3152_v0 = vld [vmem:[#allocation7 + $0x80] sm:$0xff] }
 0x69e   : > { %4405 = vmatprep.mubr.bf16.mxu0 %v6645_v5  ;;  %4446 = vmatprep.mubr.bf16.mxu1 %v6645_v5  ;;  %v5744_v21 = vcombine.high %v3285_v15, %v3297_v17  ;;  %v5598_v4 = vcombine.high %v3140_v63, %v3152_v0 }
 0x6a0   : > { %4376 = vmatpush1.bf16.msra.mxu0 %v5737_v24  ;;  %4417 = vmatpush1.bf16.msra.mxu1 %v5739_v25  ;;  %v3261_v24 = vld [vmem:[#allocation7 + $0x3e8] sm:$0xff] }
 0x6a1   : > { %4377 = vmatprep.subr.bf16.mxu0 %v5714_v26  ;;  %4418 = vmatprep.subr.bf16.mxu1 %v5716_v27  ;;  %v3273_v25 = vld [vmem:[#allocation7 + $0x448] sm:$0xff]  ;;  %v5741_v26 = vcombine.low %v3284_v13, %v3296_v14  ;;  %v5743_v27 = vcombine.low %v3285_v15, %v3297_v17  ;;  %v5770_v13 = vcombine.high %v3310_v7, %v3322_v8  ;;  %v3286_v15 = vld [vmem:[#allocation7 + $0x4b0] sm:$0xff] }
 0x6a2   : > { %v5720_v29 = vcombine.high %v3261_v24, %v3273_v25  ;;  %v3298_v17 = vld [vmem:[#allocation7 + $0x510] sm:$0xff] }
 0x6a4   : > { %4378 = vmatpush1.bf16.msra.mxu0 %v5713_v32  ;;  %4419 = vmatpush1.bf16.msra.mxu1 %v5715_v33  ;;  %v3237_v32 = vld [vmem:[#allocation7 + $0x328] sm:$0xff] }
 0x6a5   : > { %4379 = vmatprep.subr.bf16.mxu0 %v5690_v34  ;;  %4420 = vmatprep.subr.bf16.mxu1 %v5692_v35  ;;  %v3249_v33 = vld [vmem:[#allocation7 + $0x388] sm:$0xff]  ;;  %v5717_v34 = vcombine.low %v3260_v22, %v3272_v23  ;;  %v5719_v35 = vcombine.low %v3261_v24, %v3273_v25  ;;  %v5746_v22 = vcombine.high %v3286_v15, %v3298_v17  ;;  %v3262_v24 = vld [vmem:[#allocation7 + $0x3f0] sm:$0xff] }
 0x6a6   : > { %v5696_v37 = vcombine.high %v3237_v32, %v3249_v33  ;;  %v3274_v25 = vld [vmem:[#allocation7 + $0x450] sm:$0xff] }
 0x6a8   : > { %4380 = vmatpush1.bf16.msra.mxu0 %v5689_v40  ;;  %4421 = vmatpush1.bf16.msra.mxu1 %v5691_v41  ;;  %v3213_v40 = vld [vmem:[#allocation7 + $0x268] sm:$0xff] }
 0x6a9   : > { %4381 = vmatprep.subr.bf16.mxu0 %v5666_v42  ;;  %4422 = vmatprep.subr.bf16.mxu1 %v5668_v43  ;;  %v3225_v41 = vld [vmem:[#allocation7 + $0x2c8] sm:$0xff]  ;;  %v5693_v42 = vcombine.low %v3236_v30, %v3248_v31  ;;  %v5695_v43 = vcombine.low %v3237_v32, %v3249_v33  ;;  %v5722_v30 = vcombine.high %v3262_v24, %v3274_v25  ;;  %v3238_v32 = vld [vmem:[#allocation7 + $0x330] sm:$0xff] }
 0x6aa   : > { %v5672_v45 = vcombine.high %v3213_v40, %v3225_v41  ;;  %v3250_v33 = vld [vmem:[#allocation7 + $0x390] sm:$0xff] }
 0x6ac   : > { %4382 = vmatpush1.bf16.msra.mxu0 %v5665_v48  ;;  %4423 = vmatpush1.bf16.msra.mxu1 %v5667_v49  ;;  %v3189_v48 = vld [vmem:[#allocation7 + $0x1a8] sm:$0xff] }
 0x6ad   : > { %4383 = vmatprep.subr.bf16.mxu0 %v5642_v50  ;;  %4424 = vmatprep.subr.bf16.mxu1 %v5644_v51  ;;  %v3201_v49 = vld [vmem:[#allocation7 + $0x208] sm:$0xff]  ;;  %v5669_v50 = vcombine.low %v3212_v38, %v3224_v39  ;;  %v5671_v51 = vcombine.low %v3213_v40, %v3225_v41  ;;  %v5698_v38 = vcombine.high %v3238_v32, %v3250_v33  ;;  %v3214_v40 = vld [vmem:[#allocation7 + $0x270] sm:$0xff] }
 0x6ae   : > { %v5648_v53 = vcombine.high %v3189_v48, %v3201_v49  ;;  %v3226_v41 = vld [vmem:[#allocation7 + $0x2d0] sm:$0xff] }
 0x6b0   : > { %4384 = vmatpush1.bf16.msra.mxu0 %v5641_v56  ;;  %4425 = vmatpush1.bf16.msra.mxu1 %v5643_v57  ;;  %v3165_v56 = vld [vmem:[#allocation7 + $0xe8] sm:$0xff] }
 0x6b1   : > { %4385 = vmatprep.subr.bf16.mxu0 %v5618_v58  ;;  %4426 = vmatprep.subr.bf16.mxu1 %v5620_v59  ;;  %v3177_v57 = vld [vmem:[#allocation7 + $0x148] sm:$0xff]  ;;  %v5645_v58 = vcombine.low %v3188_v46, %v3200_v47  ;;  %v5647_v59 = vcombine.low %v3189_v48, %v3201_v49  ;;  %v5674_v46 = vcombine.high %v3214_v40, %v3226_v41  ;;  %v3190_v48 = vld [vmem:[#allocation7 + $0x1b0] sm:$0xff] }
 0x6b2   : > { %v5624_v61 = vcombine.high %v3165_v56, %v3177_v57  ;;  %v3202_v49 = vld [vmem:[#allocation7 + $0x210] sm:$0xff] }
 0x6b4   : > { %4386 = vmatpush1.bf16.msra.mxu0 %v5617_v62  ;;  %4427 = vmatpush1.bf16.msra.mxu1 %v5619_v1  ;;  %v3141_v62 = vld [vmem:[#allocation7 + $0x28] sm:$0xff] }
 0x6b5   : > { %4387 = vmatprep.subr.bf16.mxu0 %v5594_v2  ;;  %4428 = vmatprep.subr.bf16.mxu1 %v5596_v3  ;;  %v3153_v1 = vld [vmem:[#allocation7 + $0x88] sm:$0xff]  ;;  %v5621_v2 = vcombine.low %v3164_v54, %v3176_v55  ;;  %v5623_v3 = vcombine.low %v3165_v56, %v3177_v57  ;;  %v5650_v54 = vcombine.high %v3190_v48, %v3202_v49  ;;  %v3166_v56 = vld [vmem:[#allocation7 + $0xf0] sm:$0xff] }
 0x6b6   : > { %v5600_v6 = vcombine.high %v3141_v62, %v3153_v1  ;;  %v3178_v57 = vld [vmem:[#allocation7 + $0x150] sm:$0xff] }
 0x6b8   : > { %4388 = vmatpush1.bf16.msra.mxu0 %v5593_v9  ;;  %4429 = vmatpush1.bf16.msra.mxu1 %v5595_v10  ;;  %v3311_v9 = vld [vmem:[#allocation7 + $0x578] sm:$0xff] }
 0x6b9   : > { %4455 = vmatprep.subr.bf16.mxu0 %v5766_v11  ;;  %4496 = vmatprep.subr.bf16.mxu1 %v5768_v12  ;;  %v3323_v10 = vld [vmem:[#allocation7 + $0x5d8] sm:$0xff]  ;;  %v5597_v11 = vcombine.low %v3140_v63, %v3152_v0  ;;  %v5599_v12 = vcombine.low %v3141_v62, %v3153_v1  ;;  %v5626_v63 = vcombine.high %v3166_v56, %v3178_v57  ;;  %v3142_v62 = vld [vmem:[#allocation7 + $0x30] sm:$0xff] }
 0x6ba   : > { %v5772_v14 = vcombine.high %v3311_v9, %v3323_v10  ;;  %v3154_v1 = vld [vmem:[#allocation7 + $0x90] sm:$0xff] }
 0x6bb   : > { %4406 = vmatmul.mubr.bf16.vlgmr.msra.gmra.mxu0 %v7010_v16  ;;  %4447 = vmatmul.mubr.bf16.vlgmr.msra.gmra.mxu1 %v7010_v16 }
 0x6bc   : > { %4456 = vmatpush1.bf16.msra.mxu0 %v5765_v18  ;;  %4497 = vmatpush1.bf16.msra.mxu1 %v5767_v19  ;;  %v3287_v18 = vld [vmem:[#allocation7 + $0x4b8] sm:$0xff] }
 0x6bd   : > { %4457 = vmatprep.subr.bf16.mxu0 %v5742_v20  ;;  %4498 = vmatprep.subr.bf16.mxu1 %v5744_v21  ;;  %v3299_v19 = vld [vmem:[#allocation7 + $0x518] sm:$0xff]  ;;  %v5769_v20 = vcombine.low %v3310_v7, %v3322_v8  ;;  %v5771_v21 = vcombine.low %v3311_v9, %v3323_v10  ;;  %v5602_v7 = vcombine.high %v3142_v62, %v3154_v1  ;;  %v3312_v9 = vld [vmem:[#allocation7 + $0x580] sm:$0xff] }
 0x6be   : > { %4487 = vmatprep.mubr.bf16.mxu0 %v6645_v5  ;;  %4528 = vmatprep.mubr.bf16.mxu1 %v6645_v5  ;;  %v5748_v23 = vcombine.high %v3287_v18, %v3299_v19  ;;  %v3324_v10 = vld [vmem:[#allocation7 + $0x5e0] sm:$0xff] }
 0x6c0   : > { %4458 = vmatpush1.bf16.msra.mxu0 %v5741_v26  ;;  %4499 = vmatpush1.bf16.msra.mxu1 %v5743_v27  ;;  %v3263_v26 = vld [vmem:[#allocation7 + $0x3f8] sm:$0xff] }
 0x6c1   : > { %4459 = vmatprep.subr.bf16.mxu0 %v5718_v28  ;;  %4500 = vmatprep.subr.bf16.mxu1 %v5720_v29  ;;  %v3275_v27 = vld [vmem:[#allocation7 + $0x458] sm:$0xff]  ;;  %v5745_v28 = vcombine.low %v3286_v15, %v3298_v17  ;;  %v5747_v29 = vcombine.low %v3287_v18, %v3299_v19  ;;  %v5774_v15 = vcombine.high %v3312_v9, %v3324_v10  ;;  %v3288_v18 = vld [vmem:[#allocation7 + $0x4c0] sm:$0xff] }
 0x6c2   : > { %v5724_v31 = vcombine.high %v3263_v26, %v3275_v27  ;;  %v3300_v19 = vld [vmem:[#allocation7 + $0x520] sm:$0xff] }
 0x6c4   : > { %4460 = vmatpush1.bf16.msra.mxu0 %v5717_v34  ;;  %4501 = vmatpush1.bf16.msra.mxu1 %v5719_v35  ;;  %v3239_v34 = vld [vmem:[#allocation7 + $0x338] sm:$0xff] }
 0x6c5   : > { %4461 = vmatprep.subr.bf16.mxu0 %v5694_v36  ;;  %4502 = vmatprep.subr.bf16.mxu1 %v5696_v37  ;;  %v3251_v35 = vld [vmem:[#allocation7 + $0x398] sm:$0xff]  ;;  %v5721_v36 = vcombine.low %v3262_v24, %v3274_v25  ;;  %v5723_v37 = vcombine.low %v3263_v26, %v3275_v27  ;;  %v5750_v24 = vcombine.high %v3288_v18, %v3300_v19  ;;  %v3264_v26 = vld [vmem:[#allocation7 + $0x400] sm:$0xff] }
 0x6c6   : > { %v5700_v39 = vcombine.high %v3239_v34, %v3251_v35  ;;  %v3276_v27 = vld [vmem:[#allocation7 + $0x460] sm:$0xff] }
 0x6c8   : > { %4462 = vmatpush1.bf16.msra.mxu0 %v5693_v42  ;;  %4503 = vmatpush1.bf16.msra.mxu1 %v5695_v43  ;;  %v3215_v42 = vld [vmem:[#allocation7 + $0x278] sm:$0xff] }
 0x6c9   : > { %4463 = vmatprep.subr.bf16.mxu0 %v5670_v44  ;;  %4504 = vmatprep.subr.bf16.mxu1 %v5672_v45  ;;  %v3227_v43 = vld [vmem:[#allocation7 + $0x2d8] sm:$0xff]  ;;  %v5697_v44 = vcombine.low %v3238_v32, %v3250_v33  ;;  %v5699_v45 = vcombine.low %v3239_v34, %v3251_v35  ;;  %v5726_v32 = vcombine.high %v3264_v26, %v3276_v27  ;;  %v3240_v34 = vld [vmem:[#allocation7 + $0x340] sm:$0xff] }
 0x6ca   : > { %v5676_v47 = vcombine.high %v3215_v42, %v3227_v43  ;;  %v3252_v35 = vld [vmem:[#allocation7 + $0x3a0] sm:$0xff] }
 0x6cc   : > { %4464 = vmatpush1.bf16.msra.mxu0 %v5669_v50  ;;  %4505 = vmatpush1.bf16.msra.mxu1 %v5671_v51  ;;  %v3191_v50 = vld [vmem:[#allocation7 + $0x1b8] sm:$0xff] }
 0x6cd   : > { %4465 = vmatprep.subr.bf16.mxu0 %v5646_v52  ;;  %4506 = vmatprep.subr.bf16.mxu1 %v5648_v53  ;;  %v3203_v51 = vld [vmem:[#allocation7 + $0x218] sm:$0xff]  ;;  %v5673_v52 = vcombine.low %v3214_v40, %v3226_v41  ;;  %v5675_v53 = vcombine.low %v3215_v42, %v3227_v43  ;;  %v5702_v40 = vcombine.high %v3240_v34, %v3252_v35  ;;  %v3216_v42 = vld [vmem:[#allocation7 + $0x280] sm:$0xff] }
 0x6ce   : > { %v5652_v55 = vcombine.high %v3191_v50, %v3203_v51  ;;  %v3228_v43 = vld [vmem:[#allocation7 + $0x2e0] sm:$0xff] }
 0x6d0   : > { %4466 = vmatpush1.bf16.msra.mxu0 %v5645_v58  ;;  %4507 = vmatpush1.bf16.msra.mxu1 %v5647_v59  ;;  %v3167_v58 = vld [vmem:[#allocation7 + $0xf8] sm:$0xff] }
 0x6d1   : > { %4467 = vmatprep.subr.bf16.mxu0 %v5622_v60  ;;  %4508 = vmatprep.subr.bf16.mxu1 %v5624_v61  ;;  %v3179_v59 = vld [vmem:[#allocation7 + $0x158] sm:$0xff]  ;;  %v5649_v60 = vcombine.low %v3190_v48, %v3202_v49  ;;  %v5651_v61 = vcombine.low %v3191_v50, %v3203_v51  ;;  %v5678_v48 = vcombine.high %v3216_v42, %v3228_v43  ;;  %v3192_v50 = vld [vmem:[#allocation7 + $0x1c0] sm:$0xff] }
 0x6d2   : > { %v5628_v0 = vcombine.high %v3167_v58, %v3179_v59  ;;  %v3204_v51 = vld [vmem:[#allocation7 + $0x220] sm:$0xff] }
 0x6d4   : > { %4468 = vmatpush1.bf16.msra.mxu0 %v5621_v2  ;;  %4509 = vmatpush1.bf16.msra.mxu1 %v5623_v3  ;;  %v3143_v2 = vld [vmem:[#allocation7 + $0x38] sm:$0xff] }
 0x6d5   : > { %4469 = vmatprep.subr.bf16.mxu0 %v5598_v4  ;;  %4510 = vmatprep.subr.bf16.mxu1 %v5600_v6  ;;  %v3155_v3 = vld [vmem:[#allocation7 + $0x98] sm:$0xff]  ;;  %v5625_v4 = vcombine.low %v3166_v56, %v3178_v57  ;;  %v5627_v6 = vcombine.low %v3167_v58, %v3179_v59  ;;  %v5654_v56 = vcombine.high %v3192_v50, %v3204_v51  ;;  %v3168_v58 = vld [vmem:[#allocation7 + $0x100] sm:$0xff] }
 0x6d6   : > { %v5604_v8 = vcombine.high %v3143_v2, %v3155_v3  ;;  %v3180_v59 = vld [vmem:[#allocation7 + $0x160] sm:$0xff] }
 0x6d8   : > { %4470 = vmatpush1.bf16.msra.mxu0 %v5597_v11  ;;  %4511 = vmatpush1.bf16.msra.mxu1 %v5599_v12  ;;  %v3313_v11 = vld [vmem:[#allocation7 + $0x588] sm:$0xff] }
 0x6d9   : > { %4537 = vmatprep.subr.bf16.mxu0 %v5770_v13  ;;  %4578 = vmatprep.subr.bf16.mxu1 %v5772_v14  ;;  %v3325_v12 = vld [vmem:[#allocation7 + $0x5e8] sm:$0xff]  ;;  %v5601_v13 = vcombine.low %v3142_v62, %v3154_v1  ;;  %v5603_v14 = vcombine.low %v3143_v2, %v3155_v3  ;;  %v5630_v62 = vcombine.high %v3168_v58, %v3180_v59  ;;  %v3144_v2 = vld [vmem:[#allocation7 + $0x40] sm:$0xff] }
 0x6da   : > { %v5776_v17 = vcombine.high %v3313_v11, %v3325_v12  ;;  %v3156_v3 = vld [vmem:[#allocation7 + $0xa0] sm:$0xff] }
 0x6db   : > { %4488 = vmatmul.mubr.bf16.vlgmr.msra.gmra.mxu0 %v7010_v16  ;;  %4529 = vmatmul.mubr.bf16.vlgmr.msra.gmra.mxu1 %v7010_v16 }
 0x6dc   : > { %4538 = vmatpush1.bf16.msra.mxu0 %v5769_v20  ;;  %4579 = vmatpush1.bf16.msra.mxu1 %v5771_v21  ;;  %v3289_v20 = vld [vmem:[#allocation7 + $0x4c8] sm:$0xff] }
 0x6dd   : > { %4539 = vmatprep.subr.bf16.mxu0 %v5746_v22  ;;  %4580 = vmatprep.subr.bf16.mxu1 %v5748_v23  ;;  %v3301_v21 = vld [vmem:[#allocation7 + $0x528] sm:$0xff]  ;;  %v5773_v22 = vcombine.low %v3312_v9, %v3324_v10  ;;  %v5775_v23 = vcombine.low %v3313_v11, %v3325_v12  ;;  %v5606_v9 = vcombine.high %v3144_v2, %v3156_v3  ;;  %v3314_v11 = vld [vmem:[#allocation7 + $0x590] sm:$0xff] }
 0x6de   : > { %4569 = vmatprep.mubr.bf16.mxu0 %v6645_v5  ;;  %4610 = vmatprep.mubr.bf16.mxu1 %v6645_v5  ;;  %v5752_v25 = vcombine.high %v3289_v20, %v3301_v21  ;;  %v3326_v12 = vld [vmem:[#allocation7 + $0x5f0] sm:$0xff] }
 0x6e0   : > { %4540 = vmatpush1.bf16.msra.mxu0 %v5745_v28  ;;  %4581 = vmatpush1.bf16.msra.mxu1 %v5747_v29  ;;  %v3265_v28 = vld [vmem:[#allocation7 + $0x408] sm:$0xff] }
 0x6e1   : > { %4541 = vmatprep.subr.bf16.mxu0 %v5722_v30  ;;  %4582 = vmatprep.subr.bf16.mxu1 %v5724_v31  ;;  %v3277_v29 = vld [vmem:[#allocation7 + $0x468] sm:$0xff]  ;;  %v5749_v30 = vcombine.low %v3288_v18, %v3300_v19  ;;  %v5751_v31 = vcombine.low %v3289_v20, %v3301_v21  ;;  %v5778_v18 = vcombine.high %v3314_v11, %v3326_v12  ;;  %v3290_v20 = vld [vmem:[#allocation7 + $0x4d0] sm:$0xff] }
 0x6e2   : > { %v5728_v33 = vcombine.high %v3265_v28, %v3277_v29  ;;  %v3302_v21 = vld [vmem:[#allocation7 + $0x530] sm:$0xff] }
 0x6e4   : > { %4542 = vmatpush1.bf16.msra.mxu0 %v5721_v36  ;;  %4583 = vmatpush1.bf16.msra.mxu1 %v5723_v37  ;;  %v3241_v36 = vld [vmem:[#allocation7 + $0x348] sm:$0xff] }
 0x6e5   : > { %4543 = vmatprep.subr.bf16.mxu0 %v5698_v38  ;;  %4584 = vmatprep.subr.bf16.mxu1 %v5700_v39  ;;  %v3253_v37 = vld [vmem:[#allocation7 + $0x3a8] sm:$0xff]  ;;  %v5725_v38 = vcombine.low %v3264_v26, %v3276_v27  ;;  %v5727_v39 = vcombine.low %v3265_v28, %v3277_v29  ;;  %v5754_v26 = vcombine.high %v3290_v20, %v3302_v21  ;;  %v3266_v28 = vld [vmem:[#allocation7 + $0x410] sm:$0xff] }
 0x6e6   : > { %v5704_v41 = vcombine.high %v3241_v36, %v3253_v37  ;;  %v3278_v29 = vld [vmem:[#allocation7 + $0x470] sm:$0xff] }
 0x6e8   : > { %4544 = vmatpush1.bf16.msra.mxu0 %v5697_v44  ;;  %4585 = vmatpush1.bf16.msra.mxu1 %v5699_v45  ;;  %v3217_v44 = vld [vmem:[#allocation7 + $0x288] sm:$0xff] }
 0x6e9   : > { %4545 = vmatprep.subr.bf16.mxu0 %v5674_v46  ;;  %4586 = vmatprep.subr.bf16.mxu1 %v5676_v47  ;;  %v3229_v45 = vld [vmem:[#allocation7 + $0x2e8] sm:$0xff]  ;;  %v5701_v46 = vcombine.low %v3240_v34, %v3252_v35  ;;  %v5703_v47 = vcombine.low %v3241_v36, %v3253_v37  ;;  %v5730_v34 = vcombine.high %v3266_v28, %v3278_v29  ;;  %v3242_v36 = vld [vmem:[#allocation7 + $0x350] sm:$0xff] }
 0x6ea   : > { %v5680_v49 = vcombine.high %v3217_v44, %v3229_v45  ;;  %v3254_v37 = vld [vmem:[#allocation7 + $0x3b0] sm:$0xff] }
 0x6ec   : > { %4546 = vmatpush1.bf16.msra.mxu0 %v5673_v52  ;;  %4587 = vmatpush1.bf16.msra.mxu1 %v5675_v53  ;;  %v3193_v52 = vld [vmem:[#allocation7 + $0x1c8] sm:$0xff] }
 0x6ed   : > { %4547 = vmatprep.subr.bf16.mxu0 %v5650_v54  ;;  %4588 = vmatprep.subr.bf16.mxu1 %v5652_v55  ;;  %v3205_v53 = vld [vmem:[#allocation7 + $0x228] sm:$0xff]  ;;  %v5677_v54 = vcombine.low %v3216_v42, %v3228_v43  ;;  %v5679_v55 = vcombine.low %v3217_v44, %v3229_v45  ;;  %v5706_v42 = vcombine.high %v3242_v36, %v3254_v37  ;;  %v3218_v44 = vld [vmem:[#allocation7 + $0x290] sm:$0xff] }
 0x6ee   : > { %v5656_v57 = vcombine.high %v3193_v52, %v3205_v53  ;;  %v3230_v45 = vld [vmem:[#allocation7 + $0x2f0] sm:$0xff] }
 0x6f0   : > { %4548 = vmatpush1.bf16.msra.mxu0 %v5649_v60  ;;  %4589 = vmatpush1.bf16.msra.mxu1 %v5651_v61  ;;  %v3169_v60 = vld [vmem:[#allocation7 + $0x108] sm:$0xff] }
 0x6f1   : > { %4549 = vmatprep.subr.bf16.mxu0 %v5626_v63  ;;  %4590 = vmatprep.subr.bf16.mxu1 %v5628_v0  ;;  %v3181_v61 = vld [vmem:[#allocation7 + $0x168] sm:$0xff]  ;;  %v5653_v63 = vcombine.low %v3192_v50, %v3204_v51  ;;  %v5655_v0 = vcombine.low %v3193_v52, %v3205_v53  ;;  %v5682_v50 = vcombine.high %v3218_v44, %v3230_v45  ;;  %v3194_v51 = vld [vmem:[#allocation7 + $0x1d0] sm:$0xff]  ;;  %v3195_v53 = vld [vmem:[#allocation7 + $0x1d8] sm:$0xff] }
 0x6f2   : > { %v5632_v1 = vcombine.high %v3169_v60, %v3181_v61  ;;  %v3206_v52 = vld [vmem:[#allocation7 + $0x230] sm:$0xff] }
 0x6f4   : > { %4550 = vmatpush1.bf16.msra.mxu0 %v5625_v4  ;;  %4591 = vmatpush1.bf16.msra.mxu1 %v5627_v6  ;;  %v3145_v4 = vld [vmem:[#allocation7 + $0x48] sm:$0xff] }
 0x6f5   : > { %4551 = vmatprep.subr.bf16.mxu0 %v5602_v7  ;;  %4592 = vmatprep.subr.bf16.mxu1 %v5604_v8  ;;  %v3157_v6 = vld [vmem:[#allocation7 + $0xa8] sm:$0xff]  ;;  %v5629_v7 = vcombine.low %v3168_v58, %v3180_v59  ;;  %v5631_v8 = vcombine.low %v3169_v60, %v3181_v61  ;;  %v3170_v59 = vld [vmem:[#allocation7 + $0x110] sm:$0xff]  ;;  %v3171_v61 = vld [vmem:[#allocation7 + $0x118] sm:$0xff] }
 0x6f6   : > { %v5608_v10 = vcombine.high %v3145_v4, %v3157_v6  ;;  %v3182_v60 = vld [vmem:[#allocation7 + $0x170] sm:$0xff] }
 0x6f8   : > { %4552 = vmatpush1.bf16.msra.mxu0 %v5601_v13  ;;  %4593 = vmatpush1.bf16.msra.mxu1 %v5603_v14  ;;  %v3315_v13 = vld [vmem:[#allocation7 + $0x598] sm:$0xff] }
 0x6f9   : > { %4619 = vmatprep.subr.bf16.mxu0 %v5774_v15  ;;  %4660 = vmatprep.subr.bf16.mxu1 %v5776_v17  ;;  %v3327_v14 = vld [vmem:[#allocation7 + $0x5f8] sm:$0xff]  ;;  %v5605_v15 = vcombine.low %v3144_v2, %v3156_v3  ;;  %v5607_v17 = vcombine.low %v3145_v4, %v3157_v6  ;;  %v3146_v3 = vld [vmem:[#allocation7 + $0x50] sm:$0xff] }
 0x6fa   : > { %v5780_v19 = vcombine.high %v3315_v13, %v3327_v14  ;;  %v3158_v4 = vld [vmem:[#allocation7 + $0xb0] sm:$0xff]  ;;  %v3147_v6 = vld [vmem:[#allocation7 + $0x58] sm:$0xff] }
 0x6fb   : > { %4570 = vmatmul.mubr.bf16.vlgmr.msra.gmra.mxu0 %v7010_v16  ;;  %4611 = vmatmul.mubr.bf16.vlgmr.msra.gmra.mxu1 %v7010_v16 }
 0x6fc   : > { %4620 = vmatpush1.bf16.msra.mxu0 %v5773_v22  ;;  %4661 = vmatpush1.bf16.msra.mxu1 %v5775_v23  ;;  %v3291_v22 = vld [vmem:[#allocation7 + $0x4d8] sm:$0xff] }
 0x6fd   : > { %4621 = vmatprep.subr.bf16.mxu0 %v5750_v24  ;;  %4662 = vmatprep.subr.bf16.mxu1 %v5752_v25  ;;  %v3303_v23 = vld [vmem:[#allocation7 + $0x538] sm:$0xff]  ;;  %v5777_v24 = vcombine.low %v3314_v11, %v3326_v12  ;;  %v5779_v25 = vcombine.low %v3315_v13, %v3327_v14  ;;  %v5609_v12 = vcombine.low %v3146_v3, %v3158_v4  ;;  %v4810_v14 = vlaneseq }
 0x6fe   : > { %4651 = vmatprep.mubr.bf16.mxu0 %v6645_v5  ;;  %4692 = vmatprep.mubr.bf16.mxu1 %v6645_v5  ;;  %v5756_v27 = vcombine.high %v3291_v22, %v3303_v23 }
 0x700   : > { %4622 = vmatpush1.bf16.msra.mxu0 %v5749_v30  ;;  %4663 = vmatpush1.bf16.msra.mxu1 %v5751_v31  ;;  %v3267_v30 = vld [vmem:[#allocation7 + $0x418] sm:$0xff] }
 0x701   : > { %4623 = vmatprep.subr.bf16.mxu0 %v5726_v32  ;;  %4664 = vmatprep.subr.bf16.mxu1 %v5728_v33  ;;  %v3279_v31 = vld [vmem:[#allocation7 + $0x478] sm:$0xff]  ;;  %v5753_v32 = vcombine.low %v3290_v20, %v3302_v21  ;;  %v5755_v33 = vcombine.low %v3291_v22, %v3303_v23 }
 0x702   : > { %v5732_v35 = vcombine.high %v3267_v30, %v3279_v31 }
 0x704   : > { %4624 = vmatpush1.bf16.msra.mxu0 %v5725_v38  ;;  %4665 = vmatpush1.bf16.msra.mxu1 %v5727_v39  ;;  %v3243_v38 = vld [vmem:[#allocation7 + $0x358] sm:$0xff] }
 0x705   : > { %4625 = vmatprep.subr.bf16.mxu0 %v5702_v40  ;;  %4666 = vmatprep.subr.bf16.mxu1 %v5704_v41  ;;  %v3255_v39 = vld [vmem:[#allocation7 + $0x3b8] sm:$0xff]  ;;  %v5729_v40 = vcombine.low %v3266_v28, %v3278_v29  ;;  %v5731_v41 = vcombine.low %v3267_v30, %v3279_v31 }
 0x706   : > { %v5708_v43 = vcombine.high %v3243_v38, %v3255_v39 }
 0x708   : > { %4626 = vmatpush1.bf16.msra.mxu0 %v5701_v46  ;;  %4667 = vmatpush1.bf16.msra.mxu1 %v5703_v47  ;;  %v3219_v46 = vld [vmem:[#allocation7 + $0x298] sm:$0xff] }
 0x709   : > { %4627 = vmatprep.subr.bf16.mxu0 %v5678_v48  ;;  %4668 = vmatprep.subr.bf16.mxu1 %v5680_v49  ;;  %v3231_v47 = vld [vmem:[#allocation7 + $0x2f8] sm:$0xff]  ;;  %v5705_v48 = vcombine.low %v3242_v36, %v3254_v37  ;;  %v5707_v49 = vcombine.low %v3243_v38, %v3255_v39 }
 0x70c   : > { %4628 = vmatpush1.bf16.msra.mxu0 %v5677_v54  ;;  %4669 = vmatpush1.bf16.msra.mxu1 %v5679_v55  ;;  %v3207_v54 = vld [vmem:[#allocation7 + $0x238] sm:$0xff]  ;;  %v5681_v55 = vcombine.low %v3218_v44, %v3230_v45 }
 0x70d   : > { %4629 = vmatprep.subr.bf16.mxu0 %v5654_v56  ;;  %4670 = vmatprep.subr.bf16.mxu1 %v5656_v57  ;;  %v5683_v56 = vcombine.low %v3219_v46, %v3231_v47  ;;  %v5658_v57 = vcombine.high %v3194_v51, %v3206_v52  ;;  %v5660_v58 = vcombine.high %v3195_v53, %v3207_v54 }
 0x710   : > { %4630 = vmatpush1.bf16.msra.mxu0 %v5653_v63  ;;  %4671 = vmatpush1.bf16.msra.mxu1 %v5655_v0  ;;  %v3183_v63 = vld [vmem:[#allocation7 + $0x178] sm:$0xff]  ;;  %v5657_v0 = vcombine.low %v3194_v51, %v3206_v52 }
 0x711   : > { %4631 = vmatprep.subr.bf16.mxu0 %v5630_v62  ;;  %4672 = vmatprep.subr.bf16.mxu1 %v5632_v1  ;;  %v5659_v62 = vcombine.low %v3195_v53, %v3207_v54  ;;  %v5634_v1 = vcombine.high %v3170_v59, %v3182_v60  ;;  %v5636_v2 = vcombine.high %v3171_v61, %v3183_v63 }
 0x714   : > { %4632 = vmatpush1.bf16.msra.mxu0 %v5629_v7  ;;  %4673 = vmatpush1.bf16.msra.mxu1 %v5631_v8  ;;  %v3159_v7 = vld [vmem:[#allocation7 + $0xb8] sm:$0xff]  ;;  %v5633_v8 = vcombine.low %v3170_v59, %v3182_v60 }
 0x715   : > { %4633 = vmatprep.subr.bf16.mxu0 %v5606_v9  ;;  %4674 = vmatprep.subr.bf16.mxu1 %v5608_v10  ;;  %v5635_v9 = vcombine.low %v3171_v61, %v3183_v63  ;;  %v5610_v10 = vcombine.high %v3146_v3, %v3158_v4  ;;  %v5612_v11 = vcombine.high %v3147_v6, %v3159_v7 }
 0x716   : > { %v5611_v13 = vcombine.low %v3147_v6, %v3159_v7 }
 0x718   : > { %4634 = vmatpush1.bf16.msra.mxu0 %v5605_v15  ;;  %4675 = vmatpush1.bf16.msra.mxu1 %v5607_v17  ;;  %v4811_v15 = vshrl.u32 %v4810_v14, 7 }
 0x719   : > { %4701 = vmatprep.subr.bf16.mxu0 %v5778_v18  ;;  %4742 = vmatprep.subr.bf16.mxu1 %v5780_v19  ;;  %v3328_v19 = vld [vmem:[%s7225_s20] sm:$0xff] }
 0x71a   : > { %v7034_v17 = vsub.s32 0, %v4811_v15  ;;  %v7036_v18 = vsub.s32 2, %v4811_v15  ;;  %v7041_v20 = vsub.s32 1, %v4811_v15  ;;  %v7043_v21 = vsub.s32 3, %v4811_v15 }
 0x71b   : > { %4652 = vmatmul.mubr.bf16.vlgmr.msra.gmra.mxu0 %v7010_v16  ;;  %4693 = vmatmul.mubr.bf16.vlgmr.msra.gmra.mxu1 %v7010_v16  ;;  %v7053_v52 = vsub.s32 4, %v4811_v15  ;;  %v7055_v53 = vsub.s32 6, %v4811_v15  ;;  %v7058_v54 = vsub.s32 5, %v4811_v15 }
 0x71c   : > { %4702 = vmatpush1.bf16.msra.mxu0 %v5777_v24  ;;  %4743 = vmatpush1.bf16.msra.mxu1 %v5779_v25  ;;  %v4813_v22 = vrot.slane %v3328_v19, %v7034_v17  ;;  %v4821_v23 = vrot.slane %v3328_v19, %v7036_v18  ;;  %v4825_v24 = vrot.slane %v3328_v19, %v7043_v21 }
 0x71d   : > { %4703 = vmatprep.subr.bf16.mxu0 %v5754_v26  ;;  %4744 = vmatprep.subr.bf16.mxu1 %v5756_v27  ;;  %v4833_v61 = vrot.slane %v3328_v19, %v7058_v54 }
 0x71e   : > { %4733 = vmatprep.mubr.bf16.mxu0 %v6645_v5  ;;  %4774 = vmatprep.mubr.bf16.mxu1 %v6645_v5  ;;  %v5684_v5 = vcombine.high %v3219_v46, %v3231_v47  ;;  %v4930_v25 = vpack.c.bf16 %v4813_v22, %v4813_v22  ;;  %v4932_v26 = vpack.c.bf16 %v4821_v23, %v4821_v23 }
 0x71f   : > { %v4933_v28 = vpack.c.bf16 %v4825_v24, %v4825_v24  ;;  %v4935_v4 = vpack.c.bf16 %v4833_v61, %v4833_v61 }
 0x720   : > { %4704 = vmatpush1.bf16.msra.mxu0 %v5753_v32  ;;  %4745 = vmatpush1.bf16.msra.mxu1 %v5755_v33  ;;  %v4955_v29 = vpack.i.b16 %v4930_v25, %v4930_v25  ;;  %v4969_v30 = vpack.i.b16 %v4932_v26, %v4932_v26 }
 0x721   : > { %4705 = vmatprep.subr.bf16.mxu0 %v5730_v34  ;;  %4746 = vmatprep.subr.bf16.mxu1 %v5732_v35  ;;  %v4976_v32 = vpack.i.b16 %v4933_v28, %v4933_v28 }
 0x722   : > { %v4960_v33 = vrot.slane %v4955_v29, %v7034_v17  ;;  %v4974_v34 = vrot.slane %v4969_v30, %v7034_v17 }
 0x724   : > { %4706 = vmatpush1.bf16.msra.mxu0 %v5729_v40  ;;  %4747 = vmatpush1.bf16.msra.mxu1 %v5731_v41  ;;  %v4981_v40 = vrot.slane %v4976_v32, %v7034_v17 }
 0x725   : > { %4707 = vmatprep.subr.bf16.mxu0 %v5706_v42  ;;  %4748 = vmatprep.subr.bf16.mxu1 %v5708_v43 }
 0x728   : > { %4708 = vmatpush1.bf16.msra.mxu0 %v5705_v48  ;;  %4749 = vmatpush1.bf16.msra.mxu1 %v5707_v49 }
 0x729   : > { %4709 = vmatprep.subr.bf16.mxu0 %v5682_v50  ;;  %4750 = vmatprep.subr.bf16.mxu1 %v5684_v5 }
 0x72c   : > { %4710 = vmatpush1.bf16.msra.mxu0 %v5681_v55  ;;  %4751 = vmatpush1.bf16.msra.mxu1 %v5683_v56  ;;  %v7060_v55 = vsub.s32 7, %v4811_v15 }
 0x72d   : > { %4711 = vmatprep.subr.bf16.mxu0 %v5658_v57  ;;  %4752 = vmatprep.subr.bf16.mxu1 %v5660_v58  ;;  %v4829_v57 = vrot.slane %v3328_v19, %v7053_v52  ;;  %v4837_v58 = vrot.slane %v3328_v19, %v7055_v53 }
 0x72e   : > { %v4841_v63 = vrot.slane %v3328_v19, %v7060_v55 }
 0x72f   : > { %v4936_v3 = vpack.c.bf16 %v4837_v58, %v4837_v58 }
 0x730   : > { %4712 = vmatpush1.bf16.msra.mxu0 %v5657_v0  ;;  %4753 = vmatpush1.bf16.msra.mxu1 %v5659_v62  ;;  %v4937_v6 = vpack.c.bf16 %v4841_v63, %v4841_v63 }
 0x731   : > { %4713 = vmatprep.subr.bf16.mxu0 %v5634_v1  ;;  %4754 = vmatprep.subr.bf16.mxu1 %v5636_v2  ;;  %v4934_v2 = vpack.c.bf16 %v4829_v57, %v4829_v57 }
 0x733   : > { %v4983_v7 = vpack.i.b16 %v4934_v2, %v4934_v2 }
 0x734   : > { %4714 = vmatpush1.bf16.msra.mxu0 %v5633_v8  ;;  %4755 = vmatpush1.bf16.msra.mxu1 %v5635_v9  ;;  %v4997_v8 = vpack.i.b16 %v4936_v3, %v4936_v3  ;;  %v4990_v9 = vpack.i.b16 %v4935_v4, %v4935_v4 }
 0x735   : > { %4715 = vmatprep.subr.bf16.mxu0 %v5610_v10  ;;  %4756 = vmatprep.subr.bf16.mxu1 %v5612_v11  ;;  %v5004_v10 = vpack.i.b16 %v4937_v6, %v4937_v6  ;;  %v4988_v11 = vrot.slane %v4983_v7, %v7034_v17 }
 0x736   : > { %v4995_v22 = vrot.slane %v4990_v9, %v7034_v17 }
 0x737   : > { %v5009_v23 = vrot.slane %v5004_v10, %v7034_v17 }
 0x738   : > { %4716 = vmatpush1.bf16.msra.mxu0 %v5609_v12  ;;  %4757 = vmatpush1.bf16.msra.mxu1 %v5611_v13  ;;  %v5002_v12 = vrot.slane %v4997_v8, %v7034_v17 }
 0x73b   : > { %4734 = vmatmul.mubr.bf16.vlgmr.msra.gmra.mxu0 %v7010_v16  ;;  %4775 = vmatmul.mubr.bf16.vlgmr.msra.gmra.mxu1 %v7010_v16  ;;  %v4817_v16 = vrot.slane %v3328_v19, %v7041_v20 }
 0x73d   : > { %v4931_v27 = vpack.c.bf16 %v4817_v16, %v4817_v16 }
 0x73f   : > { %v4962_v31 = vpack.i.b16 %v4931_v27, %v4931_v27 }
 0x741   : > { %v4967_v39 = vrot.slane %v4962_v31, %v7034_v17 }
 0x75b   : > { %v4325_v35 = vpop.f32.mrf.mxu0  ;;  %v4366_v36 = vpop.f32.mrf.mxu1 }
 0x75c   : > { %v4783_v37 = vpack.c.bf16 %v4325_v35, %v4325_v35  ;;  %v4785_v38 = vpack.c.bf16 %v4366_v36, %v4366_v36  ;;  %v3329_v35 = vld [vmem:[%s7225_s20 + $0x8] sm:$0xff] }
 0x75d   : > { %v4327_v41 = vpop.f32.mrf.mxu0  ;;  %v4368_v42 = vpop.f32.mrf.mxu1 }
 0x75e   : > { %v5122_v43 = vadd.bf16 %v4960_v33, %v4783_v37  ;;  %v5124_v44 = vadd.bf16 %v4974_v34, %v4785_v38  ;;  %v4784_v45 = vpack.c.bf16 %v4327_v41, %v4327_v41  ;;  %v4786_v46 = vpack.c.bf16 %v4368_v42, %v4368_v42 }
 0x75f   : > { %v4329_v47 = vpop.f32.mrf.mxu0  ;;  %v4370_v48 = vpop.f32.mrf.mxu1  ;;  %v4845_v37 = vrot.slane %v3329_v35, %v7034_v17  ;;  %v4853_v38 = vrot.slane %v3329_v35, %v7036_v18  ;;  %v4849_v41 = vrot.slane %v3329_v35, %v7041_v20  ;;  %v4857_v42 = vrot.slane %v3329_v35, %v7043_v21 }
 0x760   : > { %6437 = vtanh.bf16 %v5122_v43  ;;  %v5123_v49 = vadd.bf16 %v4967_v39, %v4784_v45  ;;  %v5125_v50 = vadd.bf16 %v4981_v40, %v4786_v46 }
 0x761   : > { %6439 = vtanh.bf16 %v5124_v44  ;;  %v4330_v5 = vpop.f32.mrf.mxu0  ;;  %v4371_v51 = vpop.f32.mrf.mxu1  ;;  %v4938_v46 = vpack.c.bf16 %v4845_v37, %v4845_v37  ;;  %v4940_v47 = vpack.c.bf16 %v4853_v38, %v4853_v38  ;;  %v4939_v48 = vpack.c.bf16 %v4849_v41, %v4849_v41 }
 0x762   : > { %6441 = vtanh.bf16 %v5123_v49  ;;  %v4941_v49 = vpack.c.bf16 %v4857_v42, %v4857_v42 }
 0x763   : > { %6443 = vtanh.bf16 %v5125_v50  ;;  %v5011_v50 = vpack.i.b16 %v4938_v46, %v4938_v46  ;;  %v5025_v5 = vpack.i.b16 %v4940_v47, %v4940_v47  ;;  %v5018_v51 = vpack.i.b16 %v4939_v48, %v4939_v48 }
 0x765   : > { %v5016_v57 = vrot.slane %v5011_v50, %v7034_v17  ;;  %v5030_v58 = vrot.slane %v5025_v5, %v7034_v17 }
 0x76e   : > { %v6438_v56 = vpop.eup %6437 }
 0x76f   : > { %v6440_v59 = vpop.eup %6439 }
 0x770   : > { %v6442_v60 = vpop.eup %6441 }
 0x771   : > { %v6444_v0 = vpop.eup %6443  ;;  %v5781_v62 = vcombine.low %v6438_v56, %v6442_v60  ;;  %v5032_v56 = vpack.i.b16 %v4941_v49, %v4941_v49 }
 0x772   : > { %v5782_v1 = vcombine.low %v6440_v59, %v6444_v0  ;;  %v5023_v0 = vrot.slane %v5018_v51, %v7034_v17 }
 0x773   : > { %5242 = vst [vmem:[%s7066_s26] sm:$0xff] %v5781_v62  ;;  %v5037_v62 = vrot.slane %v5032_v56, %v7034_v17 }
 0x774   : > { %5243 = vst [vmem:[%s7066_s26 + $0x8] sm:$0xff] %v5782_v1 }
 0x77b   : > { %v4407_v13 = vpop.f32.mrf.mxu0  ;;  %v4448_v14 = vpop.f32.mrf.mxu1 }
 0x77c   : > { %v4787_v15 = vpack.c.bf16 %v4407_v13, %v4407_v13  ;;  %v4789_v19 = vpack.c.bf16 %v4448_v14, %v4448_v14 }
 0x77d   : > { %v4409_v16 = vpop.f32.mrf.mxu0  ;;  %v4450_v24 = vpop.f32.mrf.mxu1 }
 0x77e   : > { %v5126_v25 = vadd.bf16 %v4988_v11, %v4787_v15  ;;  %v5128_v26 = vadd.bf16 %v5002_v12, %v4789_v19  ;;  %v4788_v27 = vpack.c.bf16 %v4409_v16, %v4409_v16  ;;  %v4790_v28 = vpack.c.bf16 %v4450_v24, %v4450_v24 }
 0x77f   : > { %v4411_v29 = vpop.f32.mrf.mxu0  ;;  %v4452_v30 = vpop.f32.mrf.mxu1  ;;  %v4861_v15 = vrot.slane %v3329_v35, %v7053_v52  ;;  %v4869_v19 = vrot.slane %v3329_v35, %v7055_v53  ;;  %v4865_v16 = vrot.slane %v3329_v35, %v7058_v54  ;;  %v4873_v24 = vrot.slane %v3329_v35, %v7060_v55 }
 0x780   : > { %6445 = vtanh.bf16 %v5126_v25  ;;  %v5127_v31 = vadd.bf16 %v4995_v22, %v4788_v27  ;;  %v5129_v32 = vadd.bf16 %v5009_v23, %v4790_v28 }
 0x781   : > { %6447 = vtanh.bf16 %v5128_v26  ;;  %v4412_v33 = vpop.f32.mrf.mxu0  ;;  %v4453_v34 = vpop.f32.mrf.mxu1  ;;  %v4942_v28 = vpack.c.bf16 %v4861_v15, %v4861_v15  ;;  %v4944_v29 = vpack.c.bf16 %v4869_v19, %v4869_v19  ;;  %v4943_v30 = vpack.c.bf16 %v4865_v16, %v4865_v16 }
 0x782   : > { %6449 = vtanh.bf16 %v5127_v31  ;;  %v4945_v31 = vpack.c.bf16 %v4873_v24, %v4873_v24 }
 0x783   : > { %6451 = vtanh.bf16 %v5129_v32  ;;  %v5039_v32 = vpack.i.b16 %v4942_v28, %v4942_v28  ;;  %v5053_v33 = vpack.i.b16 %v4944_v29, %v4944_v29  ;;  %v5046_v34 = vpack.i.b16 %v4943_v30, %v4943_v30 }
 0x785   : > { %v5044_v37 = vrot.slane %v5039_v32, %v7034_v17  ;;  %v5058_v38 = vrot.slane %v5053_v33, %v7034_v17  ;;  %v5051_v42 = vrot.slane %v5046_v34, %v7034_v17 }
 0x78e   : > { %v6446_v36 = vpop.eup %6445 }
 0x78f   : > { %v6448_v39 = vpop.eup %6447 }
 0x790   : > { %v6450_v40 = vpop.eup %6449 }
 0x791   : > { %v6452_v43 = vpop.eup %6451  ;;  %v5783_v44 = vcombine.low %v6446_v36, %v6450_v40  ;;  %v5060_v36 = vpack.i.b16 %v4945_v31, %v4945_v31 }
 0x792   : > { %v5784_v45 = vcombine.low %v6448_v39, %v6452_v43 }
 0x793   : > { %5244 = vst [vmem:[%s7066_s26 + $0x10] sm:$0xff] %v5783_v44  ;;  %v5065_v43 = vrot.slane %v5060_v36, %v7034_v17 }
 0x794   : > { %5245 = vst [vmem:[%s7066_s26 + $0x18] sm:$0xff] %v5784_v45 }
 0x79b   : > { %v4489_v59 = vpop.f32.mrf.mxu0  ;;  %v4530_v60 = vpop.f32.mrf.mxu1 }
 0x79c   : > { %v4791_v61 = vpack.c.bf16 %v4489_v59, %v4489_v59  ;;  %v4793_v63 = vpack.c.bf16 %v4530_v60, %v4530_v60  ;;  %v3330_v59 = vld [vmem:[%s7225_s20 + $0x10] sm:$0xff] }
 0x79d   : > { %v4491_v1 = vpop.f32.mrf.mxu0  ;;  %v4532_v2 = vpop.f32.mrf.mxu1 }
 0x79e   : > { %v5130_v3 = vadd.bf16 %v5016_v57, %v4791_v61  ;;  %v5132_v4 = vadd.bf16 %v5030_v58, %v4793_v63  ;;  %v4792_v6 = vpack.c.bf16 %v4491_v1, %v4491_v1  ;;  %v4794_v7 = vpack.c.bf16 %v4532_v2, %v4532_v2 }
 0x79f   : > { %v4493_v8 = vpop.f32.mrf.mxu0  ;;  %v4534_v9 = vpop.f32.mrf.mxu1  ;;  %v4877_v61 = vrot.slane %v3330_v59, %v7034_v17  ;;  %v4885_v63 = vrot.slane %v3330_v59, %v7036_v18  ;;  %v4881_v1 = vrot.slane %v3330_v59, %v7041_v20  ;;  %v4889_v2 = vrot.slane %v3330_v59, %v7043_v21 }
 0x7a0   : > { %6453 = vtanh.bf16 %v5130_v3  ;;  %v5131_v10 = vadd.bf16 %v5023_v0, %v4792_v6  ;;  %v5133_v11 = vadd.bf16 %v5037_v62, %v4794_v7 }
 0x7a1   : > { %6455 = vtanh.bf16 %v5132_v4  ;;  %v4494_v12 = vpop.f32.mrf.mxu0  ;;  %v4535_v13 = vpop.f32.mrf.mxu1  ;;  %v4946_v7 = vpack.c.bf16 %v4877_v61, %v4877_v61  ;;  %v4948_v8 = vpack.c.bf16 %v4885_v63, %v4885_v63  ;;  %v4947_v9 = vpack.c.bf16 %v4881_v1, %v4881_v1 }
 0x7a2   : > { %6457 = vtanh.bf16 %v5131_v10  ;;  %v4949_v10 = vpack.c.bf16 %v4889_v2, %v4889_v2 }
 0x7a3   : > { %6459 = vtanh.bf16 %v5133_v11  ;;  %v5067_v11 = vpack.i.b16 %v4946_v7, %v4946_v7  ;;  %v5081_v12 = vpack.i.b16 %v4948_v8, %v4948_v8  ;;  %v5074_v13 = vpack.i.b16 %v4947_v9, %v4947_v9 }
 0x7a5   : > { %v5072_v18 = vrot.slane %v5067_v11, %v7034_v17  ;;  %v5086_v15 = vrot.slane %v5081_v12, %v7034_v17 }
 0x7ae   : > { %v6454_v14 = vpop.eup %6453 }
 0x7af   : > { %v6456_v22 = vpop.eup %6455 }
 0x7b0   : > { %v6458_v23 = vpop.eup %6457 }
 0x7b1   : > { %v6460_v25 = vpop.eup %6459  ;;  %v5785_v26 = vcombine.low %v6454_v14, %v6458_v23  ;;  %v5088_v14 = vpack.i.b16 %v4949_v10, %v4949_v10  ;;  %v5079_v23 = vrot.slane %v5074_v13, %v7034_v17 }
 0x7b2   : > { %v5786_v27 = vcombine.low %v6456_v22, %v6460_v25 }
 0x7b3   : > { %5246 = vst [vmem:[%s7066_s26 + $0x20] sm:$0xff] %v5785_v26  ;;  %v5093_v16 = vrot.slane %v5088_v14, %v7034_v17 }
 0x7b4   : > { %5247 = vst [vmem:[%s7066_s26 + $0x28] sm:$0xff] %v5786_v27 }
 0x7bb   : > { %v4571_v39 = vpop.f32.mrf.mxu0  ;;  %v4612_v40 = vpop.f32.mrf.mxu1 }
 0x7bc   : > { %v4795_v35 = vpack.c.bf16 %v4571_v39, %v4571_v39  ;;  %v4797_v41 = vpack.c.bf16 %v4612_v40, %v4612_v40  ;;  %v4901_v39 = vrot.slane %v3330_v59, %v7055_v53 }
 0x7bd   : > { %v4573_v44 = vpop.f32.mrf.mxu0  ;;  %v4614_v45 = vpop.f32.mrf.mxu1 }
 0x7be   : > { %v5134_v46 = vadd.bf16 %v5044_v37, %v4795_v35  ;;  %v5136_v47 = vadd.bf16 %v5058_v38, %v4797_v41  ;;  %v4796_v48 = vpack.c.bf16 %v4573_v44, %v4573_v44  ;;  %v4798_v49 = vpack.c.bf16 %v4614_v45, %v4614_v45 }
 0x7bf   : > { %v4575_v50 = vpop.f32.mrf.mxu0  ;;  %v4616_v5 = vpop.f32.mrf.mxu1  ;;  %v4893_v38 = vrot.slane %v3330_v59, %v7053_v52  ;;  %v4897_v41 = vrot.slane %v3330_v59, %v7058_v54 }
 0x7c0   : > { %6461 = vtanh.bf16 %v5134_v46  ;;  %v5135_v51 = vadd.bf16 %v5051_v42, %v4796_v48  ;;  %v5137_v56 = vadd.bf16 %v5065_v43, %v4798_v49  ;;  %v4905_v42 = vrot.slane %v3330_v59, %v7060_v55 }
 0x7c1   : > { %6463 = vtanh.bf16 %v5136_v47  ;;  %v4576_v57 = vpop.f32.mrf.mxu0  ;;  %v4617_v58 = vpop.f32.mrf.mxu1  ;;  %v4950_v46 = vpack.c.bf16 %v4893_v38, %v4893_v38  ;;  %v4952_v47 = vpack.c.bf16 %v4901_v39, %v4901_v39  ;;  %v4951_v48 = vpack.c.bf16 %v4897_v41, %v4897_v41 }
 0x7c2   : > { %6465 = vtanh.bf16 %v5135_v51  ;;  %v4953_v49 = vpack.c.bf16 %v4905_v42, %v4905_v42 }
 0x7c3   : > { %6467 = vtanh.bf16 %v5137_v56  ;;  %v5095_v50 = vpack.i.b16 %v4950_v46, %v4950_v46  ;;  %v5109_v5 = vpack.i.b16 %v4952_v47, %v4952_v47  ;;  %v5102_v52 = vpack.i.b16 %v4951_v48, %v4951_v48 }
 0x7c4   : > { %v5116_v51 = vpack.i.b16 %v4953_v49, %v4953_v49 }
 0x7c5   : > { %v5100_v53 = vrot.slane %v5095_v50, %v7034_v17  ;;  %v5114_v56 = vrot.slane %v5109_v5, %v7034_v17  ;;  %v5107_v59 = vrot.slane %v5102_v52, %v7034_v17 }
 0x7ce   : > { %v6462_v60 = vpop.eup %6461 }
 0x7cf   : > { %v6464_v0 = vpop.eup %6463 }
 0x7d0   : > { %v6466_v62 = vpop.eup %6465 }
 0x7d1   : > { %v6468_v3 = vpop.eup %6467  ;;  %v5787_v4 = vcombine.low %v6462_v60, %v6466_v62  ;;  %v5121_v60 = vrot.slane %v5116_v51, %v7034_v17 }
 0x7d2   : > { %v5788_v6 = vcombine.low %v6464_v0, %v6468_v3 }
 0x7d3   : > { %5248 = vst [vmem:[%s7066_s26 + $0x30] sm:$0xff] %v5787_v4 }
 0x7d4   : > { %5249 = vst [vmem:[%s7066_s26 + $0x38] sm:$0xff] %v5788_v6 }
 0x7db   : > { %v4653_v20 = vpop.f32.mrf.mxu0  ;;  %v4694_v19 = vpop.f32.mrf.mxu1 }
 0x7dc   : > { %v4799_v21 = vpack.c.bf16 %v4653_v20, %v4653_v20  ;;  %v4801_v22 = vpack.c.bf16 %v4694_v19, %v4694_v19 }
 0x7dd   : > { %v4655_v24 = vpop.f32.mrf.mxu0  ;;  %v4696_v25 = vpop.f32.mrf.mxu1 }
 0x7de   : > { %v5138_v26 = vadd.bf16 %v5072_v18, %v4799_v21  ;;  %v5140_v27 = vadd.bf16 %v5086_v15, %v4801_v22  ;;  %v4800_v28 = vpack.c.bf16 %v4655_v24, %v4655_v24  ;;  %v4802_v29 = vpack.c.bf16 %v4696_v25, %v4696_v25 }
 0x7df   : > { %v4657_v30 = vpop.f32.mrf.mxu0  ;;  %v4698_v31 = vpop.f32.mrf.mxu1 }
 0x7e0   : > { %6469 = vtanh.bf16 %v5138_v26  ;;  %v5139_v32 = vadd.bf16 %v5079_v23, %v4800_v28  ;;  %v5141_v33 = vadd.bf16 %v5093_v16, %v4802_v29 }
 0x7e1   : > { %6471 = vtanh.bf16 %v5140_v27  ;;  %v4658_v34 = vpop.f32.mrf.mxu0  ;;  %v4699_v36 = vpop.f32.mrf.mxu1 }
 0x7e2   : > { %6473 = vtanh.bf16 %v5139_v32 }
 0x7e3   : > { %6475 = vtanh.bf16 %v5141_v33 }
 0x7ee   : > { %v6470_v37 = vpop.eup %6469 }
 0x7ef   : > { %v6472_v40 = vpop.eup %6471 }
 0x7f0   : > { %v6474_v35 = vpop.eup %6473 }
 0x7f1   : > { %v6476_v43 = vpop.eup %6475  ;;  %v5789_v44 = vcombine.low %v6470_v37, %v6474_v35 }
 0x7f2   : > { %v5790_v45 = vcombine.low %v6472_v40, %v6476_v43 }
 0x7f3   : > { %5250 = vst [vmem:[%s7066_s26 + $0x40] sm:$0xff] %v5789_v44 }
 0x7f4   : > { %5251 = vst [vmem:[%s7066_s26 + $0x48] sm:$0xff] %v5790_v45 }
 0x7fb   : > { %v4735_v54 = vpop.f32.mrf.mxu0  ;;  %v4776_v57 = vpop.f32.mrf.mxu1 }
 0x7fc   : > { %v4803_v55 = vpack.c.bf16 %v4735_v54, %v4735_v54  ;;  %v4805_v58 = vpack.c.bf16 %v4776_v57, %v4776_v57 }
 0x7fd   : > { %v4737_v61 = vpop.f32.mrf.mxu0  ;;  %v4778_v63 = vpop.f32.mrf.mxu1 }
 0x7fe   : > { %v5142_v0 = vadd.bf16 %v5100_v53, %v4803_v55  ;;  %v5144_v62 = vadd.bf16 %v5114_v56, %v4805_v58  ;;  %v4804_v1 = vpack.c.bf16 %v4737_v61, %v4737_v61  ;;  %v4806_v2 = vpack.c.bf16 %v4778_v63, %v4778_v63 }
 0x7ff   : > { %v4739_v3 = vpop.f32.mrf.mxu0  ;;  %v4780_v4 = vpop.f32.mrf.mxu1 }
 0x800   : > { %6477 = vtanh.bf16 %v5142_v0  ;;  %v5143_v6 = vadd.bf16 %v5107_v59, %v4804_v1  ;;  %v5145_v7 = vadd.bf16 %v5121_v60, %v4806_v2 }
 0x801   : > { %6479 = vtanh.bf16 %v5144_v62  ;;  %v4740_v8 = vpop.f32.mrf.mxu0  ;;  %v4781_v9 = vpop.f32.mrf.mxu1 }
 0x802   : > { %6481 = vtanh.bf16 %v5143_v6 }
 0x803   : > { %6483 = vtanh.bf16 %v5145_v7 }
 0x80e   : > { %v6478_v17 = vpop.eup %6477 }
 0x80f   : > { %v6480_v10 = vpop.eup %6479 }
 0x810   : > { %v6482_v11 = vpop.eup %6481 }
 0x811   : > { %v6484_v12 = vpop.eup %6483  ;;  %v5791_v13 = vcombine.low %v6478_v17, %v6482_v11 }
 0x812   : > { %v5792_v14 = vcombine.low %v6480_v10, %v6484_v12 }
 0x813   : > { %5252 = vst [vmem:[%s7066_s26 + $0x50] sm:$0xff] %v5791_v13 }
 0x814   : > { %5253 = vst [vmem:[%s7066_s26 + $0x58] sm:$0xff] %v5792_v14 }
 0x815   : > { %6578 = shalt.err (!%p6575_p9)
}
 0x816   : > { %s6579_s26 = scalar_lea.hbm %s7125_s22, 1536  ;;  %s6583_s0 = scalar_lea.hbm %s7227_s17, 3072 }
 0x817   : > { %p6580_p13 = scmp.ne.s32.totalorder %s7125_s22, %s6579_s26  ;;  %p6584_p0 = scmp.lt.s32.totalorder %s7125_s22, %s7227_s17 }
 0x818   : > { %p6585_p4 = scmp.lt.s32.totalorder %s6583_s0, %s6579_s26 }
 0x819   : > { %p6581_p5 = pnand %p6580_p13, %p7228_p11 }
 0x81a   : > { %p6586_p8 = por %p6585_p4, %p6584_p0 }
 0x81b   : > { %p6582_p10 = pneg %p6581_p5 }
 0x81d   : > { %p6587_p7 = pnand %p6586_p8, %p6582_p10 }
 0x81f   : > { %6590 = shalt.err (!%p6587_p7)
}
 0x820   : > { %6162 = dma.vmem_to_hbm [thread:$0]  (%p7228_p11), %s5270_s21, 1536, %s7125_s22, %s5255_s15  }
 0x821 PF: > { %s7229_s19 = sld [smem:[#allocation12_spill]] }
 0x822   : > { %s7230_s30 = sld [smem:[#allocation15_spill]] }
 0x823   : > { %s7231_s28 = sld [smem:[#allocation14_spill]] }
 0x827   : > { %s5281_s27 = sand.u32 1, %s7229_s19  }
 0x828   : > { %p7232_p1 = scmp.ne.s32.totalorder %s7230_s30, 0  ;;  %s5282_s24 = scalar_lea.sflag [#allocation4], %s5281_s27 }
 0x829   : > { %p7233_p2 = scmp.ge.s32.totalorder %s7231_s28, 2 }
 0x82b   : > { %p6176_p6 = pnand %p7233_p2, %p7232_p1 }
 0x82d   : > { %p6177_p12 = pneg %p6176_p6 }
 0x82f   : > { %6616 = dma.done.wait (%p6177_p12), %s5282_s24, 1536  }
 0x830   : > { %6618 = vsyncadd (%p6177_p12), %s5282_s24, 4294965760  ;;  %s7234_s27 = sld [smem:[#allocation16_spill]]  ;;  %s7237_s24 = smov %s6625_s25 }
 0x831   : > { %s7235_s26 = sld [smem:[#allocation13_spill]] }
 0x832   : > { %s7236_s16 = sld [smem:[#allocation17_spill]] }
 0x836   : > { %p31_p3 = scmp.ge.s32.totalorder %s7234_s27, 4  }
 0x837   : > { %s7238_s25 = smov %s7235_s26 }
 0x838   : > { %s7239_s26 = smov %s7236_s16  ;;  %33 = sbr.rel (!%p31_p3) target bundleno = 13 (0xd), region = 141 }
 0x83d   :  { %5287 = vsyncpa [#allocation3], 1 }
 0x83e   :  { %5289 = vsyncpa [#allocation3 + $0x1], 1 }
 0x83f   :  { %5290 = vsyncpa [#allocation6], 1 }
 0x840   :  { %5291 = vsyncpa [#allocation4], 1 }
 0x841   :  { %5293 = vsyncpa [#allocation4 + $0x1], 1 }

// kernel: tpu_custom_call.1
= control target key start
LH: loop header
LB: loop body
LE: loop exit
PB: predicated region body
PF: predicated region fallthrough
CT: control target
= control target key end

     0   :  { %s7164_s0 = inlined_call_operand.hbm [shape: f32[16,3072], index: 0, kind: input, shape index: {}]   ;;  %s7165_s1 = inlined_call_operand.hbm [shape: bf16[3072,128], index: 1, kind: input, shape index: {}]   ;;  %s7166_s2 = inlined_call_operand.vmem [shape: f32[1,128], index: 2, kind: input, shape index: {}]   ;;  %s7167_s3 = inlined_call_operand.vmem [shape: bf16[128,64], index: 3, kind: input, shape index: {}]   ;;  %s7168_s4 = inlined_call_operand.vmem [shape: f32[1,64], index: 4, kind: input, shape index: {}]   ;;  %s7169_s5 = inlined_call_operand.vmem [shape: bf16[64,12], index: 5, kind: input, shape index: {}]   ;;  %s7170_s6 = inlined_call_operand.vmem [shape: f32[1,12], index: 6, kind: input, shape index: {}]   ;;  %s7171_s7 = inlined_call_operand.vmem [shape: bf16[12,3], index: 7, kind: input, shape index: {}]   ;;  %s7172_s8 = inlined_call_operand.vmem [shape: f32[1,3], index: 8, kind: input, shape index: {}]   ;;  %s7173_s9 = inlined_call_operand.vmem [shape: bf16[3,12], index: 9, kind: input, shape index: {}]   ;;  %s7174_s10 = inlined_call_operand.vmem [shape: f32[1,12], index: 10, kind: input, shape index: {}]   ;;  %s7175_s11 = inlined_call_operand.vmem [shape: bf16[12,64], index: 11, kind: input, shape index: {}]   ;;  %s7176_s12 = inlined_call_operand.vmem [shape: f32[1,64], index: 12, kind: input, shape index: {}]   ;;  %s7177_s13 = inlined_call_operand.vmem [shape: bf16[64,128], index: 13, kind: input, shape index: {}]   ;;  %s7178_s14 = inlined_call_operand.vmem [shape: f32[1,128], index: 14, kind: input, shape index: {}]   ;;  %s7179_s15 = inlined_call_operand.hbm [shape: bf16[128,3072], index: 15, kind: input, shape index: {}]   ;;  %s7180_s16 = inlined_call_operand.vmem [shape: f32[1,3072], index: 16, kind: input, shape index: {}]   ;;  %s7181_s17 = inlined_call_operand.hbm [shape: bf16[16,3072], index: 17, kind: output, shape index: {}]  }
   0x1   :  { %7197 = sst [smem:[#allocation19_spill]] %s7164_s0 }
   0x2   :  { %7198 = sst [smem:[#allocation20_spill]] %s7165_s1 }
   0x3   :  { %7199 = sst [smem:[#allocation21_spill]] %s7178_s14 }
   0x4   :  { %7200 = sst [smem:[#allocation22_spill]] %s7179_s15 }
   0x5   :  { %7201 = sst [smem:[#allocation23_spill]] %s7180_s16 }
   0x6   :  { %7202 = sst [smem:[#allocation24_spill]] %s7181_s17 }
   0x7   :  { %22 = vsyncpa [#allocation3], 0 }
   0x8   :  { %24 = vsyncpa [#allocation3 + $0x1], 0 }
   0x9   :  { %25 = vsyncpa [#allocation6], 0 }
   0xa   :  { %26 = vsyncpa [#allocation4], 0 }
   0xb   :  { %28 = vsyncpa [#allocation4 + $0x1], 0  ;;  %s6737_s24 = smov 0   ;;  %s6739_s25 = smov 0  }
   0xc   :  { %s6741_s26 = smov 0   ;;  %s6743_s27 = smov 0  }
   0xd LB: > { %7203 = sst [smem:[#allocation12_spill]] %s6621_s24  ;;  %s6758_s28 = sadd.s32 4294967295, %s6633_s27   ;;  %s6633_s27 = sphi %s6743_s27, %s7234_s27   ;;  %s6629_s26 = sphi %s6741_s26, %s7239_s26   ;;  %s6625_s25 = sphi %s6739_s25, %s7238_s25   ;;  %s6621_s24 = sphi %s6737_s24, %s7237_s24  }
   0xe   : > { %7204 = sst [smem:[#allocation13_spill]] %s6629_s26  ;;  %s5358_s29 = sadd.s32 4294967294, %s6633_s27  }
   0xf   : > { %7205 = sst [smem:[#allocation14_spill]] %s6633_s27  ;;  %p54_p0 = scmp.ne.s32.totalorder %s6625_s25, %s6621_s24 }
  0x10   : > { %p7186_p1 = scmp.eq.s32.totalorder %s6758_s28, 0  ;;  %p420_p3 = scmp.eq.s32.totalorder %s5358_s29, 1 }
  0x11   : > { %p5359_p5 = scmp.ge.s32.totalorder %s6633_s27, 1  ;;  %p427_p7 = scmp.lt.s32.totalorder %s6633_s27, 3 }
  0x12   : > { %p6767_p4 = por %p7186_p1, %p54_p0  ;;  %p6772_p6 = por %p420_p3, %p54_p0 }
  0x13   : > { %p6777_p8 = pnand %p5359_p5, %p427_p7  ;;  %s6635_s19 = smov [#allocation5]  }
  0x14   : > { %s7206_s0 = scalar_select %p6767_p4, 1, 0 }
  0x15   : > { %s7207_s30 = scalar_select %p6772_p6, 1, 0 }
  0x16   : > { %s7209_s18 = scalar_select %p6777_p8, 1, 0 }
  0x17   : > { %7208 = sst [smem:[#allocation15_spill]] %s7207_s30  ;;  %s439_s1 = sshll.u32 %s6635_s19, 4  ;;  %s440_s1 = int_to_ptr.vmem [resolvable:$true] %s439_s1 }
  0x18   : > { %p6164_p9 = pneg %p6777_p8  ;;  %s6636_s21 = smov [#allocation7]  }
  0x19   : > { %s491_s22 = sshll.u32 %s6636_s21, 4  ;;  %s6496_s23 = scalar_lea.vmem %s440_s1, 24576  ;;  %s492_s22 = int_to_ptr.vmem [resolvable:$true] %s491_s22 }
  0x1a   : > { %p6786_p11 = pnand %p6164_p9, %p7186_p1  ;;  %p6497_p13 = scmp.ne.s32.totalorder %s440_s1, %s6496_s23 }
  0x1b   : > { %p6504_p5 = scmp.lt.s32.totalorder %s440_s1, %s440_s1  ;;  %p6505_p7 = scmp.lt.s32.totalorder %s6496_s23, %s6496_s23 }
  0x1c   : > { %p6487_p12 = pneg %p6786_p11 }
  0x1d   : > { %p6506_p10 = por %p6505_p7, %p6504_p5 }
  0x1e   : > { %p6499_p0 = pnand %p6497_p13, %p6487_p12 }
  0x20   : > { %p6500_p3 = pneg %p6499_p0 }
  0x22   : > { %p6507_p9 = pnand %p6506_p10, %p6500_p3 }
  0x24   : > { %6510 = shalt.err (!%p6507_p9)
}
  0x25   : > { %s6637_s29 = smov 64   ;;  %s6638_s19 = smov 4  }
  0x26   : > { %s7211_s24 = sld [smem:[#allocation20_spill]]  ;;  %s6522_s17 = scalar_lea.vmem %s492_s22, 24576 }
  0x27   : > { %p6523_p1 = scmp.ne.s32.totalorder %s492_s22, %s6522_s17  ;;  %p6530_p2 = scmp.lt.s32.totalorder %s492_s22, %s492_s22 }
  0x28   : > { %p6531_p6 = scmp.lt.s32.totalorder %s6522_s17, %s6522_s17 }
  0x29   : > { %p6525_p13 = pnand %p6523_p1, %p6487_p12 }
  0x2a   : > { %p6532_p5 = por %p6531_p6, %p6530_p2 }
  0x2b   : > { %p6526_p0 = pneg %p6525_p13 }
  0x2c   : > { %6167 = dma.hbm_to_vmem [thread:$0]  (!%p6786_p11), %s7211_s24, 24576, %s440_s1, [#allocation6], %s6637_s29, %s6637_s29, %s6638_s19  }
  0x2d   : > { %p6533_p10 = pnand %p6532_p5, %p6526_p0 }
  0x2f   : > { %6536 = shalt.err (!%p6533_p10)
}
  0x30   : > { %s6639_s23 = smov 1536   ;;  %s6640_s24 = smov 96  }
  0x31   : > { %s7212_s15 = sld [smem:[#allocation22_spill]]  ;;  %s6809_s1 = sadd.s32 1, %s6633_s27  }
  0x32   : > { %7213 = sst [smem:[#allocation16_spill]] %s6809_s1  ;;  %s38_s29 = ssub.s32 %s6633_s27, %s6809_s1 }
  0x33   : > { %p39_p1 = scmp.eq.s32.totalorder %s38_s29, 0  ;;  %s41_s19 = sadd.s32 1, %s6629_s26 }
  0x34   : > { %p48_p2 = scmp.ne.s32.totalorder %s6629_s26, %s6625_s25  ;;  %p49_p6 = scmp.eq.s32.totalorder %s6633_s27, 0 }
  0x35   : > { %s6818_s21 = scalar_select %p39_p1, %s6629_s26, %s41_s19  }
  0x36   : > { %p50_p12 = por %p49_p6, %p48_p2  ;;  %p7215_p3 = scmp.eq.s32.totalorder %s6758_s28, 1 }
  0x37   : > { %6170 = dma.hbm_to_vmem [thread:$0]  (!%p6786_p11), %s7212_s15, 24576, %s492_s22, [#allocation6], %s6639_s23, %s6639_s23, %s6640_s24  }
  0x38   : > { %7214 = sst [smem:[#allocation17_spill]] %s6818_s21  ;;  %p6822_p7 = por %p7215_p3, %p48_p2 }
  0x39   : > { %p6181_p9 = scmp.lt.s32.totalorder %s6633_s27, 2  ;;  %s508_s20 = sand.u32 1, %s6629_s26  }
  0x3a   : > { %s7216_s16 = scalar_select %p6822_p7, 1, 0 }
  0x3b   : > { %s6147_s30 = smul.u32 192, %s508_s20  ;;  %p6829_p11 = pnand %p6181_p9, %p50_p12 }
  0x3c   : > { %7217 = sst [smem:[#allocation18_spill]] %s7216_s16  ;;  %s6148_s22 = smul.u32 3072, %s6633_s27 }
  0x3d   : > { %s7219_s29 = sld [smem:[#allocation19_spill]]  ;;  %s512_s15 = scalar_lea.vmem [#allocation2], %s6147_s30 }
  0x3e   : > { %s520_s21 = sshll.u32 %s512_s15, 4  ;;  %s509_s1 = scalar_lea.sflag [#allocation3], %s508_s20  ;;  %s521_s21 = int_to_ptr.vmem [resolvable:$true] %s520_s21 }
  0x3f   : > { %p6539_p0 = pneg %p6829_p11 }
  0x43   : > { %s6836_s19 = scalar_lea.hbm %s7219_s29, %s6148_s22  ;;  %s6542_s24 = scalar_lea.hbm %s7219_s29, 6144 }
  0x44   : > { %s6537_s26 = scalar_lea.hbm %s6836_s19, 3072  ;;  %p6543_p1 = scmp.lt.s32.totalorder %s6836_s19, %s7219_s29 }
  0x45   : > { %p6538_p13 = scmp.ne.s32.totalorder %s6836_s19, %s6537_s26  ;;  %p6544_p2 = scmp.lt.s32.totalorder %s6542_s24, %s6537_s26 }
  0x47   : > { %p6540_p5 = pnand %p6539_p0, %p6538_p13  ;;  %p6545_p6 = por %p6544_p2, %p6543_p1 }
  0x49   : > { %p6541_p10 = pneg %p6540_p5 }
  0x4b   : > { %p6546_p12 = pnand %p6545_p6, %p6541_p10 }
  0x4d   : > { %6549 = shalt.err (!%p6546_p12)
}
  0x4e   : > { %s6550_s15 = scalar_lea.vmem %s521_s21, 3072  ;;  %s6641_s20 = smov [#allocation2]  }
  0x4f   : > { %p6551_p3 = scmp.ne.s32.totalorder %s521_s21, %s6550_s15  ;;  %s6555_s30 = sshll.u32 %s6641_s20, 4  ;;  %s6556_s30 = int_to_ptr.vmem [resolvable:$false] %s6555_s30 }
  0x50   : > { %s6557_s14 = scalar_lea.vmem %s6556_s30, 6144  ;;  %p6558_p13 = scmp.lt.s32.totalorder %s521_s21, %s6556_s30 }
  0x51   : > { %p6553_p9 = pnand %p6551_p3, %p6539_p0  ;;  %p6559_p5 = scmp.lt.s32.totalorder %s6557_s14, %s6550_s15 }
  0x53   : > { %p6554_p7 = pneg %p6553_p9  ;;  %p6560_p4 = por %p6559_p5, %p6558_p13 }
  0x55   : > { %p6561_p8 = pnand %p6560_p4, %p6554_p7 }
  0x57   : > { %6564 = shalt.err (!%p6561_p8)
}
  0x58   : > { %6174 = dma.hbm_to_vmem [thread:$0]  (!%p6829_p11), %s6836_s19, 3072, %s521_s21, %s509_s1  }
  0x59   : > { %p7220_p10 = scmp.ne.s32.totalorder %s7209_s18, 0 }
  0x5a   : > { %s6855_s16 = sand.u32 (!%p7220_p10), 1, %s6625_s25   ;;  %p7221_p0 = scmp.ne.s32.totalorder (!%p7220_p10), %s7206_s0, 0 }
  0x5b   : > { %529 = sbr.rel (%p7220_p10) target bundleno = 2081 (0x821), region = 88  ;;  %s532_s27 = scalar_lea.sflag (!%p7220_p10), [#allocation3], %s6855_s16 }
  0x5c   : > { %s6149_s26 = smul.u32 (!%p7220_p10), 192, %s6855_s16 }
  0x5e   : > { %s6859_s24 = scalar_lea.vmem (!%p7220_p10), [#allocation2], %s6149_s26 }
  0x60   : > { %6608 = dma.done.wait (%p7221_p0), %s532_s27, 3072  }
  0x61   : > { %6610 = vsyncadd (%p7221_p0), %s532_s27, 4294964224  ;;  %p7222_p4 = scmp.eq.s32.totalorder %s6758_s28, 0 }
  0x63   : > { %6612 = dma.done.wait (%p7222_p4), [#allocation6], 49152   ;;  %p7223_p8 = pmov %p7222_p4 }
  0x64   : > { %v6227_v0 = vld [vmem:[#allocation5 + $0x78] sm:$0xff]   ;;  %v6231_v4 = vld [vmem:[#allocation5 + $0x70] sm:$0xff]   ;;  %v6235_v8 = vld [vmem:[#allocation5 + $0x68] sm:$0xff]   ;;  %vm6643_vm0 = vmmov 0   ;;  %vm2884_vm1 = vcmask 1045504   ;;  %vm2820_vm2 = vcmask 523264  }
  0x65   : > { %6614 = vsyncadd (%p7223_p8), [#allocation6], 4294918144  ;;  %v6228_v1 = vld [vmem:[#allocation5 + $0xf8] sm:$0xff]   ;;  %5796 = vmatprep.subr.bf16.mxu0 %v6227_v0  ;;  %v6232_v5 = vld [vmem:[#allocation5 + $0xf0] sm:$0xff]   ;;  %vm2941_vm3 = vcmask 1040384   ;;  %vm2942_vm4 = vcmask 1041408  }
  0x66   : > { %v6229_v2 = vld [vmem:[#allocation5 + $0x38] sm:$0xff]   ;;  %5818 = vmatprep.subr.bf16.mxu1 %v6228_v1  ;;  %v6233_v6 = vld [vmem:[#allocation5 + $0x30] sm:$0xff]   ;;  %v6236_v9 = vld [vmem:[#allocation5 + $0xe8] sm:$0xff]   ;;  %vm2880_vm5 = vcmask 97280   ;;  %vm2937_vm6 = vcmask 23552   ;;  %s7224_s17 = sld [smem:[#allocation21_spill]] }
  0x67   : > { %v6230_v3 = vld [vmem:[#allocation5 + $0xb8] sm:$0xff]   ;;  %5797 = vmatpush3.bf16.msra.mxu0 %v6229_v2  ;;  %v6234_v7 = vld [vmem:[#allocation5 + $0xb0] sm:$0xff]   ;;  %v6237_v10 = vld [vmem:[#allocation5 + $0x28] sm:$0xff]   ;;  %s7225_s20 = sld [smem:[#allocation23_spill]]  ;;  %s6150_s30 = smul.u32 96, %s6855_s16 }
  0x68   : > { %5819 = vmatpush3.bf16.msra.mxu1 %v6230_v3  ;;  %5798 = vmatprep.subr.bf16.mxu0 %v6231_v4  ;;  %v6238_v11 = vld [vmem:[#allocation5 + $0xa8] sm:$0xff]   ;;  %v6239_v12 = vld [vmem:[#allocation5 + $0x60] sm:$0xff]   ;;  %v6243_v16 = vld [vmem:[#allocation5 + $0x58] sm:$0xff]   ;;  %s7226_s18 = sld [smem:[#allocation18_spill]]  ;;  %s6151_s1 = smul.u32 1536, %s6758_s28 }
  0x69   : > { %5820 = vmatprep.subr.bf16.mxu1 %v6232_v5  ;;  %v6240_v13 = vld [vmem:[#allocation5 + $0xe0] sm:$0xff]   ;;  %v6244_v17 = vld [vmem:[#allocation5 + $0xd8] sm:$0xff]   ;;  %v6247_v20 = vld [vmem:[#allocation5 + $0x50] sm:$0xff]   ;;  %s7066_s26 = scalar_lea.vmem [#allocation8], %s6150_s30  ;;  %s5255_s15 = scalar_lea.sflag [#allocation4], %s6855_s16 }
  0x6a   : > { %v6241_v14 = vld [vmem:[#allocation5 + $0x20] sm:$0xff]   ;;  %v6245_v18 = vld [vmem:[#allocation5 + $0x18] sm:$0xff]   ;;  %v6248_v21 = vld [vmem:[#allocation5 + $0xd0] sm:$0xff]   ;;  %s5269_s21 = sshll.u32 %s7066_s26, 4  ;;  %s6646_s28 = smov [#allocation8]   ;;  %s5270_s21 = int_to_ptr.vmem [resolvable:$true] %s5269_s21 }
  0x6b   : > { %5799 = vmatpush3.bf16.msra.mxu0 %v6233_v6  ;;  %v6242_v15 = vld [vmem:[#allocation5 + $0xa0] sm:$0xff]   ;;  %v6246_v19 = vld [vmem:[#allocation5 + $0x98] sm:$0xff]   ;;  %v6249_v22 = vld [vmem:[#allocation5 + $0x10] sm:$0xff]   ;;  %s6565_s30 = scalar_lea.vmem %s5270_s21, 1536  ;;  %s6569_s27 = sshll.u32 %s6646_s28, 4  ;;  %s6570_s27 = int_to_ptr.vmem [resolvable:$false] %s6569_s27 }
  0x6c   : > { %5821 = vmatpush3.bf16.msra.mxu1 %v6234_v7  ;;  %5800 = vmatprep.subr.bf16.mxu0 %v6235_v8  ;;  %v6250_v23 = vld [vmem:[#allocation5 + $0x90] sm:$0xff]   ;;  %v6251_v24 = vld [vmem:[#allocation5 + $0x48] sm:$0xff]   ;;  %v6255_v28 = vld [vmem:[#allocation5 + $0x40] sm:$0xff]   ;;  %p6566_p7 = scmp.ne.s32.totalorder %s5270_s21, %s6565_s30  ;;  %p6572_p6 = scmp.lt.s32.totalorder %s5270_s21, %s6570_s27 }
  0x6d   : > { %5822 = vmatprep.subr.bf16.mxu1 %v6236_v9  ;;  %v6252_v25 = vld [vmem:[#allocation5 + $0xc8] sm:$0xff]   ;;  %v6256_v29 = vld [vmem:[#allocation5 + $0xc0] sm:$0xff]   ;;  %v598_v33 = vld [vmem:[%s6859_s24 + $0x18] sm:$0xff] }
  0x6e   : > { %v6253_v26 = vld [vmem:[#allocation5 + $0x8] sm:$0xff]   ;;  %v6257_v30 = vld [vmem:[#allocation5] sm:$0xff]   ;;  %v622_v36 = vpack.c.bf16 %v598_v33, %v598_v33  ;;  %v597_v38 = vld [vmem:[%s6859_s24 + $0x10] sm:$0xff]  ;;  %p7228_p11 = scmp.ne.s32.totalorder %s7226_s18, 0 }
  0x6f   : > { %5801 = vmatpush3.bf16.msra.mxu0 %v6237_v10  ;;  %v6254_v27 = vld [vmem:[#allocation5 + $0x88] sm:$0xff]   ;;  %v6258_v31 = vld [vmem:[#allocation5 + $0x80] sm:$0xff]   ;;  %v621_v39 = vpack.c.bf16 %v597_v38, %v597_v38  ;;  %v6259_v40 = vld [vmem:[#allocation5 + $0x178] sm:$0xff]  }
  0x70   : > { %5823 = vmatpush3.bf16.msra.mxu1 %v6238_v11  ;;  %5802 = vmatprep.subr.bf16.mxu0 %v6239_v12  ;;  %v596_v32 = vld [vmem:[%s6859_s24 + $0x8] sm:$0xff]  ;;  %v595_v34 = vld [vmem:[%s6859_s24] sm:$0xff]  ;;  %v6260_v41 = vld [vmem:[#allocation5 + $0x1f8] sm:$0xff]   ;;  %p6567_p1 = pnand %p6566_p7, %p7228_p11 }
  0x71   : > { %5824 = vmatprep.subr.bf16.mxu1 %v6240_v13  ;;  %v620_v35 = vpack.c.bf16 %v596_v32, %v596_v32  ;;  %v619_v37 = vpack.c.bf16 %v595_v34, %v595_v34  ;;  %2258 = vmatprep.mubr.bf16.mxu1 %v622_v36  ;;  %v6261_v42 = vld [vmem:[#allocation5 + $0x138] sm:$0xff]   ;;  %v6263_v44 = vld [vmem:[#allocation5 + $0x170] sm:$0xff]   ;;  %v6267_v48 = vld [vmem:[#allocation5 + $0x168] sm:$0xff]  }
  0x72   : > { %v6262_v43 = vld [vmem:[#allocation5 + $0x1b8] sm:$0xff]   ;;  %v6264_v45 = vld [vmem:[#allocation5 + $0x1f0] sm:$0xff]   ;;  %v6268_v49 = vld [vmem:[#allocation5 + $0x1e8] sm:$0xff]   ;;  %p6568_p2 = pneg %p6567_p1 }
  0x73   : > { %5803 = vmatpush3.bf16.msra.mxu0 %v6241_v14  ;;  %2218 = vmatprep.mubr.bf16.mxu0 %v620_v35  ;;  %v6265_v46 = vld [vmem:[#allocation5 + $0x130] sm:$0xff]   ;;  %v6269_v50 = vld [vmem:[#allocation5 + $0x128] sm:$0xff]   ;;  %v6271_v52 = vld [vmem:[#allocation5 + $0x160] sm:$0xff]  }
  0x74   : > { %5825 = vmatpush3.bf16.msra.mxu1 %v6242_v15  ;;  %5804 = vmatprep.subr.bf16.mxu0 %v6243_v16  ;;  %v6266_v47 = vld [vmem:[#allocation5 + $0x1b0] sm:$0xff]   ;;  %v6270_v51 = vld [vmem:[#allocation5 + $0x1a8] sm:$0xff]   ;;  %v6272_v53 = vld [vmem:[#allocation5 + $0x1e0] sm:$0xff]  }
  0x75   : > { %5826 = vmatprep.subr.bf16.mxu1 %v6244_v17  ;;  %v6273_v54 = vld [vmem:[#allocation5 + $0x120] sm:$0xff]   ;;  %v6275_v56 = vld [vmem:[#allocation5 + $0x158] sm:$0xff]   ;;  %v6279_v60 = vld [vmem:[#allocation5 + $0x150] sm:$0xff]  }
  0x76   : > { %v6274_v55 = vld [vmem:[#allocation5 + $0x1a0] sm:$0xff]   ;;  %v6276_v57 = vld [vmem:[#allocation5 + $0x1d8] sm:$0xff]   ;;  %v6280_v61 = vld [vmem:[#allocation5 + $0x1d0] sm:$0xff]  }
  0x77   : > { %5805 = vmatpush3.bf16.msra.mxu0 %v6245_v18  ;;  %v6277_v58 = vld [vmem:[#allocation5 + $0x118] sm:$0xff]   ;;  %v6281_v62 = vld [vmem:[#allocation5 + $0x110] sm:$0xff]   ;;  %v6283_v0 = vld [vmem:[#allocation5 + $0x148] sm:$0xff]  }
  0x78   : > { %5827 = vmatpush3.bf16.msra.mxu1 %v6246_v19  ;;  %5806 = vmatprep.subr.bf16.mxu0 %v6247_v20  ;;  %v6278_v59 = vld [vmem:[#allocation5 + $0x198] sm:$0xff]   ;;  %v6282_v63 = vld [vmem:[#allocation5 + $0x190] sm:$0xff]   ;;  %v6284_v1 = vld [vmem:[#allocation5 + $0x1c8] sm:$0xff]  }
  0x79   : > { %5828 = vmatprep.subr.bf16.mxu1 %v6248_v21  ;;  %v6285_v2 = vld [vmem:[#allocation5 + $0x108] sm:$0xff]   ;;  %v6287_v4 = vld [vmem:[#allocation5 + $0x140] sm:$0xff]   ;;  %v602_v9 = vld [vmem:[%s6859_s24 + $0x38] sm:$0xff] }
  0x7a   : > { %v6286_v3 = vld [vmem:[#allocation5 + $0x188] sm:$0xff]   ;;  %v6288_v5 = vld [vmem:[#allocation5 + $0x1c0] sm:$0xff]   ;;  %v626_v11 = vpack.c.bf16 %v602_v9, %v602_v9  ;;  %v601_v13 = vld [vmem:[%s6859_s24 + $0x30] sm:$0xff] }
  0x7b   : > { %5807 = vmatpush3.bf16.msra.mxu0 %v6249_v22  ;;  %v6289_v6 = vld [vmem:[#allocation5 + $0x100] sm:$0xff]   ;;  %v600_v8 = vld [vmem:[%s6859_s24 + $0x28] sm:$0xff]  ;;  %v625_v15 = vpack.c.bf16 %v601_v13, %v601_v13  ;;  %v6291_v16 = vld [vmem:[#allocation5 + $0x278] sm:$0xff]  }
  0x7c   : > { %5829 = vmatpush3.bf16.msra.mxu1 %v6250_v23  ;;  %5808 = vmatprep.subr.bf16.mxu0 %v6251_v24  ;;  %v6290_v7 = vld [vmem:[#allocation5 + $0x180] sm:$0xff]   ;;  %v624_v10 = vpack.c.bf16 %v600_v8, %v600_v8  ;;  %v6292_v17 = vld [vmem:[#allocation5 + $0x2f8] sm:$0xff]   ;;  %v6295_v20 = vld [vmem:[#allocation5 + $0x270] sm:$0xff]  }
  0x7d   : > { %5830 = vmatprep.subr.bf16.mxu1 %v6252_v25  ;;  %v599_v12 = vld [vmem:[%s6859_s24 + $0x20] sm:$0xff]  ;;  %v6293_v18 = vld [vmem:[#allocation5 + $0x238] sm:$0xff]   ;;  %v6296_v21 = vld [vmem:[#allocation5 + $0x2f0] sm:$0xff]  }
  0x7e   : > { %v623_v14 = vpack.c.bf16 %v599_v12, %v599_v12  ;;  %v6294_v19 = vld [vmem:[#allocation5 + $0x2b8] sm:$0xff]   ;;  %v6297_v22 = vld [vmem:[#allocation5 + $0x230] sm:$0xff]   ;;  %v6299_v24 = vld [vmem:[#allocation5 + $0x268] sm:$0xff]  }
  0x7f   : > { %5809 = vmatpush3.bf16.msra.mxu0 %v6253_v26  ;;  %v6298_v23 = vld [vmem:[#allocation5 + $0x2b0] sm:$0xff]   ;;  %v6300_v25 = vld [vmem:[#allocation5 + $0x2e8] sm:$0xff]   ;;  %v6307_v32 = vld [vmem:[#allocation5 + $0x258] sm:$0xff]  }
  0x80   : > { %5831 = vmatpush3.bf16.msra.mxu1 %v6254_v27  ;;  %5810 = vmatprep.subr.bf16.mxu0 %v6255_v28  ;;  %v6301_v26 = vld [vmem:[#allocation5 + $0x228] sm:$0xff]   ;;  %v6303_v28 = vld [vmem:[#allocation5 + $0x260] sm:$0xff]   ;;  %v6308_v33 = vld [vmem:[#allocation5 + $0x2d8] sm:$0xff]  }
  0x81   : > { %5832 = vmatprep.subr.bf16.mxu1 %v6256_v29  ;;  %v6302_v27 = vld [vmem:[#allocation5 + $0x2a8] sm:$0xff]   ;;  %v6304_v29 = vld [vmem:[#allocation5 + $0x2e0] sm:$0xff]   ;;  %v6309_v34 = vld [vmem:[#allocation5 + $0x218] sm:$0xff]  }
  0x82   : > { %v6310_v35 = vld [vmem:[#allocation5 + $0x298] sm:$0xff]   ;;  %v6311_v36 = vld [vmem:[#allocation5 + $0x250] sm:$0xff]  }
  0x83   : > { %5811 = vmatpush3.bf16.msra.mxu0 %v6257_v30  ;;  %v6305_v30 = vld [vmem:[#allocation5 + $0x220] sm:$0xff]   ;;  %v6313_v38 = vld [vmem:[#allocation5 + $0x210] sm:$0xff]   ;;  %v6339_v8 = vld [vmem:[#allocation5 + $0x358] sm:$0xff]  }
  0x84   : > { %5833 = vmatpush3.bf16.msra.mxu1 %v6258_v31  ;;  %5840 = vmatprep.subr.bf16.mxu0 %v6259_v40  ;;  %v6306_v31 = vld [vmem:[#allocation5 + $0x2a0] sm:$0xff]   ;;  %v6315_v40 = vld [vmem:[#allocation5 + $0x248] sm:$0xff]   ;;  %v6340_v9 = vld [vmem:[#allocation5 + $0x3d8] sm:$0xff]  }
  0x85   : > { %5862 = vmatprep.subr.bf16.mxu1 %v6260_v41  ;;  %v6316_v41 = vld [vmem:[#allocation5 + $0x2c8] sm:$0xff]   ;;  %v6343_v12 = vld [vmem:[#allocation5 + $0x350] sm:$0xff]  }
  0x86   : > { %2219 = vmatmul.mubr.bf16.vlgmr.msra.gmra.mxu0 %v619_v37  ;;  %v6312_v37 = vld [vmem:[#allocation5 + $0x2d0] sm:$0xff]  }
  0x87   : > { %2259 = vmatmul.mubr.bf16.vlgmr.msra.gmra.mxu1 %v621_v39  ;;  %5841 = vmatpush3.bf16.msra.mxu0 %v6261_v42  ;;  %v6314_v39 = vld [vmem:[#allocation5 + $0x290] sm:$0xff]   ;;  %v6317_v42 = vld [vmem:[#allocation5 + $0x208] sm:$0xff]  }
  0x88   : > { %5863 = vmatpush3.bf16.msra.mxu1 %v6262_v43  ;;  %5842 = vmatprep.subr.bf16.mxu0 %v6263_v44  ;;  %v6318_v43 = vld [vmem:[#allocation5 + $0x288] sm:$0xff]   ;;  %v6319_v44 = vld [vmem:[#allocation5 + $0x240] sm:$0xff]   ;;  %v6344_v13 = vld [vmem:[#allocation5 + $0x3d0] sm:$0xff]  }
  0x89   : > { %5864 = vmatprep.subr.bf16.mxu1 %v6264_v45  ;;  %2298 = vmatprep.mubr.bf16.mxu0 %v624_v10  ;;  %v6320_v45 = vld [vmem:[#allocation5 + $0x2c0] sm:$0xff]   ;;  %v6341_v10 = vld [vmem:[#allocation5 + $0x318] sm:$0xff]  }
  0x8a   : > { %2338 = vmatprep.mubr.bf16.mxu1 %v626_v11  ;;  %v6342_v11 = vld [vmem:[#allocation5 + $0x398] sm:$0xff]  }
  0x8b   : > { %5843 = vmatpush3.bf16.msra.mxu0 %v6265_v46  ;;  %v6321_v46 = vld [vmem:[#allocation5 + $0x200] sm:$0xff]  }
  0x8c   : > { %5865 = vmatpush3.bf16.msra.mxu1 %v6266_v47  ;;  %5844 = vmatprep.subr.bf16.mxu0 %v6267_v48  ;;  %v6322_v47 = vld [vmem:[#allocation5 + $0x280] sm:$0xff]   ;;  %v604_v48 = vld [vmem:[%s6859_s24 + $0x48] sm:$0xff] }
  0x8d   : > { %5866 = vmatprep.subr.bf16.mxu1 %v6268_v49  ;;  %v628_v49 = vpack.c.bf16 %v604_v48, %v604_v48  ;;  %v6371_v48 = vld [vmem:[#allocation5 + $0x458] sm:$0xff]  }
  0x8f   : > { %5845 = vmatpush3.bf16.msra.mxu0 %v6269_v50  ;;  %v606_v50 = vld [vmem:[%s6859_s24 + $0x58] sm:$0xff] }
  0x90   : > { %5867 = vmatpush3.bf16.msra.mxu1 %v6270_v51  ;;  %5846 = vmatprep.subr.bf16.mxu0 %v6271_v52  ;;  %v603_v51 = vld [vmem:[%s6859_s24 + $0x40] sm:$0xff]  ;;  %v605_v52 = vld [vmem:[%s6859_s24 + $0x50] sm:$0xff] }
  0x91   : > { %5868 = vmatprep.subr.bf16.mxu1 %v6272_v53  ;;  %v630_v53 = vpack.c.bf16 %v606_v50, %v606_v50  ;;  %v6373_v50 = vld [vmem:[#allocation5 + $0x418] sm:$0xff]  }
  0x93   : > { %5847 = vmatpush3.bf16.msra.mxu0 %v6273_v54  ;;  %v627_v54 = vpack.c.bf16 %v603_v51, %v603_v51  ;;  %v6374_v51 = vld [vmem:[#allocation5 + $0x498] sm:$0xff]  }
  0x94   : > { %5869 = vmatpush3.bf16.msra.mxu1 %v6274_v55  ;;  %5848 = vmatprep.subr.bf16.mxu0 %v6275_v56  ;;  %v629_v55 = vpack.c.bf16 %v605_v52, %v605_v52  ;;  %v6323_v56 = vld [vmem:[#allocation5 + $0x378] sm:$0xff]   ;;  %v6375_v52 = vld [vmem:[#allocation5 + $0x450] sm:$0xff]  }
  0x95   : > { %5870 = vmatprep.subr.bf16.mxu1 %v6276_v57  ;;  %v6324_v57 = vld [vmem:[#allocation5 + $0x3f8] sm:$0xff]  }
  0x97   : > { %5849 = vmatpush3.bf16.msra.mxu0 %v6277_v58  ;;  %v6325_v58 = vld [vmem:[#allocation5 + $0x338] sm:$0xff]  }
  0x98   : > { %5871 = vmatpush3.bf16.msra.mxu1 %v6278_v59  ;;  %5850 = vmatprep.subr.bf16.mxu0 %v6279_v60  ;;  %v6326_v59 = vld [vmem:[#allocation5 + $0x3b8] sm:$0xff]   ;;  %v6327_v60 = vld [vmem:[#allocation5 + $0x370] sm:$0xff]  }
  0x99   : > { %5872 = vmatprep.subr.bf16.mxu1 %v6280_v61  ;;  %v6328_v61 = vld [vmem:[#allocation5 + $0x3f0] sm:$0xff]  }
  0x9b   : > { %5851 = vmatpush3.bf16.msra.mxu0 %v6281_v62  ;;  %v6329_v62 = vld [vmem:[#allocation5 + $0x330] sm:$0xff]  }
  0x9c   : > { %5873 = vmatpush3.bf16.msra.mxu1 %v6282_v63  ;;  %5852 = vmatprep.subr.bf16.mxu0 %v6283_v0  ;;  %v6330_v63 = vld [vmem:[#allocation5 + $0x3b0] sm:$0xff]   ;;  %v6331_v0 = vld [vmem:[#allocation5 + $0x368] sm:$0xff]  }
  0x9d   : > { %5874 = vmatprep.subr.bf16.mxu1 %v6284_v1  ;;  %v6332_v1 = vld [vmem:[#allocation5 + $0x3e8] sm:$0xff]  }
  0x9f   : > { %5853 = vmatpush3.bf16.msra.mxu0 %v6285_v2  ;;  %v6333_v2 = vld [vmem:[#allocation5 + $0x328] sm:$0xff]  }
  0xa0   : > { %5875 = vmatpush3.bf16.msra.mxu1 %v6286_v3  ;;  %5854 = vmatprep.subr.bf16.mxu0 %v6287_v4  ;;  %v6334_v3 = vld [vmem:[#allocation5 + $0x3a8] sm:$0xff]   ;;  %v6335_v4 = vld [vmem:[#allocation5 + $0x360] sm:$0xff]  }
  0xa1   : > { %5876 = vmatprep.subr.bf16.mxu1 %v6288_v5  ;;  %v6336_v5 = vld [vmem:[#allocation5 + $0x3e0] sm:$0xff]  }
  0xa3   : > { %5855 = vmatpush3.bf16.msra.mxu0 %v6289_v6  ;;  %v6337_v6 = vld [vmem:[#allocation5 + $0x320] sm:$0xff]  }
  0xa4   : > { %5877 = vmatpush3.bf16.msra.mxu1 %v6290_v7  ;;  %5884 = vmatprep.subr.bf16.mxu0 %v6291_v16  ;;  %v6338_v7 = vld [vmem:[#allocation5 + $0x3a0] sm:$0xff]   ;;  %v6347_v16 = vld [vmem:[#allocation5 + $0x348] sm:$0xff]  }
  0xa5   : > { %5906 = vmatprep.subr.bf16.mxu1 %v6292_v17  ;;  %v6348_v17 = vld [vmem:[#allocation5 + $0x3c8] sm:$0xff]  }
  0xa6   : > { %2299 = vmatmul.mubr.bf16.vlgmr.msra.gmra.mxu0 %v623_v14  ;;  %v6345_v14 = vld [vmem:[#allocation5 + $0x310] sm:$0xff]  }
  0xa7   : > { %2339 = vmatmul.mubr.bf16.vlgmr.msra.gmra.mxu1 %v625_v15  ;;  %5885 = vmatpush3.bf16.msra.mxu0 %v6293_v18  ;;  %v6346_v15 = vld [vmem:[#allocation5 + $0x390] sm:$0xff]   ;;  %v6349_v18 = vld [vmem:[#allocation5 + $0x308] sm:$0xff]  }
  0xa8   : > { %5907 = vmatpush3.bf16.msra.mxu1 %v6294_v19  ;;  %5886 = vmatprep.subr.bf16.mxu0 %v6295_v20  ;;  %v6350_v19 = vld [vmem:[#allocation5 + $0x388] sm:$0xff]   ;;  %v6351_v20 = vld [vmem:[#allocation5 + $0x340] sm:$0xff]  }
  0xa9   : > { %5908 = vmatprep.subr.bf16.mxu1 %v6296_v21  ;;  %2378 = vmatprep.mubr.bf16.mxu0 %v628_v49  ;;  %v6352_v21 = vld [vmem:[#allocation5 + $0x3c0] sm:$0xff]   ;;  %v6372_v49 = vld [vmem:[#allocation5 + $0x4d8] sm:$0xff]  }
  0xaa   : > { %2418 = vmatprep.mubr.bf16.mxu1 %v630_v53  ;;  %v6376_v53 = vld [vmem:[#allocation5 + $0x4d0] sm:$0xff]  }
  0xab   : > { %5887 = vmatpush3.bf16.msra.mxu0 %v6297_v22  ;;  %v6353_v22 = vld [vmem:[#allocation5 + $0x300] sm:$0xff]  }
  0xac   : > { %5909 = vmatpush3.bf16.msra.mxu1 %v6298_v23  ;;  %5888 = vmatprep.subr.bf16.mxu0 %v6299_v24  ;;  %v6354_v23 = vld [vmem:[#allocation5 + $0x380] sm:$0xff]   ;;  %v608_v24 = vld [vmem:[%s6859_s24 + $0x68] sm:$0xff] }
  0xad   : > { %5910 = vmatprep.subr.bf16.mxu1 %v6300_v25  ;;  %v610_v25 = vld [vmem:[%s6859_s24 + $0x78] sm:$0xff] }
  0xaf   : > { %5889 = vmatpush3.bf16.msra.mxu0 %v6301_v26  ;;  %v607_v26 = vld [vmem:[%s6859_s24 + $0x60] sm:$0xff] }
  0xb0   : > { %5911 = vmatpush3.bf16.msra.mxu1 %v6302_v27  ;;  %5890 = vmatprep.subr.bf16.mxu0 %v6303_v28  ;;  %v632_v27 = vpack.c.bf16 %v608_v24, %v608_v24  ;;  %v634_v28 = vpack.c.bf16 %v610_v25, %v610_v25  ;;  %v6403_v24 = vld [vmem:[#allocation5 + $0x558] sm:$0xff]  }
  0xb1   : > { %5912 = vmatprep.subr.bf16.mxu1 %v6304_v29  ;;  %v631_v29 = vpack.c.bf16 %v607_v26, %v607_v26  ;;  %v6404_v25 = vld [vmem:[#allocation5 + $0x5d8] sm:$0xff]  }
  0xb2   : > { %v6405_v26 = vld [vmem:[#allocation5 + $0x518] sm:$0xff]  }
  0xb3   : > { %5891 = vmatpush3.bf16.msra.mxu0 %v6305_v30  ;;  %v609_v30 = vld [vmem:[%s6859_s24 + $0x70] sm:$0xff] }
  0xb4   : > { %5913 = vmatpush3.bf16.msra.mxu1 %v6306_v31  ;;  %5892 = vmatprep.subr.bf16.mxu0 %v6307_v32  ;;  %v633_v31 = vpack.c.bf16 %v609_v30, %v609_v30  ;;  %v6355_v32 = vld [vmem:[#allocation5 + $0x478] sm:$0xff]   ;;  %v6409_v30 = vld [vmem:[#allocation5 + $0x510] sm:$0xff]  }
  0xb5   : > { %5914 = vmatprep.subr.bf16.mxu1 %v6308_v33  ;;  %v6356_v33 = vld [vmem:[#allocation5 + $0x4f8] sm:$0xff]  }
  0xb7   : > { %5893 = vmatpush3.bf16.msra.mxu0 %v6309_v34  ;;  %v6357_v34 = vld [vmem:[#allocation5 + $0x438] sm:$0xff]  }
  0xb8   : > { %5915 = vmatpush3.bf16.msra.mxu1 %v6310_v35  ;;  %5894 = vmatprep.subr.bf16.mxu0 %v6311_v36  ;;  %v6358_v35 = vld [vmem:[#allocation5 + $0x4b8] sm:$0xff]   ;;  %v6359_v36 = vld [vmem:[#allocation5 + $0x470] sm:$0xff]  }
  0xb9   : > { %5916 = vmatprep.subr.bf16.mxu1 %v6312_v37  ;;  %v6360_v37 = vld [vmem:[#allocation5 + $0x4f0] sm:$0xff]  }
  0xbb   : > { %5895 = vmatpush3.bf16.msra.mxu0 %v6313_v38  ;;  %v6361_v38 = vld [vmem:[#allocation5 + $0x430] sm:$0xff]  }
  0xbc   : > { %5917 = vmatpush3.bf16.msra.mxu1 %v6314_v39  ;;  %5896 = vmatprep.subr.bf16.mxu0 %v6315_v40  ;;  %v6362_v39 = vld [vmem:[#allocation5 + $0x4b0] sm:$0xff]   ;;  %v6363_v40 = vld [vmem:[#allocation5 + $0x468] sm:$0xff]  }
  0xbd   : > { %5918 = vmatprep.subr.bf16.mxu1 %v6316_v41  ;;  %v6364_v41 = vld [vmem:[#allocation5 + $0x4e8] sm:$0xff]  }
  0xbf   : > { %5897 = vmatpush3.bf16.msra.mxu0 %v6317_v42  ;;  %v6365_v42 = vld [vmem:[#allocation5 + $0x428] sm:$0xff]  }
  0xc0   : > { %5919 = vmatpush3.bf16.msra.mxu1 %v6318_v43  ;;  %5898 = vmatprep.subr.bf16.mxu0 %v6319_v44  ;;  %v6366_v43 = vld [vmem:[#allocation5 + $0x4a8] sm:$0xff]   ;;  %v6367_v44 = vld [vmem:[#allocation5 + $0x460] sm:$0xff]  }
  0xc1   : > { %5920 = vmatprep.subr.bf16.mxu1 %v6320_v45  ;;  %v6368_v45 = vld [vmem:[#allocation5 + $0x4e0] sm:$0xff]  }
  0xc3   : > { %5899 = vmatpush3.bf16.msra.mxu0 %v6321_v46  ;;  %v6369_v46 = vld [vmem:[#allocation5 + $0x420] sm:$0xff]  }
  0xc4   : > { %5921 = vmatpush3.bf16.msra.mxu1 %v6322_v47  ;;  %5928 = vmatprep.subr.bf16.mxu0 %v6323_v56  ;;  %v6370_v47 = vld [vmem:[#allocation5 + $0x4a0] sm:$0xff]   ;;  %v6379_v56 = vld [vmem:[#allocation5 + $0x448] sm:$0xff]  }
  0xc5   : > { %5950 = vmatprep.subr.bf16.mxu1 %v6324_v57  ;;  %v6380_v57 = vld [vmem:[#allocation5 + $0x4c8] sm:$0xff]  }
  0xc6   : > { %2379 = vmatmul.mubr.bf16.vlgmr.msra.gmra.mxu0 %v627_v54  ;;  %v6377_v54 = vld [vmem:[#allocation5 + $0x410] sm:$0xff]  }
  0xc7   : > { %2419 = vmatmul.mubr.bf16.vlgmr.msra.gmra.mxu1 %v629_v55  ;;  %5929 = vmatpush3.bf16.msra.mxu0 %v6325_v58  ;;  %v6378_v55 = vld [vmem:[#allocation5 + $0x490] sm:$0xff]   ;;  %v6381_v58 = vld [vmem:[#allocation5 + $0x408] sm:$0xff]  }
  0xc8   : > { %5951 = vmatpush3.bf16.msra.mxu1 %v6326_v59  ;;  %5930 = vmatprep.subr.bf16.mxu0 %v6327_v60  ;;  %v6382_v59 = vld [vmem:[#allocation5 + $0x488] sm:$0xff]   ;;  %v6383_v60 = vld [vmem:[#allocation5 + $0x440] sm:$0xff]  }
  0xc9   : > { %5952 = vmatprep.subr.bf16.mxu1 %v6328_v61  ;;  %2458 = vmatprep.mubr.bf16.mxu0 %v632_v27  ;;  %v6384_v61 = vld [vmem:[#allocation5 + $0x4c0] sm:$0xff]   ;;  %v6406_v27 = vld [vmem:[#allocation5 + $0x598] sm:$0xff]  }
  0xca   : > { %2498 = vmatprep.mubr.bf16.mxu1 %v634_v28  ;;  %v6407_v28 = vld [vmem:[#allocation5 + $0x550] sm:$0xff]  }
  0xcb   : > { %5931 = vmatpush3.bf16.msra.mxu0 %v6329_v62  ;;  %v6385_v62 = vld [vmem:[#allocation5 + $0x400] sm:$0xff]  }
  0xcc   : > { %5953 = vmatpush3.bf16.msra.mxu1 %v6330_v63  ;;  %5932 = vmatprep.subr.bf16.mxu0 %v6331_v0  ;;  %v6386_v63 = vld [vmem:[#allocation5 + $0x480] sm:$0xff]   ;;  %v612_v0 = vld [vmem:[%s6859_s24 + $0x88] sm:$0xff] }
  0xcd   : > { %5954 = vmatprep.subr.bf16.mxu1 %v6332_v1  ;;  %v614_v1 = vld [vmem:[%s6859_s24 + $0x98] sm:$0xff] }
  0xcf   : > { %5933 = vmatpush3.bf16.msra.mxu0 %v6333_v2  ;;  %v636_v2 = vpack.c.bf16 %v612_v0, %v612_v0  ;;  %v6421_v0 = vld [vmem:[%s7167_s3 + $0x28] sm:$0xff]  }
  0xd0   : > { %5955 = vmatpush3.bf16.msra.mxu1 %v6334_v3  ;;  %5934 = vmatprep.subr.bf16.mxu0 %v6335_v4  ;;  %v638_v3 = vpack.c.bf16 %v614_v1, %v614_v1  ;;  %v611_v4 = vld [vmem:[%s6859_s24 + $0x80] sm:$0xff] }
  0xd1   : > { %5956 = vmatprep.subr.bf16.mxu1 %v6336_v5  ;;  %v613_v5 = vld [vmem:[%s6859_s24 + $0x90] sm:$0xff]  ;;  %v6422_v1 = vld [vmem:[%s7167_s3 + $0x20] sm:$0xff]  }
  0xd3   : > { %5935 = vmatpush3.bf16.msra.mxu0 %v6337_v6  ;;  %v635_v6 = vpack.c.bf16 %v611_v4, %v611_v4 }
  0xd4   : > { %5957 = vmatpush3.bf16.msra.mxu1 %v6338_v7  ;;  %5936 = vmatprep.subr.bf16.mxu0 %v6339_v8  ;;  %v637_v7 = vpack.c.bf16 %v613_v5, %v613_v5  ;;  %v6387_v8 = vld [vmem:[#allocation5 + $0x578] sm:$0xff]  }
  0xd5   : > { %5958 = vmatprep.subr.bf16.mxu1 %v6340_v9  ;;  %v6388_v9 = vld [vmem:[#allocation5 + $0x5f8] sm:$0xff]  }
  0xd7   : > { %5937 = vmatpush3.bf16.msra.mxu0 %v6341_v10  ;;  %v6389_v10 = vld [vmem:[#allocation5 + $0x538] sm:$0xff]  }
  0xd8   : > { %5959 = vmatpush3.bf16.msra.mxu1 %v6342_v11  ;;  %5938 = vmatprep.subr.bf16.mxu0 %v6343_v12  ;;  %v6390_v11 = vld [vmem:[#allocation5 + $0x5b8] sm:$0xff]   ;;  %v6391_v12 = vld [vmem:[#allocation5 + $0x570] sm:$0xff]  }
  0xd9   : > { %5960 = vmatprep.subr.bf16.mxu1 %v6344_v13  ;;  %v6392_v13 = vld [vmem:[#allocation5 + $0x5f0] sm:$0xff]  }
  0xdb   : > { %5939 = vmatpush3.bf16.msra.mxu0 %v6345_v14  ;;  %v6393_v14 = vld [vmem:[#allocation5 + $0x530] sm:$0xff]  }
  0xdc   : > { %5961 = vmatpush3.bf16.msra.mxu1 %v6346_v15  ;;  %5940 = vmatprep.subr.bf16.mxu0 %v6347_v16  ;;  %v6394_v15 = vld [vmem:[#allocation5 + $0x5b0] sm:$0xff]   ;;  %v6395_v16 = vld [vmem:[#allocation5 + $0x568] sm:$0xff]  }
  0xdd   : > { %5962 = vmatprep.subr.bf16.mxu1 %v6348_v17  ;;  %v6396_v17 = vld [vmem:[#allocation5 + $0x5e8] sm:$0xff]  }
  0xdf   : > { %5941 = vmatpush3.bf16.msra.mxu0 %v6349_v18  ;;  %v6397_v18 = vld [vmem:[#allocation5 + $0x528] sm:$0xff]  }
  0xe0   : > { %5963 = vmatpush3.bf16.msra.mxu1 %v6350_v19  ;;  %5942 = vmatprep.subr.bf16.mxu0 %v6351_v20  ;;  %v6398_v19 = vld [vmem:[#allocation5 + $0x5a8] sm:$0xff]   ;;  %v6399_v20 = vld [vmem:[#allocation5 + $0x560] sm:$0xff]  }
  0xe1   : > { %5964 = vmatprep.subr.bf16.mxu1 %v6352_v21  ;;  %v6400_v21 = vld [vmem:[#allocation5 + $0x5e0] sm:$0xff]  }
  0xe3   : > { %5943 = vmatpush3.bf16.msra.mxu0 %v6353_v22  ;;  %v6401_v22 = vld [vmem:[#allocation5 + $0x520] sm:$0xff]  }
  0xe4   : > { %5965 = vmatpush3.bf16.msra.mxu1 %v6354_v23  ;;  %5972 = vmatprep.subr.bf16.mxu0 %v6355_v32  ;;  %v6402_v23 = vld [vmem:[#allocation5 + $0x5a0] sm:$0xff]   ;;  %v6411_v32 = vld [vmem:[#allocation5 + $0x548] sm:$0xff]  }
  0xe5   : > { %5994 = vmatprep.subr.bf16.mxu1 %v6356_v33  ;;  %v6412_v33 = vld [vmem:[#allocation5 + $0x5c8] sm:$0xff]  }
  0xe6   : > { %2459 = vmatmul.mubr.bf16.vlgmr.msra.gmra.mxu0 %v631_v29  ;;  %v6408_v29 = vld [vmem:[#allocation5 + $0x5d0] sm:$0xff]  }
  0xe7   : > { %2499 = vmatmul.mubr.bf16.vlgmr.msra.gmra.mxu1 %v633_v31  ;;  %5973 = vmatpush3.bf16.msra.mxu0 %v6357_v34  ;;  %v6410_v31 = vld [vmem:[#allocation5 + $0x590] sm:$0xff]   ;;  %v6413_v34 = vld [vmem:[#allocation5 + $0x508] sm:$0xff]  }
  0xe8   : > { %5995 = vmatpush3.bf16.msra.mxu1 %v6358_v35  ;;  %5974 = vmatprep.subr.bf16.mxu0 %v6359_v36  ;;  %v6414_v35 = vld [vmem:[#allocation5 + $0x588] sm:$0xff]   ;;  %v6415_v36 = vld [vmem:[#allocation5 + $0x540] sm:$0xff]  }
  0xe9   : > { %5996 = vmatprep.subr.bf16.mxu1 %v6360_v37  ;;  %2538 = vmatprep.mubr.bf16.mxu0 %v636_v2  ;;  %v6416_v37 = vld [vmem:[#allocation5 + $0x5c0] sm:$0xff]   ;;  %v6423_v2 = vld [vmem:[%s7167_s3 + $0x18] sm:$0xff]  }
  0xea   : > { %2578 = vmatprep.mubr.bf16.mxu1 %v638_v3 }
  0xeb   : > { %5975 = vmatpush3.bf16.msra.mxu0 %v6361_v38  ;;  %v6417_v38 = vld [vmem:[#allocation5 + $0x500] sm:$0xff]  }
  0xec   : > { %5997 = vmatpush3.bf16.msra.mxu1 %v6362_v39  ;;  %5976 = vmatprep.subr.bf16.mxu0 %v6363_v40  ;;  %v6418_v39 = vld [vmem:[#allocation5 + $0x580] sm:$0xff]   ;;  %v616_v40 = vld [vmem:[%s6859_s24 + $0xa8] sm:$0xff] }
  0xed   : > { %5998 = vmatprep.subr.bf16.mxu1 %v6364_v41  ;;  %v640_v41 = vpack.c.bf16 %v616_v40, %v616_v40 }
  0xef   : > { %5977 = vmatpush3.bf16.msra.mxu0 %v6365_v42  ;;  %v618_v42 = vld [vmem:[%s6859_s24 + $0xb8] sm:$0xff] }
  0xf0   : > { %5999 = vmatpush3.bf16.msra.mxu1 %v6366_v43  ;;  %5978 = vmatprep.subr.bf16.mxu0 %v6367_v44  ;;  %v615_v43 = vld [vmem:[%s6859_s24 + $0xa0] sm:$0xff]  ;;  %v617_v44 = vld [vmem:[%s6859_s24 + $0xb0] sm:$0xff]  ;;  %s6571_s24 = scalar_lea.vmem %s6570_s27, 3072 }
  0xf1   : > { %6000 = vmatprep.subr.bf16.mxu1 %v6368_v45  ;;  %v642_v45 = vpack.c.bf16 %v618_v42, %v618_v42  ;;  %p6573_p12 = scmp.lt.s32.totalorder %s6571_s24, %s6565_s30 }
  0xf3   : > { %5979 = vmatpush3.bf16.msra.mxu0 %v6369_v46  ;;  %v639_v46 = vpack.c.bf16 %v615_v43, %v615_v43  ;;  %p6574_p3 = por %p6573_p12, %p6572_p6 }
  0xf4   : > { %6001 = vmatpush3.bf16.msra.mxu1 %v6370_v47  ;;  %5980 = vmatprep.subr.bf16.mxu0 %v6371_v48  ;;  %v641_v47 = vpack.c.bf16 %v617_v44, %v617_v44 }
  0xf5   : > { %6002 = vmatprep.subr.bf16.mxu1 %v6372_v49  ;;  %p6575_p9 = pnand %p6574_p3, %p6568_p2 }
  0xf7   : > { %5981 = vmatpush3.bf16.msra.mxu0 %v6373_v50  ;;  %v5367_v50 = vld [vmem:[%s7166_s2] ss:$0 sm:$0xff] }
  0xf8   : > { %6003 = vmatpush3.bf16.msra.mxu1 %v6374_v51  ;;  %5982 = vmatprep.subr.bf16.mxu0 %v6375_v52 }
  0xf9   : > { %6004 = vmatprep.subr.bf16.mxu1 %v6376_v53 }
  0xfb   : > { %5983 = vmatpush3.bf16.msra.mxu0 %v6377_v54 }
  0xfc   : > { %6005 = vmatpush3.bf16.msra.mxu1 %v6378_v55  ;;  %5984 = vmatprep.subr.bf16.mxu0 %v6379_v56 }
  0xfd   : > { %6006 = vmatprep.subr.bf16.mxu1 %v6380_v57 }
  0xff   : > { %5985 = vmatpush3.bf16.msra.mxu0 %v6381_v58 }
 0x100   : > { %6007 = vmatpush3.bf16.msra.mxu1 %v6382_v59  ;;  %5986 = vmatprep.subr.bf16.mxu0 %v6383_v60 }
 0x101   : > { %6008 = vmatprep.subr.bf16.mxu1 %v6384_v61  ;;  %v6419_v61 = vld [vmem:[%s7167_s3 + $0x38] sm:$0xff]  }
 0x103   : > { %5987 = vmatpush3.bf16.msra.mxu0 %v6385_v62  ;;  %v6642_v62 = vmov 0.0  }
 0x104   : > { %6009 = vmatpush3.bf16.msra.mxu1 %v6386_v63  ;;  %6016 = vmatprep.subr.bf16.mxu0 %v6387_v8  ;;  %v6420_v63 = vld [vmem:[%s7167_s3 + $0x30] sm:$0xff]  }
 0x105   : > { %6038 = vmatprep.subr.bf16.mxu1 %v6388_v9 }
 0x106   : > { %2539 = vmatmul.mubr.bf16.vlgmr.msra.gmra.mxu0 %v635_v6 }
 0x107   : > { %2579 = vmatmul.mubr.bf16.vlgmr.msra.gmra.mxu1 %v637_v7  ;;  %6017 = vmatpush3.bf16.msra.mxu0 %v6389_v10 }
 0x108   : > { %6039 = vmatpush3.bf16.msra.mxu1 %v6390_v11  ;;  %6018 = vmatprep.subr.bf16.mxu0 %v6391_v12 }
 0x109   : > { %6040 = vmatprep.subr.bf16.mxu1 %v6392_v13  ;;  %2618 = vmatprep.mubr.bf16.mxu0 %v640_v41  ;;  %v6424_v13 = vld [vmem:[%s7167_s3 + $0x10] sm:$0xff]  }
 0x10a   : > { %2658 = vmatprep.mubr.bf16.mxu1 %v642_v45 }
 0x10b   : > { %6019 = vmatpush3.bf16.msra.mxu0 %v6393_v14 }
 0x10c   : > { %6041 = vmatpush3.bf16.msra.mxu1 %v6394_v15  ;;  %6020 = vmatprep.subr.bf16.mxu0 %v6395_v16  ;;  %v6425_v16 = vld [vmem:[%s7167_s3 + $0x8] sm:$0xff]  }
 0x10d   : > { %6042 = vmatprep.subr.bf16.mxu1 %v6396_v17  ;;  %v6426_v17 = vld [vmem:[%s7167_s3] sm:$0xff]  }
 0x10f   : > { %6021 = vmatpush3.bf16.msra.mxu0 %v6397_v18  ;;  %v6427_v18 = vld [vmem:[%s7169_s5 + $0x18] sm:$0xff]  }
 0x110   : > { %6043 = vmatpush3.bf16.msra.mxu1 %v6398_v19  ;;  %6022 = vmatprep.subr.bf16.mxu0 %v6399_v20  ;;  %v6428_v19 = vld [vmem:[%s7169_s5 + $0x10] sm:$0xff]  }
 0x111   : > { %6044 = vmatprep.subr.bf16.mxu1 %v6400_v21 }
 0x113   : > { %6023 = vmatpush3.bf16.msra.mxu0 %v6401_v22 }
 0x114   : > { %6045 = vmatpush3.bf16.msra.mxu1 %v6402_v23  ;;  %6024 = vmatprep.subr.bf16.mxu0 %v6403_v24 }
 0x115   : > { %6046 = vmatprep.subr.bf16.mxu1 %v6404_v25 }
 0x117   : > { %6025 = vmatpush3.bf16.msra.mxu0 %v6405_v26 }
 0x118   : > { %6047 = vmatpush3.bf16.msra.mxu1 %v6406_v27  ;;  %6026 = vmatprep.subr.bf16.mxu0 %v6407_v28 }
 0x119   : > { %6048 = vmatprep.subr.bf16.mxu1 %v6408_v29 }
 0x11b   : > { %6027 = vmatpush3.bf16.msra.mxu0 %v6409_v30 }
 0x11c   : > { %6049 = vmatpush3.bf16.msra.mxu1 %v6410_v31  ;;  %6028 = vmatprep.subr.bf16.mxu0 %v6411_v32 }
 0x11d   : > { %6050 = vmatprep.subr.bf16.mxu1 %v6412_v33 }
 0x11f   : > { %6029 = vmatpush3.bf16.msra.mxu0 %v6413_v34 }
 0x120   : > { %6051 = vmatpush3.bf16.msra.mxu1 %v6414_v35  ;;  %6030 = vmatprep.subr.bf16.mxu0 %v6415_v36 }
 0x121   : > { %6052 = vmatprep.subr.bf16.mxu1 %v6416_v37 }
 0x123   : > { %6031 = vmatpush3.bf16.msra.mxu0 %v6417_v38 }
 0x124   : > { %6053 = vmatpush3.bf16.msra.mxu1 %v6418_v39  ;;  %6085 = vmatprep.subr.bf16.mxu0 %v6642_v62 }
 0x125   : > { %6105 = vmatprep.subr.bf16.mxu1 %v6642_v62 }
 0x126   : > { %2619 = vmatmul.mubr.bf16.vlgmr.msra.gmra.mxu0 %v639_v46 }
 0x127   : > { %2659 = vmatmul.mubr.bf16.vlgmr.msra.gmra.mxu1 %v641_v47  ;;  %6086 = vmatpush3.bf16.msra.mxu0 %v6419_v61 }
 0x128   : > { %6087 = vmatprep.subr.bf16.mxu0 %v6642_v62  ;;  %6101 = vmatprep.mubr.msk.bf16.mxu0 %vm6643_vm0, %v6642_v62 }
 0x129   : > { %6113 = vmatprep.mubr.msk.bf16.mxu1 %vm6643_vm0, %v6642_v62  ;;  %6106 = vmatpush3.bf16.msra.mxu1 %v6427_v18 }
 0x12a   : > { %6107 = vmatprep.subr.bf16.mxu1 %v6642_v62 }
 0x12b   : > { %6088 = vmatpush3.bf16.msra.mxu0 %v6420_v63 }
 0x12c   : > { %6089 = vmatprep.subr.bf16.mxu0 %v6642_v62 }
 0x12d   : > { %6108 = vmatpush3.bf16.msra.mxu1 %v6428_v19  ;;  %v5569_v19 = vld [vmem:[%s7170_s6] ss:$0 sm:$0xff] }
 0x12e   : > { %6109 = vmatprep.subr.bf16.mxu1 %v6642_v62 }
 0x12f   : > { %6090 = vmatpush3.bf16.msra.mxu0 %v6421_v0 }
 0x130   : > { %6091 = vmatprep.subr.bf16.mxu0 %v6642_v62 }
 0x133   : > { %6092 = vmatpush3.bf16.msra.mxu0 %v6422_v1 }
 0x134   : > { %6093 = vmatprep.subr.bf16.mxu0 %v6642_v62 }
 0x137   : > { %6094 = vmatpush3.bf16.msra.mxu0 %v6423_v2 }
 0x138   : > { %6095 = vmatprep.subr.bf16.mxu0 %v6642_v62 }
 0x13b   : > { %6096 = vmatpush3.bf16.msra.mxu0 %v6424_v13 }
 0x13c   : > { %6097 = vmatprep.subr.bf16.mxu0 %v6642_v62 }
 0x13f   : > { %6098 = vmatpush3.bf16.msra.mxu0 %v6425_v16 }
 0x140   : > { %6099 = vmatprep.subr.bf16.mxu0 %v6642_v62 }
 0x143   : > { %6100 = vmatpush3.bf16.msra.mxu0 %v6426_v17 }
 0x144   : > { %6129 = vmatprep.subr.bf16.mxu0 %v6642_v62 }
 0x146   : > { %v5812_v48 = vpop.f32.mrf.mxu0 }
 0x147   : > { %v5834_v49 = vpop.f32.mrf.mxu1 }
 0x148   : > { %v5813_v51 = vpop.f32.mrf.mxu0 }
 0x149   : > { %v5835_v52 = vpop.f32.mrf.mxu1  ;;  %v5814_v53 = vadd.f32 %v5813_v51, %v5812_v48 }
 0x14a   : > { %v5836_v54 = vadd.f32 %v5835_v52, %v5834_v49  ;;  %v5815_v55 = vpop.f32.mrf.mxu0 }
 0x14b   : > { %v5837_v56 = vpop.f32.mrf.mxu1  ;;  %v2221_v57 = vadd.f32 %v5814_v53, %v5367_v50 }
 0x14c   : > { %v5816_v58 = vpop.f32.mrf.mxu0 }
 0x14d   : > { %v5838_v59 = vpop.f32.mrf.mxu1  ;;  %v2261_v60 = vadd.f32 %v5836_v54, %v2221_v57 }
 0x166   : > { %v5856_v3 = vpop.f32.mrf.mxu0 }
 0x167   : > { %v5878_v4 = vpop.f32.mrf.mxu1 }
 0x168   : > { %v5857_v5 = vpop.f32.mrf.mxu0 }
 0x169   : > { %v5858_v6 = vadd.f32 %v5857_v5, %v5856_v3  ;;  %v5879_v7 = vpop.f32.mrf.mxu1 }
 0x16a   : > { %v5880_v8 = vadd.f32 %v5879_v7, %v5878_v4  ;;  %v5859_v9 = vpop.f32.mrf.mxu0  ;;  %v6429_v7 = vld [vmem:[%s7169_s5 + $0x8] sm:$0xff]  }
 0x16b   : > { %v2301_v10 = vadd.f32 %v5858_v6, %v2261_v60  ;;  %v5881_v11 = vpop.f32.mrf.mxu1  ;;  %6110 = vmatpush3.bf16.msra.mxu1 %v6429_v7  ;;  %v5560_v9 = vld [vmem:[%s7168_s4] ss:$0 sm:$0xff] }
 0x16c   : > { %v5860_v12 = vpop.f32.mrf.mxu0  ;;  %6111 = vmatprep.subr.bf16.mxu1 %v6642_v62 }
 0x16d   : > { %v2341_v14 = vadd.f32 %v5880_v8, %v2301_v10  ;;  %v5882_v15 = vpop.f32.mrf.mxu1  ;;  %v6430_v8 = vld [vmem:[%s7169_s5] sm:$0xff]  }
 0x16e   : > { %v6431_v12 = vld [vmem:[%s7171_s7] sm:$0x3f]  }
 0x16f   : > { %6112 = vmatpush3.bf16.msra.mxu1 %v6430_v8  ;;  %v2886_v17 = vsel %vm2884_vm1, %v6431_v12, 0 }
 0x170   : > { %6117 = vmatprep.subr.bf16.mxu1 %v6642_v62 }
 0x186   : > { %v5900_v20 = vpop.f32.mrf.mxu0 }
 0x187   : > { %v5922_v21 = vpop.f32.mrf.mxu1 }
 0x188   : > { %v5901_v22 = vpop.f32.mrf.mxu0 }
 0x189   : > { %v5902_v23 = vadd.f32 %v5901_v22, %v5900_v20  ;;  %v5923_v24 = vpop.f32.mrf.mxu1  ;;  %v6644_v20 = vmov 65535  }
 0x18a   : > { %v5924_v25 = vadd.f32 %v5923_v24, %v5922_v21  ;;  %v5903_v26 = vpop.f32.mrf.mxu0  ;;  %v2943_v21 = vsel %vm2941_vm3, 4294967295, %v6644_v20  ;;  %v2929_v24 = vld [vmem:[%s7173_s9] sm:$0x3] }
 0x18b   : > { %v2381_v27 = vadd.f32 %v5902_v23, %v2341_v14  ;;  %v5925_v28 = vpop.f32.mrf.mxu1 }
 0x18c   : > { %v5904_v29 = vpop.f32.mrf.mxu0 }
 0x18d   : > { %v2421_v30 = vadd.f32 %v5924_v25, %v2381_v27  ;;  %v5926_v31 = vpop.f32.mrf.mxu1  ;;  %v2944_v25 = vsel %vm2942_vm4, %v2943_v21, 0  ;;  %v5580_v21 = vld [vmem:[%s7176_s12] ss:$0 sm:$0xff] }
 0x18e   : > { %v2946_v29 = vand.u32 %v2944_v25, %v2929_v24  ;;  %v3281_v25 = vld [vmem:[#allocation7 + $0x488] sm:$0xff] }
 0x1a6   : > { %v5944_v32 = vpop.f32.mrf.mxu0 }
 0x1a7   : > { %v5966_v33 = vpop.f32.mrf.mxu1 }
 0x1a8   : > { %v5945_v34 = vpop.f32.mrf.mxu0 }
 0x1a9   : > { %v5967_v35 = vpop.f32.mrf.mxu1  ;;  %v5946_v48 = vadd.f32 %v5945_v34, %v5944_v32  ;;  %v6432_v32 = vld [vmem:[%s7175_s11] sm:$0x3f]  }
 0x1aa   : > { %v5947_v36 = vpop.f32.mrf.mxu0  ;;  %v5968_v50 = vadd.f32 %v5967_v35, %v5966_v33  ;;  %v3008_v33 = vsel %vm2884_vm1, %v6432_v32, 0  ;;  %v5575_v34 = vld [vmem:[%s7172_s8] ss:$0 sm:$0xff]  ;;  %v3257_v32 = vld [vmem:[#allocation7 + $0x3c8] sm:$0xff] }
 0x1ab   : > { %v5969_v37 = vpop.f32.mrf.mxu1  ;;  %v2461_v49 = vadd.f32 %v5946_v48, %v2421_v30 }
 0x1ac   : > { %v5948_v38 = vpop.f32.mrf.mxu0 }
 0x1ad   : > { %v5970_v39 = vpop.f32.mrf.mxu1  ;;  %v2501_v52 = vadd.f32 %v5968_v50, %v2461_v49 }
 0x1c6   : > { %v5988_v40 = vpop.f32.mrf.mxu0 }
 0x1c7   : > { %v6010_v41 = vpop.f32.mrf.mxu1 }
 0x1c8   : > { %v5989_v42 = vpop.f32.mrf.mxu0 }
 0x1c9   : > { %v6011_v43 = vpop.f32.mrf.mxu1  ;;  %v5990_v51 = vadd.f32 %v5989_v42, %v5988_v40  ;;  %v6434_v42 = vld [vmem:[%s7177_s13 + $0x10] sm:$0xff]  }
 0x1ca   : > { %v5991_v44 = vpop.f32.mrf.mxu0  ;;  %v6012_v54 = vadd.f32 %v6011_v43, %v6010_v41  ;;  %v6433_v41 = vld [vmem:[%s7177_s13 + $0x18] sm:$0xff]   ;;  %v5578_v43 = vld [vmem:[%s7174_s10] ss:$0 sm:$0xff] }
 0x1cb   : > { %v6013_v45 = vpop.f32.mrf.mxu1  ;;  %v2541_v53 = vadd.f32 %v5990_v51, %v2501_v52  ;;  %v6435_v51 = vld [vmem:[%s7177_s13 + $0x8] sm:$0xff]   ;;  %v6436_v52 = vld [vmem:[%s7177_s13] sm:$0xff]  }
 0x1cc   : > { %v5992_v46 = vpop.f32.mrf.mxu0 }
 0x1cd   : > { %v6014_v47 = vpop.f32.mrf.mxu1  ;;  %v2581_v58 = vadd.f32 %v6012_v54, %v2541_v53  ;;  %v3304_v53 = vld [vmem:[#allocation7 + $0x540] sm:$0xff] }
 0x1ce   : > { %v3316_v54 = vld [vmem:[#allocation7 + $0x5a0] sm:$0xff] }
 0x1e6   : > { %v6032_v55 = vpop.f32.mrf.mxu0 }
 0x1e7   : > { %v6054_v56 = vpop.f32.mrf.mxu1 }
 0x1e8   : > { %v6033_v57 = vpop.f32.mrf.mxu0 }
 0x1e9   : > { %v6034_v59 = vadd.f32 %v6033_v57, %v6032_v55  ;;  %v6055_v60 = vpop.f32.mrf.mxu1  ;;  %v3305_v55 = vld [vmem:[#allocation7 + $0x548] sm:$0xff]  ;;  %v5758_v57 = vcombine.high %v3304_v53, %v3316_v54 }
 0x1ea   : > { %v6035_v61 = vpop.f32.mrf.mxu0  ;;  %v6056_v0 = vadd.f32 %v6055_v60, %v6054_v56  ;;  %v5757_v56 = vcombine.low %v3304_v53, %v3316_v54  ;;  %v3292_v60 = vld [vmem:[#allocation7 + $0x4e0] sm:$0xff] }
 0x1eb   : > { %v2621_v63 = vadd.f32 %v6034_v59, %v2581_v58  ;;  %v6057_v1 = vpop.f32.mrf.mxu1  ;;  %v3317_v58 = vld [vmem:[#allocation7 + $0x5a8] sm:$0xff]  ;;  %v3280_v59 = vld [vmem:[#allocation7 + $0x480] sm:$0xff] }
 0x1ec   : > { %v6036_v2 = vpop.f32.mrf.mxu0  ;;  %v5759_v61 = vcombine.low %v3305_v55, %v3317_v58  ;;  %v3256_v1 = vld [vmem:[#allocation7 + $0x3c0] sm:$0xff] }
 0x1ed   : > { %v2661_v3 = vadd.f32 %v6056_v0, %v2621_v63  ;;  %v6058_v4 = vpop.f32.mrf.mxu1  ;;  %v5760_v63 = vcombine.high %v3305_v55, %v3317_v58  ;;  %v5734_v0 = vcombine.high %v3280_v59, %v3292_v60  ;;  %v3268_v2 = vld [vmem:[#allocation7 + $0x420] sm:$0xff]  ;;  %v3137_v55 = vld [vmem:[#allocation7 + $0x8] sm:$0xff] }
 0x1ee   : > { %v5709_v4 = vcombine.low %v3256_v1, %v3268_v2  ;;  %v3136_v53 = vld [vmem:[#allocation7] sm:$0xff] }
 0x1ef   : > { %v2666_v5 = vmax.f32 %v2661_v3, 0.0  ;;  %v5710_v3 = vcombine.high %v3256_v1, %v3268_v2  ;;  %v3148_v54 = vld [vmem:[#allocation7 + $0x60] sm:$0xff]  ;;  %v3319_v1 = vld [vmem:[#allocation7 + $0x5b8] sm:$0xff] }
 0x1f0   : > { %v5589_v58 = vcombine.low %v3136_v53, %v3148_v54 }
 0x1f1   : > { %v2667_v6 = vpack.c.bf16 %v2666_v5, %v2666_v5  ;;  %v3232_v5 = vld [vmem:[#allocation7 + $0x300] sm:$0xff] }
 0x1f3   : > { %6102 = vmatmul.mubr.bf16.vlgmr.msra.gmra.mxu0 %v2667_v6  ;;  %v3244_v6 = vld [vmem:[#allocation7 + $0x360] sm:$0xff] }
 0x1f4   : > { %6131 = vmatprep.mubr.msk.bf16.mxu0 %vm6643_vm0, %v6642_v62  ;;  %6130 = vmatpush3.bf16.msra.mxu0 %v3008_v33  ;;  %v5686_v7 = vcombine.high %v3232_v5, %v3244_v6  ;;  %v5685_v8 = vcombine.low %v3232_v5, %v3244_v6  ;;  %v3269_v33 = vld [vmem:[#allocation7 + $0x428] sm:$0xff]  ;;  %v6645_v5 = vmov 0   ;;  %v5583_v6 = vld [vmem:[%s7224_s17] ss:$0 sm:$0xff]  ;;  %s7227_s17 = sld [smem:[#allocation24_spill]] }
 0x1f5   : > { %4291 = vmatprep.subr.bf16.mxu0 %v5758_v57  ;;  %v3149_v57 = vld [vmem:[#allocation7 + $0x68] sm:$0xff] }
 0x1fa   : > { %s7125_s22 = scalar_lea.hbm %s7227_s17, %s6151_s1 }
 0x2b3   : > { %v2773_v10 = vpop.f32.mrf.mxu0 }
 0x2b4   : > { %v2774_v11 = vadd.f32 %v5560_v9, %v2773_v10  ;;  %v3208_v9 = vld [vmem:[#allocation7 + $0x240] sm:$0xff] }
 0x2b5   : > { %v6103_v13 = vpop.f32.mrf.mxu0  ;;  %v3220_v10 = vld [vmem:[#allocation7 + $0x2a0] sm:$0xff] }
 0x2b6   : > { %v2779_v14 = vmax.f32 %v2774_v11, 0.0  ;;  %v5662_v11 = vcombine.high %v3208_v9, %v3220_v10  ;;  %v5661_v12 = vcombine.low %v3208_v9, %v3220_v10  ;;  %v3184_v13 = vld [vmem:[#allocation7 + $0x180] sm:$0xff]  ;;  %v3282_v9 = vld [vmem:[#allocation7 + $0x490] sm:$0xff] }
 0x2b7   : > { %v2776_v15 = vpop.f32.mrf.mxu0 }
 0x2b8   : > { %v2780_v16 = vpack.c.bf16 %v2779_v14, %v2779_v14  ;;  %v3196_v14 = vld [vmem:[#allocation7 + $0x1e0] sm:$0xff] }
 0x2b9   : > { %v6104_v18 = vpop.f32.mrf.mxu0  ;;  %v5638_v15 = vcombine.high %v3184_v13, %v3196_v14 }
 0x2ba   : > { %6114 = vmatmul.mubr.msk.bf16.vlgmr.msra.gmra.mxu1 %vm2820_vm2, %v2780_v16  ;;  %v5637_v16 = vcombine.low %v3184_v13, %v3196_v14  ;;  %v3172_v18 = vld [vmem:[#allocation7 + $0x120] sm:$0xff]  ;;  %v3295_v13 = vld [vmem:[#allocation7 + $0x4f8] sm:$0xff] }
 0x2bb   : > { %6118 = vmatpush3.bf16.msra.mxu1 %v2886_v17  ;;  %6119 = vmatprep.mubr.msk.bf16.mxu1 %vm6643_vm0, %v6642_v62  ;;  %v3160_v17 = vld [vmem:[#allocation7 + $0xc0] sm:$0xff] }
 0x2bc   : > { %6123 = vmatprep.subr.bf16.mxu1 %v6642_v62  ;;  %v5613_v20 = vcombine.low %v3160_v17, %v3172_v18 }
 0x37a   : > { %v2858_v22 = vpop.f32.mrf.mxu1 }
 0x37b   : > { %v2859_v23 = vadd.f32 %v5569_v19, %v2858_v22  ;;  %v5614_v19 = vcombine.high %v3160_v17, %v3172_v18 }
 0x37c   : > { %v6115_v26 = vpop.f32.mrf.mxu1 }
 0x37d   : > { %v2864_v27 = vmax.f32 %v2859_v23, 0.0  ;;  %v3293_v26 = vld [vmem:[#allocation7 + $0x4e8] sm:$0xff] }
 0x37e   : > { %v2861_v28 = vpop.f32.mrf.mxu1 }
 0x37f   : > { %v2865_v30 = vpack.c.bf16 %v2864_v27, %v2864_v27 }
 0x380   : > { %v6116_v31 = vpop.f32.mrf.mxu1 }
 0x381   : > { %6120 = vmatmul.mubr.msk.bf16.vlgmr.msra.gmra.mxu1 %vm2880_vm5, %v2865_v30  ;;  %v5736_v30 = vcombine.high %v3281_v25, %v3293_v26 }
 0x382   : > { %6124 = vmatpush3.bf16.msra.mxu1 %v2946_v29  ;;  %6125 = vmatprep.mubr.msk.bf16.mxu1 %vm6643_vm0, %v6642_v62 }
 0x383   : > { %6135 = vmatprep.subr.bf16.mxu1 %v6642_v62 }
 0x441   : > { %v2922_v35 = vpop.f32.mrf.mxu1 }
 0x442   : > { %v2923_v36 = vadd.f32 %v5575_v34, %v2922_v35  ;;  %v5735_v34 = vcombine.low %v3281_v25, %v3293_v26  ;;  %v5712_v35 = vcombine.high %v3257_v32, %v3269_v33 }
 0x443   : > { %v6121_v37 = vpop.f32.mrf.mxu1 }
 0x444   : > { %v2928_v38 = vpack.c.bf16 %v2923_v36, %v2923_v36  ;;  %v3233_v36 = vld [vmem:[#allocation7 + $0x308] sm:$0xff] }
 0x445   : > { %v2925_v39 = vpop.f32.mrf.mxu1  ;;  %v3245_v37 = vld [vmem:[#allocation7 + $0x368] sm:$0xff] }
 0x446   : > { %6126 = vmatmul.mubr.msk.bf16.vlgmr.msra.gmra.mxu1 %vm2937_vm6, %v2928_v38  ;;  %v5711_v38 = vcombine.low %v3257_v32, %v3269_v33  ;;  %v5688_v39 = vcombine.high %v3233_v36, %v3245_v37 }
 0x447   : > { %v6122_v40 = vpop.f32.mrf.mxu1  ;;  %6143 = vmatprep.mubr.msk.bf16.mxu1 %vm6643_vm0, %v6642_v62  ;;  %6136 = vmatpush3.bf16.msra.mxu1 %v6433_v41  ;;  %v3221_v41 = vld [vmem:[#allocation7 + $0x2a8] sm:$0xff] }
 0x448   : > { %6137 = vmatprep.subr.bf16.mxu1 %v6642_v62  ;;  %v3209_v40 = vld [vmem:[#allocation7 + $0x248] sm:$0xff] }
 0x44b   : > { %6138 = vmatpush3.bf16.msra.mxu1 %v6434_v42  ;;  %v5687_v42 = vcombine.low %v3233_v36, %v3245_v37  ;;  %v3210_v36 = vld [vmem:[#allocation7 + $0x250] sm:$0xff] }
 0x44c   : > { %6139 = vmatprep.subr.bf16.mxu1 %v6642_v62  ;;  %v3222_v37 = vld [vmem:[#allocation7 + $0x2b0] sm:$0xff] }
 0x44f   : > { %6140 = vmatpush3.bf16.msra.mxu1 %v6435_v51 }
 0x450   : > { %6141 = vmatprep.subr.bf16.mxu1 %v6642_v62  ;;  %v5733_v62 = vcombine.low %v3280_v59, %v3292_v60  ;;  %v5591_v59 = vcombine.low %v3137_v55, %v3149_v57  ;;  %v5592_v60 = vcombine.high %v3137_v55, %v3149_v57  ;;  %v3175_v55 = vld [vmem:[#allocation7 + $0x138] sm:$0xff] }
 0x453   : > { %6142 = vmatpush3.bf16.msra.mxu1 %v6436_v52 }
 0x454   : > { %4332 = vmatprep.subr.bf16.mxu1 %v5760_v63  ;;  %v3318_v63 = vld [vmem:[#allocation7 + $0x5b0] sm:$0xff] }
 0x506   : > { %v2982_v44 = vpop.f32.mrf.mxu1 }
 0x507   : > { %v2983_v45 = vadd.f32 %v5578_v43, %v2982_v44  ;;  %v5664_v43 = vcombine.high %v3209_v40, %v3221_v41  ;;  %v3185_v44 = vld [vmem:[#allocation7 + $0x188] sm:$0xff] }
 0x508   : > { %v6127_v46 = vpop.f32.mrf.mxu1 }
 0x509   : > { %v2988_v47 = vmax.f32 %v2983_v45, 0.0  ;;  %v3197_v45 = vld [vmem:[#allocation7 + $0x1e8] sm:$0xff]  ;;  %v5663_v46 = vcombine.low %v3209_v40, %v3221_v41 }
 0x50a   : > { %v2985_v48 = vpop.f32.mrf.mxu1 }
 0x50b   : > { %v2989_v49 = vpack.c.bf16 %v2988_v47, %v2988_v47  ;;  %v5640_v47 = vcombine.high %v3185_v44, %v3197_v45  ;;  %v3161_v48 = vld [vmem:[#allocation7 + $0xc8] sm:$0xff] }
 0x50c   : > { %v6128_v50 = vpop.f32.mrf.mxu1 }
 0x50d   : > { %6132 = vmatmul.mubr.msk.bf16.vlgmr.msra.gmra.mxu0 %vm2880_vm5, %v2989_v49  ;;  %v3173_v49 = vld [vmem:[#allocation7 + $0x128] sm:$0xff]  ;;  %v5639_v50 = vcombine.low %v3185_v44, %v3197_v45  ;;  %v3186_v44 = vld [vmem:[#allocation7 + $0x190] sm:$0xff] }
 0x50e   : > { %4292 = vmatpush1.bf16.msra.mxu0 %v5757_v56  ;;  %v5616_v51 = vcombine.high %v3161_v48, %v3173_v49  ;;  %v5615_v52 = vcombine.low %v3161_v48, %v3173_v49  ;;  %v5590_v56 = vcombine.high %v3136_v53, %v3148_v54  ;;  %4323 = vmatprep.mubr.bf16.mxu0 %v6645_v5  ;;  %v3198_v45 = vld [vmem:[#allocation7 + $0x1f0] sm:$0xff]  ;;  %v3163_v54 = vld [vmem:[#allocation7 + $0xd8] sm:$0xff] }
 0x50f   : > { %4293 = vmatprep.subr.bf16.mxu0 %v5734_v0  ;;  %v3307_v0 = vld [vmem:[#allocation7 + $0x558] sm:$0xff]  ;;  %v5665_v48 = vcombine.low %v3210_v36, %v3222_v37  ;;  %v3174_v53 = vld [vmem:[#allocation7 + $0x130] sm:$0xff] }
 0x512   : > { %4294 = vmatpush1.bf16.msra.mxu0 %v5733_v62 }
 0x513   : > { %4295 = vmatprep.subr.bf16.mxu0 %v5710_v3  ;;  %v5763_v3 = vcombine.low %v3307_v0, %v3319_v1 }
 0x516   : > { %4296 = vmatpush1.bf16.msra.mxu0 %v5709_v4  ;;  %v5764_v4 = vcombine.high %v3307_v0, %v3319_v1  ;;  %v3151_v0 = vld [vmem:[#allocation7 + $0x78] sm:$0xff]  ;;  %v5619_v1 = vcombine.low %v3163_v54, %v3175_v55 }
 0x517   : > { %4297 = vmatprep.subr.bf16.mxu0 %v5686_v7 }
 0x51a   : > { %4298 = vmatpush1.bf16.msra.mxu0 %v5685_v8 }
 0x51b   : > { %4299 = vmatprep.subr.bf16.mxu0 %v5662_v11  ;;  %v3294_v11 = vld [vmem:[#allocation7 + $0x4f0] sm:$0xff] }
 0x51c   : > { %v5738_v17 = vcombine.high %v3282_v9, %v3294_v11 }
 0x51e   : > { %4300 = vmatpush1.bf16.msra.mxu0 %v5661_v12  ;;  %v3283_v12 = vld [vmem:[#allocation7 + $0x498] sm:$0xff] }
 0x51f   : > { %4301 = vmatprep.subr.bf16.mxu0 %v5638_v15  ;;  %v5740_v18 = vcombine.high %v3283_v12, %v3295_v13  ;;  %v5739_v25 = vcombine.low %v3283_v12, %v3295_v13  ;;  %v3284_v13 = vld [vmem:[#allocation7 + $0x4a0] sm:$0xff] }
 0x522   : > { %4302 = vmatpush1.bf16.msra.mxu0 %v5637_v16 }
 0x523   : > { %4303 = vmatprep.subr.bf16.mxu0 %v5614_v19  ;;  %v3258_v19 = vld [vmem:[#allocation7 + $0x3d0] sm:$0xff] }
 0x526   : > { %4304 = vmatpush1.bf16.msra.mxu0 %v5613_v20 }
 0x527   : > { %4305 = vmatprep.subr.bf16.mxu0 %v5590_v56  ;;  %v5641_v56 = vcombine.low %v3186_v44, %v3198_v45 }
 0x52a   : > { %4306 = vmatpush1.bf16.msra.mxu0 %v5589_v58 }
 0x5cd   : > { %v3044_v22 = vpop.f32.mrf.mxu0 }
 0x5ce   : > { %v3045_v23 = vadd.f32 %v5580_v21, %v3044_v22  ;;  %v3270_v21 = vld [vmem:[#allocation7 + $0x430] sm:$0xff]  ;;  %v3259_v22 = vld [vmem:[#allocation7 + $0x3d8] sm:$0xff] }
 0x5cf   : > { %v6133_v24 = vpop.f32.mrf.mxu0  ;;  %v5714_v26 = vcombine.high %v3258_v19, %v3270_v21  ;;  %v5713_v32 = vcombine.low %v3258_v19, %v3270_v21 }
 0x5d0   : > { %v3050_v27 = vmax.f32 %v3045_v23, 0.0  ;;  %v3271_v23 = vld [vmem:[#allocation7 + $0x438] sm:$0xff]  ;;  %v5737_v24 = vcombine.low %v3282_v9, %v3294_v11 }
 0x5d1   : > { %v3047_v28 = vpop.f32.mrf.mxu0  ;;  %v5715_v33 = vcombine.low %v3259_v22, %v3271_v23 }
 0x5d2   : > { %v3051_v29 = vpack.c.bf16 %v3050_v27, %v3050_v27  ;;  %v5716_v27 = vcombine.high %v3259_v22, %v3271_v23  ;;  %v3234_v28 = vld [vmem:[#allocation7 + $0x310] sm:$0xff]  ;;  %v3260_v22 = vld [vmem:[#allocation7 + $0x3e0] sm:$0xff] }
 0x5d3   : > { %v6134_v31 = vpop.f32.mrf.mxu0  ;;  %v3272_v23 = vld [vmem:[#allocation7 + $0x440] sm:$0xff] }
 0x5d4   : > { %6144 = vmatmul.mubr.msk.bf16.vlgmr.msra.gmra.mxu1 %vm2820_vm2, %v3051_v29  ;;  %v3246_v29 = vld [vmem:[#allocation7 + $0x370] sm:$0xff]  ;;  %v3247_v31 = vld [vmem:[#allocation7 + $0x378] sm:$0xff] }
 0x5d5   : > { %4333 = vmatpush1.bf16.msra.mxu1 %v5759_v61  ;;  %v3306_v61 = vld [vmem:[#allocation7 + $0x550] sm:$0xff]  ;;  %4364 = vmatprep.mubr.bf16.mxu1 %v6645_v5  ;;  %v5689_v40 = vcombine.low %v3234_v28, %v3246_v29 }
 0x5d6   : > { %4334 = vmatprep.subr.bf16.mxu1 %v5736_v30  ;;  %v5762_v62 = vcombine.high %v3306_v61, %v3318_v63  ;;  %v5761_v2 = vcombine.low %v3306_v61, %v3318_v63  ;;  %v3235_v30 = vld [vmem:[#allocation7 + $0x318] sm:$0xff]  ;;  %v3150_v61 = vld [vmem:[#allocation7 + $0x70] sm:$0xff] }
 0x5d7   : > { %v5691_v41 = vcombine.low %v3235_v30, %v3247_v31  ;;  %v3139_v63 = vld [vmem:[#allocation7 + $0x18] sm:$0xff] }
 0x5d8   : > { %4373 = vmatprep.subr.bf16.mxu0 %v5762_v62 }
 0x5d9   : > { %4335 = vmatpush1.bf16.msra.mxu1 %v5735_v34  ;;  %v5690_v34 = vcombine.high %v3234_v28, %v3246_v29  ;;  %v5718_v28 = vcombine.high %v3260_v22, %v3272_v23 }
 0x5da   : > { %4336 = vmatprep.subr.bf16.mxu1 %v5712_v35  ;;  %v5692_v35 = vcombine.high %v3235_v30, %v3247_v31  ;;  %v3236_v30 = vld [vmem:[#allocation7 + $0x320] sm:$0xff] }
 0x5db   : > { %v3248_v31 = vld [vmem:[#allocation7 + $0x380] sm:$0xff] }
 0x5dd   : > { %4337 = vmatpush1.bf16.msra.mxu1 %v5711_v38  ;;  %v3211_v38 = vld [vmem:[#allocation7 + $0x258] sm:$0xff] }
 0x5de   : > { %4338 = vmatprep.subr.bf16.mxu1 %v5688_v39  ;;  %v3223_v39 = vld [vmem:[#allocation7 + $0x2b8] sm:$0xff] }
 0x5df   : > { %v5667_v49 = vcombine.low %v3211_v38, %v3223_v39 }
 0x5e1   : > { %4339 = vmatpush1.bf16.msra.mxu1 %v5687_v42  ;;  %v5666_v42 = vcombine.high %v3210_v36, %v3222_v37  ;;  %v5694_v36 = vcombine.high %v3236_v30, %v3248_v31 }
 0x5e2   : > { %4340 = vmatprep.subr.bf16.mxu1 %v5664_v43  ;;  %v5668_v43 = vcombine.high %v3211_v38, %v3223_v39  ;;  %v3212_v38 = vld [vmem:[#allocation7 + $0x260] sm:$0xff] }
 0x5e3   : > { %v3224_v39 = vld [vmem:[#allocation7 + $0x2c0] sm:$0xff] }
 0x5e5   : > { %4341 = vmatpush1.bf16.msra.mxu1 %v5663_v46  ;;  %v3187_v46 = vld [vmem:[#allocation7 + $0x198] sm:$0xff] }
 0x5e6   : > { %4342 = vmatprep.subr.bf16.mxu1 %v5640_v47  ;;  %v3199_v47 = vld [vmem:[#allocation7 + $0x1f8] sm:$0xff] }
 0x5e7   : > { %v5643_v57 = vcombine.low %v3187_v46, %v3199_v47 }
 0x5e9   : > { %4343 = vmatpush1.bf16.msra.mxu1 %v5639_v50  ;;  %v5642_v50 = vcombine.high %v3186_v44, %v3198_v45  ;;  %v5670_v44 = vcombine.high %v3212_v38, %v3224_v39 }
 0x5ea   : > { %4344 = vmatprep.subr.bf16.mxu1 %v5616_v51  ;;  %v5644_v51 = vcombine.high %v3187_v46, %v3199_v47  ;;  %v3188_v46 = vld [vmem:[#allocation7 + $0x1a0] sm:$0xff] }
 0x5eb   : > { %v3200_v47 = vld [vmem:[#allocation7 + $0x200] sm:$0xff] }
 0x5ed   : > { %4345 = vmatpush1.bf16.msra.mxu1 %v5615_v52  ;;  %v3162_v52 = vld [vmem:[#allocation7 + $0xd0] sm:$0xff] }
 0x5ee   : > { %4346 = vmatprep.subr.bf16.mxu1 %v5592_v60  ;;  %v5618_v58 = vcombine.high %v3162_v52, %v3174_v53  ;;  %v3138_v60 = vld [vmem:[#allocation7 + $0x10] sm:$0xff]  ;;  %v5617_v62 = vcombine.low %v3162_v52, %v3174_v53  ;;  %v5646_v52 = vcombine.high %v3188_v46, %v3200_v47 }
 0x5ef   : > { %v5593_v9 = vcombine.low %v3138_v60, %v3150_v61 }
 0x5f1   : > { %4347 = vmatpush1.bf16.msra.mxu1 %v5591_v59  ;;  %v5620_v59 = vcombine.high %v3163_v54, %v3175_v55  ;;  %v3164_v54 = vld [vmem:[#allocation7 + $0xe0] sm:$0xff] }
 0x5f2   : > { %4414 = vmatprep.subr.bf16.mxu1 %v5764_v4  ;;  %v3308_v4 = vld [vmem:[#allocation7 + $0x560] sm:$0xff] }
 0x5f3   : > { %v3176_v55 = vld [vmem:[#allocation7 + $0x140] sm:$0xff] }
 0x694   : > { %v3128_v7 = vpop.f32.mrf.mxu1 }
 0x695   : > { %v3129_v8 = vadd.f32 %v5583_v6, %v3128_v7  ;;  %v3320_v6 = vld [vmem:[#allocation7 + $0x5c0] sm:$0xff]  ;;  %v3309_v7 = vld [vmem:[#allocation7 + $0x568] sm:$0xff] }
 0x696   : > { %v6145_v10 = vpop.f32.mrf.mxu1  ;;  %v5766_v11 = vcombine.high %v3308_v4, %v3320_v6 }
 0x697   : > { %v3134_v14 = vmax.f32 %v3129_v8, 0.0  ;;  %v3321_v8 = vld [vmem:[#allocation7 + $0x5c8] sm:$0xff]  ;;  %v5595_v10 = vcombine.low %v3139_v63, %v3151_v0 }
 0x698   : > { %v3131_v15 = vpop.f32.mrf.mxu1  ;;  %v5768_v12 = vcombine.high %v3309_v7, %v3321_v8  ;;  %v5767_v19 = vcombine.low %v3309_v7, %v3321_v8  ;;  %v3310_v7 = vld [vmem:[#allocation7 + $0x570] sm:$0xff] }
 0x699   : > { %v7010_v16 = vpack.c.bf16 %v3134_v14, %v3134_v14  ;;  %v3296_v14 = vld [vmem:[#allocation7 + $0x500] sm:$0xff]  ;;  %v3285_v15 = vld [vmem:[#allocation7 + $0x4a8] sm:$0xff]  ;;  %v3322_v8 = vld [vmem:[#allocation7 + $0x5d0] sm:$0xff] }
 0x69a   : > { %v6146_v20 = vpop.f32.mrf.mxu1 }
 0x69b   : > { %4324 = vmatmul.mubr.bf16.vlgmr.msra.gmra.mxu0 %v7010_v16  ;;  %4365 = vmatmul.mubr.bf16.vlgmr.msra.gmra.mxu1 %v7010_v16  ;;  %v5742_v20 = vcombine.high %v3284_v13, %v3296_v14 }
 0x69c   : > { %4374 = vmatpush1.bf16.msra.mxu0 %v5761_v2  ;;  %4415 = vmatpush1.bf16.msra.mxu1 %v5763_v3  ;;  %v5594_v2 = vcombine.high %v3138_v60, %v3150_v61  ;;  %v5596_v3 = vcombine.high %v3139_v63, %v3151_v0  ;;  %v5622_v60 = vcombine.high %v3164_v54, %v3176_v55  ;;  %v3140_v63 = vld [vmem:[#allocation7 + $0x20] sm:$0xff] }
 0x69d   : > { %4375 = vmatprep.subr.bf16.mxu0 %v5738_v17  ;;  %4416 = vmatprep.subr.bf16.mxu1 %v5740_v18  ;;  %v3297_v17 = vld [vmem:[#allocation7 + $0x508] sm:$0xff]  ;;  %v5765_v18 = vcombine.low %v3308_v4, %v3320_v6  ;;  %v3152_v0 = vld [vmem:[#allocation7 + $0x80] sm:$0xff] }
 0x69e   : > { %4405 = vmatprep.mubr.bf16.mxu0 %v6645_v5  ;;  %4446 = vmatprep.mubr.bf16.mxu1 %v6645_v5  ;;  %v5744_v21 = vcombine.high %v3285_v15, %v3297_v17  ;;  %v5598_v4 = vcombine.high %v3140_v63, %v3152_v0 }
 0x6a0   : > { %4376 = vmatpush1.bf16.msra.mxu0 %v5737_v24  ;;  %4417 = vmatpush1.bf16.msra.mxu1 %v5739_v25  ;;  %v3261_v24 = vld [vmem:[#allocation7 + $0x3e8] sm:$0xff] }
 0x6a1   : > { %4377 = vmatprep.subr.bf16.mxu0 %v5714_v26  ;;  %4418 = vmatprep.subr.bf16.mxu1 %v5716_v27  ;;  %v3273_v25 = vld [vmem:[#allocation7 + $0x448] sm:$0xff]  ;;  %v5741_v26 = vcombine.low %v3284_v13, %v3296_v14  ;;  %v5743_v27 = vcombine.low %v3285_v15, %v3297_v17  ;;  %v5770_v13 = vcombine.high %v3310_v7, %v3322_v8  ;;  %v3286_v15 = vld [vmem:[#allocation7 + $0x4b0] sm:$0xff] }
 0x6a2   : > { %v5720_v29 = vcombine.high %v3261_v24, %v3273_v25  ;;  %v3298_v17 = vld [vmem:[#allocation7 + $0x510] sm:$0xff] }
 0x6a4   : > { %4378 = vmatpush1.bf16.msra.mxu0 %v5713_v32  ;;  %4419 = vmatpush1.bf16.msra.mxu1 %v5715_v33  ;;  %v3237_v32 = vld [vmem:[#allocation7 + $0x328] sm:$0xff] }
 0x6a5   : > { %4379 = vmatprep.subr.bf16.mxu0 %v5690_v34  ;;  %4420 = vmatprep.subr.bf16.mxu1 %v5692_v35  ;;  %v3249_v33 = vld [vmem:[#allocation7 + $0x388] sm:$0xff]  ;;  %v5717_v34 = vcombine.low %v3260_v22, %v3272_v23  ;;  %v5719_v35 = vcombine.low %v3261_v24, %v3273_v25  ;;  %v5746_v22 = vcombine.high %v3286_v15, %v3298_v17  ;;  %v3262_v24 = vld [vmem:[#allocation7 + $0x3f0] sm:$0xff] }
 0x6a6   : > { %v5696_v37 = vcombine.high %v3237_v32, %v3249_v33  ;;  %v3274_v25 = vld [vmem:[#allocation7 + $0x450] sm:$0xff] }
 0x6a8   : > { %4380 = vmatpush1.bf16.msra.mxu0 %v5689_v40  ;;  %4421 = vmatpush1.bf16.msra.mxu1 %v5691_v41  ;;  %v3213_v40 = vld [vmem:[#allocation7 + $0x268] sm:$0xff] }
 0x6a9   : > { %4381 = vmatprep.subr.bf16.mxu0 %v5666_v42  ;;  %4422 = vmatprep.subr.bf16.mxu1 %v5668_v43  ;;  %v3225_v41 = vld [vmem:[#allocation7 + $0x2c8] sm:$0xff]  ;;  %v5693_v42 = vcombine.low %v3236_v30, %v3248_v31  ;;  %v5695_v43 = vcombine.low %v3237_v32, %v3249_v33  ;;  %v5722_v30 = vcombine.high %v3262_v24, %v3274_v25  ;;  %v3238_v32 = vld [vmem:[#allocation7 + $0x330] sm:$0xff] }
 0x6aa   : > { %v5672_v45 = vcombine.high %v3213_v40, %v3225_v41  ;;  %v3250_v33 = vld [vmem:[#allocation7 + $0x390] sm:$0xff] }
 0x6ac   : > { %4382 = vmatpush1.bf16.msra.mxu0 %v5665_v48  ;;  %4423 = vmatpush1.bf16.msra.mxu1 %v5667_v49  ;;  %v3189_v48 = vld [vmem:[#allocation7 + $0x1a8] sm:$0xff] }
 0x6ad   : > { %4383 = vmatprep.subr.bf16.mxu0 %v5642_v50  ;;  %4424 = vmatprep.subr.bf16.mxu1 %v5644_v51  ;;  %v3201_v49 = vld [vmem:[#allocation7 + $0x208] sm:$0xff]  ;;  %v5669_v50 = vcombine.low %v3212_v38, %v3224_v39  ;;  %v5671_v51 = vcombine.low %v3213_v40, %v3225_v41  ;;  %v5698_v38 = vcombine.high %v3238_v32, %v3250_v33  ;;  %v3214_v40 = vld [vmem:[#allocation7 + $0x270] sm:$0xff] }
 0x6ae   : > { %v5648_v53 = vcombine.high %v3189_v48, %v3201_v49  ;;  %v3226_v41 = vld [vmem:[#allocation7 + $0x2d0] sm:$0xff] }
 0x6b0   : > { %4384 = vmatpush1.bf16.msra.mxu0 %v5641_v56  ;;  %4425 = vmatpush1.bf16.msra.mxu1 %v5643_v57  ;;  %v3165_v56 = vld [vmem:[#allocation7 + $0xe8] sm:$0xff] }
 0x6b1   : > { %4385 = vmatprep.subr.bf16.mxu0 %v5618_v58  ;;  %4426 = vmatprep.subr.bf16.mxu1 %v5620_v59  ;;  %v3177_v57 = vld [vmem:[#allocation7 + $0x148] sm:$0xff]  ;;  %v5645_v58 = vcombine.low %v3188_v46, %v3200_v47  ;;  %v5647_v59 = vcombine.low %v3189_v48, %v3201_v49  ;;  %v5674_v46 = vcombine.high %v3214_v40, %v3226_v41  ;;  %v3190_v48 = vld [vmem:[#allocation7 + $0x1b0] sm:$0xff] }
 0x6b2   : > { %v5624_v61 = vcombine.high %v3165_v56, %v3177_v57  ;;  %v3202_v49 = vld [vmem:[#allocation7 + $0x210] sm:$0xff] }
 0x6b4   : > { %4386 = vmatpush1.bf16.msra.mxu0 %v5617_v62  ;;  %4427 = vmatpush1.bf16.msra.mxu1 %v5619_v1  ;;  %v3141_v62 = vld [vmem:[#allocation7 + $0x28] sm:$0xff] }
 0x6b5   : > { %4387 = vmatprep.subr.bf16.mxu0 %v5594_v2  ;;  %4428 = vmatprep.subr.bf16.mxu1 %v5596_v3  ;;  %v3153_v1 = vld [vmem:[#allocation7 + $0x88] sm:$0xff]  ;;  %v5621_v2 = vcombine.low %v3164_v54, %v3176_v55  ;;  %v5623_v3 = vcombine.low %v3165_v56, %v3177_v57  ;;  %v5650_v54 = vcombine.high %v3190_v48, %v3202_v49  ;;  %v3166_v56 = vld [vmem:[#allocation7 + $0xf0] sm:$0xff] }
 0x6b6   : > { %v5600_v6 = vcombine.high %v3141_v62, %v3153_v1  ;;  %v3178_v57 = vld [vmem:[#allocation7 + $0x150] sm:$0xff] }
 0x6b8   : > { %4388 = vmatpush1.bf16.msra.mxu0 %v5593_v9  ;;  %4429 = vmatpush1.bf16.msra.mxu1 %v5595_v10  ;;  %v3311_v9 = vld [vmem:[#allocation7 + $0x578] sm:$0xff] }
 0x6b9   : > { %4455 = vmatprep.subr.bf16.mxu0 %v5766_v11  ;;  %4496 = vmatprep.subr.bf16.mxu1 %v5768_v12  ;;  %v3323_v10 = vld [vmem:[#allocation7 + $0x5d8] sm:$0xff]  ;;  %v5597_v11 = vcombine.low %v3140_v63, %v3152_v0  ;;  %v5599_v12 = vcombine.low %v3141_v62, %v3153_v1  ;;  %v5626_v63 = vcombine.high %v3166_v56, %v3178_v57  ;;  %v3142_v62 = vld [vmem:[#allocation7 + $0x30] sm:$0xff] }
 0x6ba   : > { %v5772_v14 = vcombine.high %v3311_v9, %v3323_v10  ;;  %v3154_v1 = vld [vmem:[#allocation7 + $0x90] sm:$0xff] }
 0x6bb   : > { %4406 = vmatmul.mubr.bf16.vlgmr.msra.gmra.mxu0 %v7010_v16  ;;  %4447 = vmatmul.mubr.bf16.vlgmr.msra.gmra.mxu1 %v7010_v16 }
 0x6bc   : > { %4456 = vmatpush1.bf16.msra.mxu0 %v5765_v18  ;;  %4497 = vmatpush1.bf16.msra.mxu1 %v5767_v19  ;;  %v3287_v18 = vld [vmem:[#allocation7 + $0x4b8] sm:$0xff] }
 0x6bd   : > { %4457 = vmatprep.subr.bf16.mxu0 %v5742_v20  ;;  %4498 = vmatprep.subr.bf16.mxu1 %v5744_v21  ;;  %v3299_v19 = vld [vmem:[#allocation7 + $0x518] sm:$0xff]  ;;  %v5769_v20 = vcombine.low %v3310_v7, %v3322_v8  ;;  %v5771_v21 = vcombine.low %v3311_v9, %v3323_v10  ;;  %v5602_v7 = vcombine.high %v3142_v62, %v3154_v1  ;;  %v3312_v9 = vld [vmem:[#allocation7 + $0x580] sm:$0xff] }
 0x6be   : > { %4487 = vmatprep.mubr.bf16.mxu0 %v6645_v5  ;;  %4528 = vmatprep.mubr.bf16.mxu1 %v6645_v5  ;;  %v5748_v23 = vcombine.high %v3287_v18, %v3299_v19  ;;  %v3324_v10 = vld [vmem:[#allocation7 + $0x5e0] sm:$0xff] }
 0x6c0   : > { %4458 = vmatpush1.bf16.msra.mxu0 %v5741_v26  ;;  %4499 = vmatpush1.bf16.msra.mxu1 %v5743_v27  ;;  %v3263_v26 = vld [vmem:[#allocation7 + $0x3f8] sm:$0xff] }
 0x6c1   : > { %4459 = vmatprep.subr.bf16.mxu0 %v5718_v28  ;;  %4500 = vmatprep.subr.bf16.mxu1 %v5720_v29  ;;  %v3275_v27 = vld [vmem:[#allocation7 + $0x458] sm:$0xff]  ;;  %v5745_v28 = vcombine.low %v3286_v15, %v3298_v17  ;;  %v5747_v29 = vcombine.low %v3287_v18, %v3299_v19  ;;  %v5774_v15 = vcombine.high %v3312_v9, %v3324_v10  ;;  %v3288_v18 = vld [vmem:[#allocation7 + $0x4c0] sm:$0xff] }
 0x6c2   : > { %v5724_v31 = vcombine.high %v3263_v26, %v3275_v27  ;;  %v3300_v19 = vld [vmem:[#allocation7 + $0x520] sm:$0xff] }
 0x6c4   : > { %4460 = vmatpush1.bf16.msra.mxu0 %v5717_v34  ;;  %4501 = vmatpush1.bf16.msra.mxu1 %v5719_v35  ;;  %v3239_v34 = vld [vmem:[#allocation7 + $0x338] sm:$0xff] }
 0x6c5   : > { %4461 = vmatprep.subr.bf16.mxu0 %v5694_v36  ;;  %4502 = vmatprep.subr.bf16.mxu1 %v5696_v37  ;;  %v3251_v35 = vld [vmem:[#allocation7 + $0x398] sm:$0xff]  ;;  %v5721_v36 = vcombine.low %v3262_v24, %v3274_v25  ;;  %v5723_v37 = vcombine.low %v3263_v26, %v3275_v27  ;;  %v5750_v24 = vcombine.high %v3288_v18, %v3300_v19  ;;  %v3264_v26 = vld [vmem:[#allocation7 + $0x400] sm:$0xff] }
 0x6c6   : > { %v5700_v39 = vcombine.high %v3239_v34, %v3251_v35  ;;  %v3276_v27 = vld [vmem:[#allocation7 + $0x460] sm:$0xff] }
 0x6c8   : > { %4462 = vmatpush1.bf16.msra.mxu0 %v5693_v42  ;;  %4503 = vmatpush1.bf16.msra.mxu1 %v5695_v43  ;;  %v3215_v42 = vld [vmem:[#allocation7 + $0x278] sm:$0xff] }
 0x6c9   : > { %4463 = vmatprep.subr.bf16.mxu0 %v5670_v44  ;;  %4504 = vmatprep.subr.bf16.mxu1 %v5672_v45  ;;  %v3227_v43 = vld [vmem:[#allocation7 + $0x2d8] sm:$0xff]  ;;  %v5697_v44 = vcombine.low %v3238_v32, %v3250_v33  ;;  %v5699_v45 = vcombine.low %v3239_v34, %v3251_v35  ;;  %v5726_v32 = vcombine.high %v3264_v26, %v3276_v27  ;;  %v3240_v34 = vld [vmem:[#allocation7 + $0x340] sm:$0xff] }
 0x6ca   : > { %v5676_v47 = vcombine.high %v3215_v42, %v3227_v43  ;;  %v3252_v35 = vld [vmem:[#allocation7 + $0x3a0] sm:$0xff] }
 0x6cc   : > { %4464 = vmatpush1.bf16.msra.mxu0 %v5669_v50  ;;  %4505 = vmatpush1.bf16.msra.mxu1 %v5671_v51  ;;  %v3191_v50 = vld [vmem:[#allocation7 + $0x1b8] sm:$0xff] }
 0x6cd   : > { %4465 = vmatprep.subr.bf16.mxu0 %v5646_v52  ;;  %4506 = vmatprep.subr.bf16.mxu1 %v5648_v53  ;;  %v3203_v51 = vld [vmem:[#allocation7 + $0x218] sm:$0xff]  ;;  %v5673_v52 = vcombine.low %v3214_v40, %v3226_v41  ;;  %v5675_v53 = vcombine.low %v3215_v42, %v3227_v43  ;;  %v5702_v40 = vcombine.high %v3240_v34, %v3252_v35  ;;  %v3216_v42 = vld [vmem:[#allocation7 + $0x280] sm:$0xff] }
 0x6ce   : > { %v5652_v55 = vcombine.high %v3191_v50, %v3203_v51  ;;  %v3228_v43 = vld [vmem:[#allocation7 + $0x2e0] sm:$0xff] }
 0x6d0   : > { %4466 = vmatpush1.bf16.msra.mxu0 %v5645_v58  ;;  %4507 = vmatpush1.bf16.msra.mxu1 %v5647_v59  ;;  %v3167_v58 = vld [vmem:[#allocation7 + $0xf8] sm:$0xff] }
 0x6d1   : > { %4467 = vmatprep.subr.bf16.mxu0 %v5622_v60  ;;  %4508 = vmatprep.subr.bf16.mxu1 %v5624_v61  ;;  %v3179_v59 = vld [vmem:[#allocation7 + $0x158] sm:$0xff]  ;;  %v5649_v60 = vcombine.low %v3190_v48, %v3202_v49  ;;  %v5651_v61 = vcombine.low %v3191_v50, %v3203_v51  ;;  %v5678_v48 = vcombine.high %v3216_v42, %v3228_v43  ;;  %v3192_v50 = vld [vmem:[#allocation7 + $0x1c0] sm:$0xff] }
 0x6d2   : > { %v5628_v0 = vcombine.high %v3167_v58, %v3179_v59  ;;  %v3204_v51 = vld [vmem:[#allocation7 + $0x220] sm:$0xff] }
 0x6d4   : > { %4468 = vmatpush1.bf16.msra.mxu0 %v5621_v2  ;;  %4509 = vmatpush1.bf16.msra.mxu1 %v5623_v3  ;;  %v3143_v2 = vld [vmem:[#allocation7 + $0x38] sm:$0xff] }
 0x6d5   : > { %4469 = vmatprep.subr.bf16.mxu0 %v5598_v4  ;;  %4510 = vmatprep.subr.bf16.mxu1 %v5600_v6  ;;  %v3155_v3 = vld [vmem:[#allocation7 + $0x98] sm:$0xff]  ;;  %v5625_v4 = vcombine.low %v3166_v56, %v3178_v57  ;;  %v5627_v6 = vcombine.low %v3167_v58, %v3179_v59  ;;  %v5654_v56 = vcombine.high %v3192_v50, %v3204_v51  ;;  %v3168_v58 = vld [vmem:[#allocation7 + $0x100] sm:$0xff] }
 0x6d6   : > { %v5604_v8 = vcombine.high %v3143_v2, %v3155_v3  ;;  %v3180_v59 = vld [vmem:[#allocation7 + $0x160] sm:$0xff] }
 0x6d8   : > { %4470 = vmatpush1.bf16.msra.mxu0 %v5597_v11  ;;  %4511 = vmatpush1.bf16.msra.mxu1 %v5599_v12  ;;  %v3313_v11 = vld [vmem:[#allocation7 + $0x588] sm:$0xff] }
 0x6d9   : > { %4537 = vmatprep.subr.bf16.mxu0 %v5770_v13  ;;  %4578 = vmatprep.subr.bf16.mxu1 %v5772_v14  ;;  %v3325_v12 = vld [vmem:[#allocation7 + $0x5e8] sm:$0xff]  ;;  %v5601_v13 = vcombine.low %v3142_v62, %v3154_v1  ;;  %v5603_v14 = vcombine.low %v3143_v2, %v3155_v3  ;;  %v5630_v62 = vcombine.high %v3168_v58, %v3180_v59  ;;  %v3144_v2 = vld [vmem:[#allocation7 + $0x40] sm:$0xff] }
 0x6da   : > { %v5776_v17 = vcombine.high %v3313_v11, %v3325_v12  ;;  %v3156_v3 = vld [vmem:[#allocation7 + $0xa0] sm:$0xff] }
 0x6db   : > { %4488 = vmatmul.mubr.bf16.vlgmr.msra.gmra.mxu0 %v7010_v16  ;;  %4529 = vmatmul.mubr.bf16.vlgmr.msra.gmra.mxu1 %v7010_v16 }
 0x6dc   : > { %4538 = vmatpush1.bf16.msra.mxu0 %v5769_v20  ;;  %4579 = vmatpush1.bf16.msra.mxu1 %v5771_v21  ;;  %v3289_v20 = vld [vmem:[#allocation7 + $0x4c8] sm:$0xff] }
 0x6dd   : > { %4539 = vmatprep.subr.bf16.mxu0 %v5746_v22  ;;  %4580 = vmatprep.subr.bf16.mxu1 %v5748_v23  ;;  %v3301_v21 = vld [vmem:[#allocation7 + $0x528] sm:$0xff]  ;;  %v5773_v22 = vcombine.low %v3312_v9, %v3324_v10  ;;  %v5775_v23 = vcombine.low %v3313_v11, %v3325_v12  ;;  %v5606_v9 = vcombine.high %v3144_v2, %v3156_v3  ;;  %v3314_v11 = vld [vmem:[#allocation7 + $0x590] sm:$0xff] }
 0x6de   : > { %4569 = vmatprep.mubr.bf16.mxu0 %v6645_v5  ;;  %4610 = vmatprep.mubr.bf16.mxu1 %v6645_v5  ;;  %v5752_v25 = vcombine.high %v3289_v20, %v3301_v21  ;;  %v3326_v12 = vld [vmem:[#allocation7 + $0x5f0] sm:$0xff] }
 0x6e0   : > { %4540 = vmatpush1.bf16.msra.mxu0 %v5745_v28  ;;  %4581 = vmatpush1.bf16.msra.mxu1 %v5747_v29  ;;  %v3265_v28 = vld [vmem:[#allocation7 + $0x408] sm:$0xff] }
 0x6e1   : > { %4541 = vmatprep.subr.bf16.mxu0 %v5722_v30  ;;  %4582 = vmatprep.subr.bf16.mxu1 %v5724_v31  ;;  %v3277_v29 = vld [vmem:[#allocation7 + $0x468] sm:$0xff]  ;;  %v5749_v30 = vcombine.low %v3288_v18, %v3300_v19  ;;  %v5751_v31 = vcombine.low %v3289_v20, %v3301_v21  ;;  %v5778_v18 = vcombine.high %v3314_v11, %v3326_v12  ;;  %v3290_v20 = vld [vmem:[#allocation7 + $0x4d0] sm:$0xff] }
 0x6e2   : > { %v5728_v33 = vcombine.high %v3265_v28, %v3277_v29  ;;  %v3302_v21 = vld [vmem:[#allocation7 + $0x530] sm:$0xff] }
 0x6e4   : > { %4542 = vmatpush1.bf16.msra.mxu0 %v5721_v36  ;;  %4583 = vmatpush1.bf16.msra.mxu1 %v5723_v37  ;;  %v3241_v36 = vld [vmem:[#allocation7 + $0x348] sm:$0xff] }
 0x6e5   : > { %4543 = vmatprep.subr.bf16.mxu0 %v5698_v38  ;;  %4584 = vmatprep.subr.bf16.mxu1 %v5700_v39  ;;  %v3253_v37 = vld [vmem:[#allocation7 + $0x3a8] sm:$0xff]  ;;  %v5725_v38 = vcombine.low %v3264_v26, %v3276_v27  ;;  %v5727_v39 = vcombine.low %v3265_v28, %v3277_v29  ;;  %v5754_v26 = vcombine.high %v3290_v20, %v3302_v21  ;;  %v3266_v28 = vld [vmem:[#allocation7 + $0x410] sm:$0xff] }
 0x6e6   : > { %v5704_v41 = vcombine.high %v3241_v36, %v3253_v37  ;;  %v3278_v29 = vld [vmem:[#allocation7 + $0x470] sm:$0xff] }
 0x6e8   : > { %4544 = vmatpush1.bf16.msra.mxu0 %v5697_v44  ;;  %4585 = vmatpush1.bf16.msra.mxu1 %v5699_v45  ;;  %v3217_v44 = vld [vmem:[#allocation7 + $0x288] sm:$0xff] }
 0x6e9   : > { %4545 = vmatprep.subr.bf16.mxu0 %v5674_v46  ;;  %4586 = vmatprep.subr.bf16.mxu1 %v5676_v47  ;;  %v3229_v45 = vld [vmem:[#allocation7 + $0x2e8] sm:$0xff]  ;;  %v5701_v46 = vcombine.low %v3240_v34, %v3252_v35  ;;  %v5703_v47 = vcombine.low %v3241_v36, %v3253_v37  ;;  %v5730_v34 = vcombine.high %v3266_v28, %v3278_v29  ;;  %v3242_v36 = vld [vmem:[#allocation7 + $0x350] sm:$0xff] }
 0x6ea   : > { %v5680_v49 = vcombine.high %v3217_v44, %v3229_v45  ;;  %v3254_v37 = vld [vmem:[#allocation7 + $0x3b0] sm:$0xff] }
 0x6ec   : > { %4546 = vmatpush1.bf16.msra.mxu0 %v5673_v52  ;;  %4587 = vmatpush1.bf16.msra.mxu1 %v5675_v53  ;;  %v3193_v52 = vld [vmem:[#allocation7 + $0x1c8] sm:$0xff] }
 0x6ed   : > { %4547 = vmatprep.subr.bf16.mxu0 %v5650_v54  ;;  %4588 = vmatprep.subr.bf16.mxu1 %v5652_v55  ;;  %v3205_v53 = vld [vmem:[#allocation7 + $0x228] sm:$0xff]  ;;  %v5677_v54 = vcombine.low %v3216_v42, %v3228_v43  ;;  %v5679_v55 = vcombine.low %v3217_v44, %v3229_v45  ;;  %v5706_v42 = vcombine.high %v3242_v36, %v3254_v37  ;;  %v3218_v44 = vld [vmem:[#allocation7 + $0x290] sm:$0xff] }
 0x6ee   : > { %v5656_v57 = vcombine.high %v3193_v52, %v3205_v53  ;;  %v3230_v45 = vld [vmem:[#allocation7 + $0x2f0] sm:$0xff] }
 0x6f0   : > { %4548 = vmatpush1.bf16.msra.mxu0 %v5649_v60  ;;  %4589 = vmatpush1.bf16.msra.mxu1 %v5651_v61  ;;  %v3169_v60 = vld [vmem:[#allocation7 + $0x108] sm:$0xff] }
 0x6f1   : > { %4549 = vmatprep.subr.bf16.mxu0 %v5626_v63  ;;  %4590 = vmatprep.subr.bf16.mxu1 %v5628_v0  ;;  %v3181_v61 = vld [vmem:[#allocation7 + $0x168] sm:$0xff]  ;;  %v5653_v63 = vcombine.low %v3192_v50, %v3204_v51  ;;  %v5655_v0 = vcombine.low %v3193_v52, %v3205_v53  ;;  %v5682_v50 = vcombine.high %v3218_v44, %v3230_v45  ;;  %v3194_v51 = vld [vmem:[#allocation7 + $0x1d0] sm:$0xff]  ;;  %v3195_v53 = vld [vmem:[#allocation7 + $0x1d8] sm:$0xff] }
 0x6f2   : > { %v5632_v1 = vcombine.high %v3169_v60, %v3181_v61  ;;  %v3206_v52 = vld [vmem:[#allocation7 + $0x230] sm:$0xff] }
 0x6f4   : > { %4550 = vmatpush1.bf16.msra.mxu0 %v5625_v4  ;;  %4591 = vmatpush1.bf16.msra.mxu1 %v5627_v6  ;;  %v3145_v4 = vld [vmem:[#allocation7 + $0x48] sm:$0xff] }
 0x6f5   : > { %4551 = vmatprep.subr.bf16.mxu0 %v5602_v7  ;;  %4592 = vmatprep.subr.bf16.mxu1 %v5604_v8  ;;  %v3157_v6 = vld [vmem:[#allocation7 + $0xa8] sm:$0xff]  ;;  %v5629_v7 = vcombine.low %v3168_v58, %v3180_v59  ;;  %v5631_v8 = vcombine.low %v3169_v60, %v3181_v61  ;;  %v3170_v59 = vld [vmem:[#allocation7 + $0x110] sm:$0xff]  ;;  %v3171_v61 = vld [vmem:[#allocation7 + $0x118] sm:$0xff] }
 0x6f6   : > { %v5608_v10 = vcombine.high %v3145_v4, %v3157_v6  ;;  %v3182_v60 = vld [vmem:[#allocation7 + $0x170] sm:$0xff] }
 0x6f8   : > { %4552 = vmatpush1.bf16.msra.mxu0 %v5601_v13  ;;  %4593 = vmatpush1.bf16.msra.mxu1 %v5603_v14  ;;  %v3315_v13 = vld [vmem:[#allocation7 + $0x598] sm:$0xff] }
 0x6f9   : > { %4619 = vmatprep.subr.bf16.mxu0 %v5774_v15  ;;  %4660 = vmatprep.subr.bf16.mxu1 %v5776_v17  ;;  %v3327_v14 = vld [vmem:[#allocation7 + $0x5f8] sm:$0xff]  ;;  %v5605_v15 = vcombine.low %v3144_v2, %v3156_v3  ;;  %v5607_v17 = vcombine.low %v3145_v4, %v3157_v6  ;;  %v3146_v3 = vld [vmem:[#allocation7 + $0x50] sm:$0xff] }
 0x6fa   : > { %v5780_v19 = vcombine.high %v3315_v13, %v3327_v14  ;;  %v3158_v4 = vld [vmem:[#allocation7 + $0xb0] sm:$0xff]  ;;  %v3147_v6 = vld [vmem:[#allocation7 + $0x58] sm:$0xff] }
 0x6fb   : > { %4570 = vmatmul.mubr.bf16.vlgmr.msra.gmra.mxu0 %v7010_v16  ;;  %4611 = vmatmul.mubr.bf16.vlgmr.msra.gmra.mxu1 %v7010_v16 }
 0x6fc   : > { %4620 = vmatpush1.bf16.msra.mxu0 %v5773_v22  ;;  %4661 = vmatpush1.bf16.msra.mxu1 %v5775_v23  ;;  %v3291_v22 = vld [vmem:[#allocation7 + $0x4d8] sm:$0xff] }
 0x6fd   : > { %4621 = vmatprep.subr.bf16.mxu0 %v5750_v24  ;;  %4662 = vmatprep.subr.bf16.mxu1 %v5752_v25  ;;  %v3303_v23 = vld [vmem:[#allocation7 + $0x538] sm:$0xff]  ;;  %v5777_v24 = vcombine.low %v3314_v11, %v3326_v12  ;;  %v5779_v25 = vcombine.low %v3315_v13, %v3327_v14  ;;  %v5609_v12 = vcombine.low %v3146_v3, %v3158_v4  ;;  %v4810_v14 = vlaneseq }
 0x6fe   : > { %4651 = vmatprep.mubr.bf16.mxu0 %v6645_v5  ;;  %4692 = vmatprep.mubr.bf16.mxu1 %v6645_v5  ;;  %v5756_v27 = vcombine.high %v3291_v22, %v3303_v23 }
 0x700   : > { %4622 = vmatpush1.bf16.msra.mxu0 %v5749_v30  ;;  %4663 = vmatpush1.bf16.msra.mxu1 %v5751_v31  ;;  %v3267_v30 = vld [vmem:[#allocation7 + $0x418] sm:$0xff] }
 0x701   : > { %4623 = vmatprep.subr.bf16.mxu0 %v5726_v32  ;;  %4664 = vmatprep.subr.bf16.mxu1 %v5728_v33  ;;  %v3279_v31 = vld [vmem:[#allocation7 + $0x478] sm:$0xff]  ;;  %v5753_v32 = vcombine.low %v3290_v20, %v3302_v21  ;;  %v5755_v33 = vcombine.low %v3291_v22, %v3303_v23 }
 0x702   : > { %v5732_v35 = vcombine.high %v3267_v30, %v3279_v31 }
 0x704   : > { %4624 = vmatpush1.bf16.msra.mxu0 %v5725_v38  ;;  %4665 = vmatpush1.bf16.msra.mxu1 %v5727_v39  ;;  %v3243_v38 = vld [vmem:[#allocation7 + $0x358] sm:$0xff] }
 0x705   : > { %4625 = vmatprep.subr.bf16.mxu0 %v5702_v40  ;;  %4666 = vmatprep.subr.bf16.mxu1 %v5704_v41  ;;  %v3255_v39 = vld [vmem:[#allocation7 + $0x3b8] sm:$0xff]  ;;  %v5729_v40 = vcombine.low %v3266_v28, %v3278_v29  ;;  %v5731_v41 = vcombine.low %v3267_v30, %v3279_v31 }
 0x706   : > { %v5708_v43 = vcombine.high %v3243_v38, %v3255_v39 }
 0x708   : > { %4626 = vmatpush1.bf16.msra.mxu0 %v5701_v46  ;;  %4667 = vmatpush1.bf16.msra.mxu1 %v5703_v47  ;;  %v3219_v46 = vld [vmem:[#allocation7 + $0x298] sm:$0xff] }
 0x709   : > { %4627 = vmatprep.subr.bf16.mxu0 %v5678_v48  ;;  %4668 = vmatprep.subr.bf16.mxu1 %v5680_v49  ;;  %v3231_v47 = vld [vmem:[#allocation7 + $0x2f8] sm:$0xff]  ;;  %v5705_v48 = vcombine.low %v3242_v36, %v3254_v37  ;;  %v5707_v49 = vcombine.low %v3243_v38, %v3255_v39 }
 0x70c   : > { %4628 = vmatpush1.bf16.msra.mxu0 %v5677_v54  ;;  %4669 = vmatpush1.bf16.msra.mxu1 %v5679_v55  ;;  %v3207_v54 = vld [vmem:[#allocation7 + $0x238] sm:$0xff]  ;;  %v5681_v55 = vcombine.low %v3218_v44, %v3230_v45 }
 0x70d   : > { %4629 = vmatprep.subr.bf16.mxu0 %v5654_v56  ;;  %4670 = vmatprep.subr.bf16.mxu1 %v5656_v57  ;;  %v5683_v56 = vcombine.low %v3219_v46, %v3231_v47  ;;  %v5658_v57 = vcombine.high %v3194_v51, %v3206_v52  ;;  %v5660_v58 = vcombine.high %v3195_v53, %v3207_v54 }
 0x710   : > { %4630 = vmatpush1.bf16.msra.mxu0 %v5653_v63  ;;  %4671 = vmatpush1.bf16.msra.mxu1 %v5655_v0  ;;  %v3183_v63 = vld [vmem:[#allocation7 + $0x178] sm:$0xff]  ;;  %v5657_v0 = vcombine.low %v3194_v51, %v3206_v52 }
 0x711   : > { %4631 = vmatprep.subr.bf16.mxu0 %v5630_v62  ;;  %4672 = vmatprep.subr.bf16.mxu1 %v5632_v1  ;;  %v5659_v62 = vcombine.low %v3195_v53, %v3207_v54  ;;  %v5634_v1 = vcombine.high %v3170_v59, %v3182_v60  ;;  %v5636_v2 = vcombine.high %v3171_v61, %v3183_v63 }
 0x714   : > { %4632 = vmatpush1.bf16.msra.mxu0 %v5629_v7  ;;  %4673 = vmatpush1.bf16.msra.mxu1 %v5631_v8  ;;  %v3159_v7 = vld [vmem:[#allocation7 + $0xb8] sm:$0xff]  ;;  %v5633_v8 = vcombine.low %v3170_v59, %v3182_v60 }
 0x715   : > { %4633 = vmatprep.subr.bf16.mxu0 %v5606_v9  ;;  %4674 = vmatprep.subr.bf16.mxu1 %v5608_v10  ;;  %v5635_v9 = vcombine.low %v3171_v61, %v3183_v63  ;;  %v5610_v10 = vcombine.high %v3146_v3, %v3158_v4  ;;  %v5612_v11 = vcombine.high %v3147_v6, %v3159_v7 }
 0x716   : > { %v5611_v13 = vcombine.low %v3147_v6, %v3159_v7 }
 0x718   : > { %4634 = vmatpush1.bf16.msra.mxu0 %v5605_v15  ;;  %4675 = vmatpush1.bf16.msra.mxu1 %v5607_v17  ;;  %v4811_v15 = vshrl.u32 %v4810_v14, 7 }
 0x719   : > { %4701 = vmatprep.subr.bf16.mxu0 %v5778_v18  ;;  %4742 = vmatprep.subr.bf16.mxu1 %v5780_v19  ;;  %v3328_v19 = vld [vmem:[%s7225_s20] sm:$0xff] }
 0x71a   : > { %v7034_v17 = vsub.s32 0, %v4811_v15  ;;  %v7036_v18 = vsub.s32 2, %v4811_v15  ;;  %v7041_v20 = vsub.s32 1, %v4811_v15  ;;  %v7043_v21 = vsub.s32 3, %v4811_v15 }
 0x71b   : > { %4652 = vmatmul.mubr.bf16.vlgmr.msra.gmra.mxu0 %v7010_v16  ;;  %4693 = vmatmul.mubr.bf16.vlgmr.msra.gmra.mxu1 %v7010_v16  ;;  %v7053_v52 = vsub.s32 4, %v4811_v15  ;;  %v7055_v53 = vsub.s32 6, %v4811_v15  ;;  %v7058_v54 = vsub.s32 5, %v4811_v15 }
 0x71c   : > { %4702 = vmatpush1.bf16.msra.mxu0 %v5777_v24  ;;  %4743 = vmatpush1.bf16.msra.mxu1 %v5779_v25  ;;  %v4813_v22 = vrot.slane %v3328_v19, %v7034_v17  ;;  %v4821_v23 = vrot.slane %v3328_v19, %v7036_v18  ;;  %v4825_v24 = vrot.slane %v3328_v19, %v7043_v21 }
 0x71d   : > { %4703 = vmatprep.subr.bf16.mxu0 %v5754_v26  ;;  %4744 = vmatprep.subr.bf16.mxu1 %v5756_v27  ;;  %v4833_v61 = vrot.slane %v3328_v19, %v7058_v54 }
 0x71e   : > { %4733 = vmatprep.mubr.bf16.mxu0 %v6645_v5  ;;  %4774 = vmatprep.mubr.bf16.mxu1 %v6645_v5  ;;  %v5684_v5 = vcombine.high %v3219_v46, %v3231_v47  ;;  %v4930_v25 = vpack.c.bf16 %v4813_v22, %v4813_v22  ;;  %v4932_v26 = vpack.c.bf16 %v4821_v23, %v4821_v23 }
 0x71f   : > { %v4933_v28 = vpack.c.bf16 %v4825_v24, %v4825_v24  ;;  %v4935_v4 = vpack.c.bf16 %v4833_v61, %v4833_v61 }
 0x720   : > { %4704 = vmatpush1.bf16.msra.mxu0 %v5753_v32  ;;  %4745 = vmatpush1.bf16.msra.mxu1 %v5755_v33  ;;  %v4955_v29 = vpack.i.b16 %v4930_v25, %v4930_v25  ;;  %v4969_v30 = vpack.i.b16 %v4932_v26, %v4932_v26 }
 0x721   : > { %4705 = vmatprep.subr.bf16.mxu0 %v5730_v34  ;;  %4746 = vmatprep.subr.bf16.mxu1 %v5732_v35  ;;  %v4976_v32 = vpack.i.b16 %v4933_v28, %v4933_v28 }
 0x722   : > { %v4960_v33 = vrot.slane %v4955_v29, %v7034_v17  ;;  %v4974_v34 = vrot.slane %v4969_v30, %v7034_v17 }
 0x724   : > { %4706 = vmatpush1.bf16.msra.mxu0 %v5729_v40  ;;  %4747 = vmatpush1.bf16.msra.mxu1 %v5731_v41  ;;  %v4981_v40 = vrot.slane %v4976_v32, %v7034_v17 }
 0x725   : > { %4707 = vmatprep.subr.bf16.mxu0 %v5706_v42  ;;  %4748 = vmatprep.subr.bf16.mxu1 %v5708_v43 }
 0x728   : > { %4708 = vmatpush1.bf16.msra.mxu0 %v5705_v48  ;;  %4749 = vmatpush1.bf16.msra.mxu1 %v5707_v49 }
 0x729   : > { %4709 = vmatprep.subr.bf16.mxu0 %v5682_v50  ;;  %4750 = vmatprep.subr.bf16.mxu1 %v5684_v5 }
 0x72c   : > { %4710 = vmatpush1.bf16.msra.mxu0 %v5681_v55  ;;  %4751 = vmatpush1.bf16.msra.mxu1 %v5683_v56  ;;  %v7060_v55 = vsub.s32 7, %v4811_v15 }
 0x72d   : > { %4711 = vmatprep.subr.bf16.mxu0 %v5658_v57  ;;  %4752 = vmatprep.subr.bf16.mxu1 %v5660_v58  ;;  %v4829_v57 = vrot.slane %v3328_v19, %v7053_v52  ;;  %v4837_v58 = vrot.slane %v3328_v19, %v7055_v53 }
 0x72e   : > { %v4841_v63 = vrot.slane %v3328_v19, %v7060_v55 }
 0x72f   : > { %v4936_v3 = vpack.c.bf16 %v4837_v58, %v4837_v58 }
 0x730   : > { %4712 = vmatpush1.bf16.msra.mxu0 %v5657_v0  ;;  %4753 = vmatpush1.bf16.msra.mxu1 %v5659_v62  ;;  %v4937_v6 = vpack.c.bf16 %v4841_v63, %v4841_v63 }
 0x731   : > { %4713 = vmatprep.subr.bf16.mxu0 %v5634_v1  ;;  %4754 = vmatprep.subr.bf16.mxu1 %v5636_v2  ;;  %v4934_v2 = vpack.c.bf16 %v4829_v57, %v4829_v57 }
 0x733   : > { %v4983_v7 = vpack.i.b16 %v4934_v2, %v4934_v2 }
 0x734   : > { %4714 = vmatpush1.bf16.msra.mxu0 %v5633_v8  ;;  %4755 = vmatpush1.bf16.msra.mxu1 %v5635_v9  ;;  %v4997_v8 = vpack.i.b16 %v4936_v3, %v4936_v3  ;;  %v4990_v9 = vpack.i.b16 %v4935_v4, %v4935_v4 }
 0x735   : > { %4715 = vmatprep.subr.bf16.mxu0 %v5610_v10  ;;  %4756 = vmatprep.subr.bf16.mxu1 %v5612_v11  ;;  %v5004_v10 = vpack.i.b16 %v4937_v6, %v4937_v6  ;;  %v4988_v11 = vrot.slane %v4983_v7, %v7034_v17 }
 0x736   : > { %v4995_v22 = vrot.slane %v4990_v9, %v7034_v17 }
 0x737   : > { %v5009_v23 = vrot.slane %v5004_v10, %v7034_v17 }
 0x738   : > { %4716 = vmatpush1.bf16.msra.mxu0 %v5609_v12  ;;  %4757 = vmatpush1.bf16.msra.mxu1 %v5611_v13  ;;  %v5002_v12 = vrot.slane %v4997_v8, %v7034_v17 }
 0x73b   : > { %4734 = vmatmul.mubr.bf16.vlgmr.msra.gmra.mxu0 %v7010_v16  ;;  %4775 = vmatmul.mubr.bf16.vlgmr.msra.gmra.mxu1 %v7010_v16  ;;  %v4817_v16 = vrot.slane %v3328_v19, %v7041_v20 }
 0x73d   : > { %v4931_v27 = vpack.c.bf16 %v4817_v16, %v4817_v16 }
 0x73f   : > { %v4962_v31 = vpack.i.b16 %v4931_v27, %v4931_v27 }
 0x741   : > { %v4967_v39 = vrot.slane %v4962_v31, %v7034_v17 }
 0x75b   : > { %v4325_v35 = vpop.f32.mrf.mxu0  ;;  %v4366_v36 = vpop.f32.mrf.mxu1 }
 0x75c   : > { %v4783_v37 = vpack.c.bf16 %v4325_v35, %v4325_v35  ;;  %v4785_v38 = vpack.c.bf16 %v4366_v36, %v4366_v36  ;;  %v3329_v35 = vld [vmem:[%s7225_s20 + $0x8] sm:$0xff] }
 0x75d   : > { %v4327_v41 = vpop.f32.mrf.mxu0  ;;  %v4368_v42 = vpop.f32.mrf.mxu1 }
 0x75e   : > { %v5122_v43 = vadd.bf16 %v4960_v33, %v4783_v37  ;;  %v5124_v44 = vadd.bf16 %v4974_v34, %v4785_v38  ;;  %v4784_v45 = vpack.c.bf16 %v4327_v41, %v4327_v41  ;;  %v4786_v46 = vpack.c.bf16 %v4368_v42, %v4368_v42 }
 0x75f   : > { %v4329_v47 = vpop.f32.mrf.mxu0  ;;  %v4370_v48 = vpop.f32.mrf.mxu1  ;;  %v4845_v37 = vrot.slane %v3329_v35, %v7034_v17  ;;  %v4853_v38 = vrot.slane %v3329_v35, %v7036_v18  ;;  %v4849_v41 = vrot.slane %v3329_v35, %v7041_v20  ;;  %v4857_v42 = vrot.slane %v3329_v35, %v7043_v21 }
 0x760   : > { %6437 = vtanh.bf16 %v5122_v43  ;;  %v5123_v49 = vadd.bf16 %v4967_v39, %v4784_v45  ;;  %v5125_v50 = vadd.bf16 %v4981_v40, %v4786_v46 }
 0x761   : > { %6439 = vtanh.bf16 %v5124_v44  ;;  %v4330_v5 = vpop.f32.mrf.mxu0  ;;  %v4371_v51 = vpop.f32.mrf.mxu1  ;;  %v4938_v46 = vpack.c.bf16 %v4845_v37, %v4845_v37  ;;  %v4940_v47 = vpack.c.bf16 %v4853_v38, %v4853_v38  ;;  %v4939_v48 = vpack.c.bf16 %v4849_v41, %v4849_v41 }
 0x762   : > { %6441 = vtanh.bf16 %v5123_v49  ;;  %v4941_v49 = vpack.c.bf16 %v4857_v42, %v4857_v42 }
 0x763   : > { %6443 = vtanh.bf16 %v5125_v50  ;;  %v5011_v50 = vpack.i.b16 %v4938_v46, %v4938_v46  ;;  %v5025_v5 = vpack.i.b16 %v4940_v47, %v4940_v47  ;;  %v5018_v51 = vpack.i.b16 %v4939_v48, %v4939_v48 }
 0x765   : > { %v5016_v57 = vrot.slane %v5011_v50, %v7034_v17  ;;  %v5030_v58 = vrot.slane %v5025_v5, %v7034_v17 }
 0x76e   : > { %v6438_v56 = vpop.eup %6437 }
 0x76f   : > { %v6440_v59 = vpop.eup %6439 }
 0x770   : > { %v6442_v60 = vpop.eup %6441 }
 0x771   : > { %v6444_v0 = vpop.eup %6443  ;;  %v5781_v62 = vcombine.low %v6438_v56, %v6442_v60  ;;  %v5032_v56 = vpack.i.b16 %v4941_v49, %v4941_v49 }
 0x772   : > { %v5782_v1 = vcombine.low %v6440_v59, %v6444_v0  ;;  %v5023_v0 = vrot.slane %v5018_v51, %v7034_v17 }
 0x773   : > { %5242 = vst [vmem:[%s7066_s26] sm:$0xff] %v5781_v62  ;;  %v5037_v62 = vrot.slane %v5032_v56, %v7034_v17 }
 0x774   : > { %5243 = vst [vmem:[%s7066_s26 + $0x8] sm:$0xff] %v5782_v1 }
 0x77b   : > { %v4407_v13 = vpop.f32.mrf.mxu0  ;;  %v4448_v14 = vpop.f32.mrf.mxu1 }
 0x77c   : > { %v4787_v15 = vpack.c.bf16 %v4407_v13, %v4407_v13  ;;  %v4789_v19 = vpack.c.bf16 %v4448_v14, %v4448_v14 }
 0x77d   : > { %v4409_v16 = vpop.f32.mrf.mxu0  ;;  %v4450_v24 = vpop.f32.mrf.mxu1 }
 0x77e   : > { %v5126_v25 = vadd.bf16 %v4988_v11, %v4787_v15  ;;  %v5128_v26 = vadd.bf16 %v5002_v12, %v4789_v19  ;;  %v4788_v27 = vpack.c.bf16 %v4409_v16, %v4409_v16  ;;  %v4790_v28 = vpack.c.bf16 %v4450_v24, %v4450_v24 }
 0x77f   : > { %v4411_v29 = vpop.f32.mrf.mxu0  ;;  %v4452_v30 = vpop.f32.mrf.mxu1  ;;  %v4861_v15 = vrot.slane %v3329_v35, %v7053_v52  ;;  %v4869_v19 = vrot.slane %v3329_v35, %v7055_v53  ;;  %v4865_v16 = vrot.slane %v3329_v35, %v7058_v54  ;;  %v4873_v24 = vrot.slane %v3329_v35, %v7060_v55 }
 0x780   : > { %6445 = vtanh.bf16 %v5126_v25  ;;  %v5127_v31 = vadd.bf16 %v4995_v22, %v4788_v27  ;;  %v5129_v32 = vadd.bf16 %v5009_v23, %v4790_v28 }
 0x781   : > { %6447 = vtanh.bf16 %v5128_v26  ;;  %v4412_v33 = vpop.f32.mrf.mxu0  ;;  %v4453_v34 = vpop.f32.mrf.mxu1  ;;  %v4942_v28 = vpack.c.bf16 %v4861_v15, %v4861_v15  ;;  %v4944_v29 = vpack.c.bf16 %v4869_v19, %v4869_v19  ;;  %v4943_v30 = vpack.c.bf16 %v4865_v16, %v4865_v16 }
 0x782   : > { %6449 = vtanh.bf16 %v5127_v31  ;;  %v4945_v31 = vpack.c.bf16 %v4873_v24, %v4873_v24 }
 0x783   : > { %6451 = vtanh.bf16 %v5129_v32  ;;  %v5039_v32 = vpack.i.b16 %v4942_v28, %v4942_v28  ;;  %v5053_v33 = vpack.i.b16 %v4944_v29, %v4944_v29  ;;  %v5046_v34 = vpack.i.b16 %v4943_v30, %v4943_v30 }
 0x785   : > { %v5044_v37 = vrot.slane %v5039_v32, %v7034_v17  ;;  %v5058_v38 = vrot.slane %v5053_v33, %v7034_v17  ;;  %v5051_v42 = vrot.slane %v5046_v34, %v7034_v17 }
 0x78e   : > { %v6446_v36 = vpop.eup %6445 }
 0x78f   : > { %v6448_v39 = vpop.eup %6447 }
 0x790   : > { %v6450_v40 = vpop.eup %6449 }
 0x791   : > { %v6452_v43 = vpop.eup %6451  ;;  %v5783_v44 = vcombine.low %v6446_v36, %v6450_v40  ;;  %v5060_v36 = vpack.i.b16 %v4945_v31, %v4945_v31 }
 0x792   : > { %v5784_v45 = vcombine.low %v6448_v39, %v6452_v43 }
 0x793   : > { %5244 = vst [vmem:[%s7066_s26 + $0x10] sm:$0xff] %v5783_v44  ;;  %v5065_v43 = vrot.slane %v5060_v36, %v7034_v17 }
 0x794   : > { %5245 = vst [vmem:[%s7066_s26 + $0x18] sm:$0xff] %v5784_v45 }
 0x79b   : > { %v4489_v59 = vpop.f32.mrf.mxu0  ;;  %v4530_v60 = vpop.f32.mrf.mxu1 }
 0x79c   : > { %v4791_v61 = vpack.c.bf16 %v4489_v59, %v4489_v59  ;;  %v4793_v63 = vpack.c.bf16 %v4530_v60, %v4530_v60  ;;  %v3330_v59 = vld [vmem:[%s7225_s20 + $0x10] sm:$0xff] }
 0x79d   : > { %v4491_v1 = vpop.f32.mrf.mxu0  ;;  %v4532_v2 = vpop.f32.mrf.mxu1 }
 0x79e   : > { %v5130_v3 = vadd.bf16 %v5016_v57, %v4791_v61  ;;  %v5132_v4 = vadd.bf16 %v5030_v58, %v4793_v63  ;;  %v4792_v6 = vpack.c.bf16 %v4491_v1, %v4491_v1  ;;  %v4794_v7 = vpack.c.bf16 %v4532_v2, %v4532_v2 }
 0x79f   : > { %v4493_v8 = vpop.f32.mrf.mxu0  ;;  %v4534_v9 = vpop.f32.mrf.mxu1  ;;  %v4877_v61 = vrot.slane %v3330_v59, %v7034_v17  ;;  %v4885_v63 = vrot.slane %v3330_v59, %v7036_v18  ;;  %v4881_v1 = vrot.slane %v3330_v59, %v7041_v20  ;;  %v4889_v2 = vrot.slane %v3330_v59, %v7043_v21 }
 0x7a0   : > { %6453 = vtanh.bf16 %v5130_v3  ;;  %v5131_v10 = vadd.bf16 %v5023_v0, %v4792_v6  ;;  %v5133_v11 = vadd.bf16 %v5037_v62, %v4794_v7 }
 0x7a1   : > { %6455 = vtanh.bf16 %v5132_v4  ;;  %v4494_v12 = vpop.f32.mrf.mxu0  ;;  %v4535_v13 = vpop.f32.mrf.mxu1  ;;  %v4946_v7 = vpack.c.bf16 %v4877_v61, %v4877_v61  ;;  %v4948_v8 = vpack.c.bf16 %v4885_v63, %v4885_v63  ;;  %v4947_v9 = vpack.c.bf16 %v4881_v1, %v4881_v1 }
 0x7a2   : > { %6457 = vtanh.bf16 %v5131_v10  ;;  %v4949_v10 = vpack.c.bf16 %v4889_v2, %v4889_v2 }
 0x7a3   : > { %6459 = vtanh.bf16 %v5133_v11  ;;  %v5067_v11 = vpack.i.b16 %v4946_v7, %v4946_v7  ;;  %v5081_v12 = vpack.i.b16 %v4948_v8, %v4948_v8  ;;  %v5074_v13 = vpack.i.b16 %v4947_v9, %v4947_v9 }
 0x7a5   : > { %v5072_v18 = vrot.slane %v5067_v11, %v7034_v17  ;;  %v5086_v15 = vrot.slane %v5081_v12, %v7034_v17 }
 0x7ae   : > { %v6454_v14 = vpop.eup %6453 }
 0x7af   : > { %v6456_v22 = vpop.eup %6455 }
 0x7b0   : > { %v6458_v23 = vpop.eup %6457 }
 0x7b1   : > { %v6460_v25 = vpop.eup %6459  ;;  %v5785_v26 = vcombine.low %v6454_v14, %v6458_v23  ;;  %v5088_v14 = vpack.i.b16 %v4949_v10, %v4949_v10  ;;  %v5079_v23 = vrot.slane %v5074_v13, %v7034_v17 }
 0x7b2   : > { %v5786_v27 = vcombine.low %v6456_v22, %v6460_v25 }
 0x7b3   : > { %5246 = vst [vmem:[%s7066_s26 + $0x20] sm:$0xff] %v5785_v26  ;;  %v5093_v16 = vrot.slane %v5088_v14, %v7034_v17 }
 0x7b4   : > { %5247 = vst [vmem:[%s7066_s26 + $0x28] sm:$0xff] %v5786_v27 }
 0x7bb   : > { %v4571_v39 = vpop.f32.mrf.mxu0  ;;  %v4612_v40 = vpop.f32.mrf.mxu1 }
 0x7bc   : > { %v4795_v35 = vpack.c.bf16 %v4571_v39, %v4571_v39  ;;  %v4797_v41 = vpack.c.bf16 %v4612_v40, %v4612_v40  ;;  %v4901_v39 = vrot.slane %v3330_v59, %v7055_v53 }
 0x7bd   : > { %v4573_v44 = vpop.f32.mrf.mxu0  ;;  %v4614_v45 = vpop.f32.mrf.mxu1 }
 0x7be   : > { %v5134_v46 = vadd.bf16 %v5044_v37, %v4795_v35  ;;  %v5136_v47 = vadd.bf16 %v5058_v38, %v4797_v41  ;;  %v4796_v48 = vpack.c.bf16 %v4573_v44, %v4573_v44  ;;  %v4798_v49 = vpack.c.bf16 %v4614_v45, %v4614_v45 }
 0x7bf   : > { %v4575_v50 = vpop.f32.mrf.mxu0  ;;  %v4616_v5 = vpop.f32.mrf.mxu1  ;;  %v4893_v38 = vrot.slane %v3330_v59, %v7053_v52  ;;  %v4897_v41 = vrot.slane %v3330_v59, %v7058_v54 }
 0x7c0   : > { %6461 = vtanh.bf16 %v5134_v46  ;;  %v5135_v51 = vadd.bf16 %v5051_v42, %v4796_v48  ;;  %v5137_v56 = vadd.bf16 %v5065_v43, %v4798_v49  ;;  %v4905_v42 = vrot.slane %v3330_v59, %v7060_v55 }
 0x7c1   : > { %6463 = vtanh.bf16 %v5136_v47  ;;  %v4576_v57 = vpop.f32.mrf.mxu0  ;;  %v4617_v58 = vpop.f32.mrf.mxu1  ;;  %v4950_v46 = vpack.c.bf16 %v4893_v38, %v4893_v38  ;;  %v4952_v47 = vpack.c.bf16 %v4901_v39, %v4901_v39  ;;  %v4951_v48 = vpack.c.bf16 %v4897_v41, %v4897_v41 }
 0x7c2   : > { %6465 = vtanh.bf16 %v5135_v51  ;;  %v4953_v49 = vpack.c.bf16 %v4905_v42, %v4905_v42 }
 0x7c3   : > { %6467 = vtanh.bf16 %v5137_v56  ;;  %v5095_v50 = vpack.i.b16 %v4950_v46, %v4950_v46  ;;  %v5109_v5 = vpack.i.b16 %v4952_v47, %v4952_v47  ;;  %v5102_v52 = vpack.i.b16 %v4951_v48, %v4951_v48 }
 0x7c4   : > { %v5116_v51 = vpack.i.b16 %v4953_v49, %v4953_v49 }
 0x7c5   : > { %v5100_v53 = vrot.slane %v5095_v50, %v7034_v17  ;;  %v5114_v56 = vrot.slane %v5109_v5, %v7034_v17  ;;  %v5107_v59 = vrot.slane %v5102_v52, %v7034_v17 }
 0x7ce   : > { %v6462_v60 = vpop.eup %6461 }
 0x7cf   : > { %v6464_v0 = vpop.eup %6463 }
 0x7d0   : > { %v6466_v62 = vpop.eup %6465 }
 0x7d1   : > { %v6468_v3 = vpop.eup %6467  ;;  %v5787_v4 = vcombine.low %v6462_v60, %v6466_v62  ;;  %v5121_v60 = vrot.slane %v5116_v51, %v7034_v17 }
 0x7d2   : > { %v5788_v6 = vcombine.low %v6464_v0, %v6468_v3 }
 0x7d3   : > { %5248 = vst [vmem:[%s7066_s26 + $0x30] sm:$0xff] %v5787_v4 }
 0x7d4   : > { %5249 = vst [vmem:[%s7066_s26 + $0x38] sm:$0xff] %v5788_v6 }
 0x7db   : > { %v4653_v20 = vpop.f32.mrf.mxu0  ;;  %v4694_v19 = vpop.f32.mrf.mxu1 }
 0x7dc   : > { %v4799_v21 = vpack.c.bf16 %v4653_v20, %v4653_v20  ;;  %v4801_v22 = vpack.c.bf16 %v4694_v19, %v4694_v19 }
 0x7dd   : > { %v4655_v24 = vpop.f32.mrf.mxu0  ;;  %v4696_v25 = vpop.f32.mrf.mxu1 }
 0x7de   : > { %v5138_v26 = vadd.bf16 %v5072_v18, %v4799_v21  ;;  %v5140_v27 = vadd.bf16 %v5086_v15, %v4801_v22  ;;  %v4800_v28 = vpack.c.bf16 %v4655_v24, %v4655_v24  ;;  %v4802_v29 = vpack.c.bf16 %v4696_v25, %v4696_v25 }
 0x7df   : > { %v4657_v30 = vpop.f32.mrf.mxu0  ;;  %v4698_v31 = vpop.f32.mrf.mxu1 }
 0x7e0   : > { %6469 = vtanh.bf16 %v5138_v26  ;;  %v5139_v32 = vadd.bf16 %v5079_v23, %v4800_v28  ;;  %v5141_v33 = vadd.bf16 %v5093_v16, %v4802_v29 }
 0x7e1   : > { %6471 = vtanh.bf16 %v5140_v27  ;;  %v4658_v34 = vpop.f32.mrf.mxu0  ;;  %v4699_v36 = vpop.f32.mrf.mxu1 }
 0x7e2   : > { %6473 = vtanh.bf16 %v5139_v32 }
 0x7e3   : > { %6475 = vtanh.bf16 %v5141_v33 }
 0x7ee   : > { %v6470_v37 = vpop.eup %6469 }
 0x7ef   : > { %v6472_v40 = vpop.eup %6471 }
 0x7f0   : > { %v6474_v35 = vpop.eup %6473 }
 0x7f1   : > { %v6476_v43 = vpop.eup %6475  ;;  %v5789_v44 = vcombine.low %v6470_v37, %v6474_v35 }
 0x7f2   : > { %v5790_v45 = vcombine.low %v6472_v40, %v6476_v43 }
 0x7f3   : > { %5250 = vst [vmem:[%s7066_s26 + $0x40] sm:$0xff] %v5789_v44 }
 0x7f4   : > { %5251 = vst [vmem:[%s7066_s26 + $0x48] sm:$0xff] %v5790_v45 }
 0x7fb   : > { %v4735_v54 = vpop.f32.mrf.mxu0  ;;  %v4776_v57 = vpop.f32.mrf.mxu1 }
 0x7fc   : > { %v4803_v55 = vpack.c.bf16 %v4735_v54, %v4735_v54  ;;  %v4805_v58 = vpack.c.bf16 %v4776_v57, %v4776_v57 }
 0x7fd   : > { %v4737_v61 = vpop.f32.mrf.mxu0  ;;  %v4778_v63 = vpop.f32.mrf.mxu1 }
 0x7fe   : > { %v5142_v0 = vadd.bf16 %v5100_v53, %v4803_v55  ;;  %v5144_v62 = vadd.bf16 %v5114_v56, %v4805_v58  ;;  %v4804_v1 = vpack.c.bf16 %v4737_v61, %v4737_v61  ;;  %v4806_v2 = vpack.c.bf16 %v4778_v63, %v4778_v63 }
 0x7ff   : > { %v4739_v3 = vpop.f32.mrf.mxu0  ;;  %v4780_v4 = vpop.f32.mrf.mxu1 }
 0x800   : > { %6477 = vtanh.bf16 %v5142_v0  ;;  %v5143_v6 = vadd.bf16 %v5107_v59, %v4804_v1  ;;  %v5145_v7 = vadd.bf16 %v5121_v60, %v4806_v2 }
 0x801   : > { %6479 = vtanh.bf16 %v5144_v62  ;;  %v4740_v8 = vpop.f32.mrf.mxu0  ;;  %v4781_v9 = vpop.f32.mrf.mxu1 }
 0x802   : > { %6481 = vtanh.bf16 %v5143_v6 }
 0x803   : > { %6483 = vtanh.bf16 %v5145_v7 }
 0x80e   : > { %v6478_v17 = vpop.eup %6477 }
 0x80f   : > { %v6480_v10 = vpop.eup %6479 }
 0x810   : > { %v6482_v11 = vpop.eup %6481 }
 0x811   : > { %v6484_v12 = vpop.eup %6483  ;;  %v5791_v13 = vcombine.low %v6478_v17, %v6482_v11 }
 0x812   : > { %v5792_v14 = vcombine.low %v6480_v10, %v6484_v12 }
 0x813   : > { %5252 = vst [vmem:[%s7066_s26 + $0x50] sm:$0xff] %v5791_v13 }
 0x814   : > { %5253 = vst [vmem:[%s7066_s26 + $0x58] sm:$0xff] %v5792_v14 }
 0x815   : > { %6578 = shalt.err (!%p6575_p9)
}
 0x816   : > { %s6579_s26 = scalar_lea.hbm %s7125_s22, 1536  ;;  %s6583_s0 = scalar_lea.hbm %s7227_s17, 3072 }
 0x817   : > { %p6580_p13 = scmp.ne.s32.totalorder %s7125_s22, %s6579_s26  ;;  %p6584_p0 = scmp.lt.s32.totalorder %s7125_s22, %s7227_s17 }
 0x818   : > { %p6585_p4 = scmp.lt.s32.totalorder %s6583_s0, %s6579_s26 }
 0x819   : > { %p6581_p5 = pnand %p6580_p13, %p7228_p11 }
 0x81a   : > { %p6586_p8 = por %p6585_p4, %p6584_p0 }
 0x81b   : > { %p6582_p10 = pneg %p6581_p5 }
 0x81d   : > { %p6587_p7 = pnand %p6586_p8, %p6582_p10 }
 0x81f   : > { %6590 = shalt.err (!%p6587_p7)
}
 0x820   : > { %6162 = dma.vmem_to_hbm [thread:$0]  (%p7228_p11), %s5270_s21, 1536, %s7125_s22, %s5255_s15  }
 0x821 PF: > { %s7229_s19 = sld [smem:[#allocation12_spill]] }
 0x822   : > { %s7230_s30 = sld [smem:[#allocation15_spill]] }
 0x823   : > { %s7231_s28 = sld [smem:[#allocation14_spill]] }
 0x827   : > { %s5281_s27 = sand.u32 1, %s7229_s19  }
 0x828   : > { %p7232_p1 = scmp.ne.s32.totalorder %s7230_s30, 0  ;;  %s5282_s24 = scalar_lea.sflag [#allocation4], %s5281_s27 }
 0x829   : > { %p7233_p2 = scmp.ge.s32.totalorder %s7231_s28, 2 }
 0x82b   : > { %p6176_p6 = pnand %p7233_p2, %p7232_p1 }
 0x82d   : > { %p6177_p12 = pneg %p6176_p6 }
 0x82f   : > { %6616 = dma.done.wait (%p6177_p12), %s5282_s24, 1536  }
 0x830   : > { %6618 = vsyncadd (%p6177_p12), %s5282_s24, 4294965760  ;;  %s7234_s27 = sld [smem:[#allocation16_spill]]  ;;  %s7237_s24 = smov %s6625_s25 }
 0x831   : > { %s7235_s26 = sld [smem:[#allocation13_spill]] }
 0x832   : > { %s7236_s16 = sld [smem:[#allocation17_spill]] }
 0x836   : > { %p31_p3 = scmp.ge.s32.totalorder %s7234_s27, 4  }
 0x837   : > { %s7238_s25 = smov %s7235_s26 }
 0x838   : > { %s7239_s26 = smov %s7236_s16  ;;  %33 = sbr.rel (!%p31_p3) target bundleno = 13 (0xd), region = 141 }
 0x83d   :  { %5287 = vsyncpa [#allocation3], 1 }
 0x83e   :  { %5289 = vsyncpa [#allocation3 + $0x1], 1 }
 0x83f   :  { %5290 = vsyncpa [#allocation6], 1 }
 0x840   :  { %5291 = vsyncpa [#allocation4], 1 }
 0x841   :  { %5293 = vsyncpa [#allocation4 + $0x1], 1 }

</bundles_post_ra>
